<compile_context>
chip_gen: v7x
topology: tpu7x:2x2x1
jax: 0.10.0
libtpu: 0.0.40
codegen_flags: <defaults>
</compile_context>

<pallas_src>
import functools

import jax
import jax.numpy as jnp
from jax import lax
from jax.experimental import pallas as pl
from jax.experimental.pallas import tpu as pltpu


def lstm_kernel(x_ref, w_enc_ref, b_enc_ref, w_ih_ref, w_hh_ref, b_ref,
                w_dec_ref, b_dec_ref, out_ref, seq_buf, gx_buf, *, n_layer):
    S, B, F = x_ref.shape
    D = w_enc_ref.shape[1]

    # ---- encode: x @ W_enc + b_enc -----------------------------------------
    x = x_ref[...].reshape(S * B, F)
    enc = jnp.dot(x, w_enc_ref[...], preferred_element_type=jnp.float32)
    enc = enc + b_enc_ref[...]                       # (S*B, D) + (1, D)
    seq_buf[...] = enc.reshape(S, B, D)

    # ---- stacked LSTM layers (kernel gate order: i, f, o, g) ----------------
    for l in range(n_layer):                         # static, small
        w_hh_t = w_hh_ref[l]                         # (D, 4D) pre-transposed

        # Hoisted input projection for ALL timesteps of this layer:
        # one big (S*B, D) x (D, 4D) matmul + fused bias -> gx_buf.
        gx = jnp.dot(seq_buf[...].reshape(S * B, D), w_ih_ref[l],
                     preferred_element_type=jnp.float32)
        gx = gx + b_ref[pl.ds(l, 1), :]              # (S*B, 4D) + (1, 4D)
        gx_buf[...] = gx.reshape(S, B, 4 * D)

        def step(t, carry):
            h_prev, c_prev = carry
            # Only the recurrent matmul stays on the serial path.
            gates = gx_buf[t] + jnp.dot(h_prev, w_hh_t,
                                        preferred_element_type=jnp.float32)
            sig = jax.nn.sigmoid(gates[:, 0:3 * D])  # (i, f, o) in one slab
            i_g = sig[:, 0 * D:1 * D]
            f_g = sig[:, 1 * D:2 * D]
            o_g = sig[:, 2 * D:3 * D]
            g_g = jnp.tanh(gates[:, 3 * D:4 * D])
            c_new = f_g * c_prev + i_g * g_g
            h_new = o_g * jnp.tanh(c_new)
            seq_buf[t] = h_new                       # this layer's output
            return (h_new, c_new)

        h0 = jnp.zeros((B, D), jnp.float32)
        c0 = jnp.zeros((B, D), jnp.float32)
        lax.fori_loop(0, S, step, (h0, c0), unroll=True)

    # ---- decode: h @ W_dec + b_dec ------------------------------------------
    dec = jnp.dot(seq_buf[...].reshape(S * B, D), w_dec_ref[...],
                  preferred_element_type=jnp.float32)
    dec = dec + b_dec_ref[...]                       # (S*B, F) + (1, F)
    out_ref[...] = dec.reshape(S, B, F)


def lstm_forward(x, kparams, *, n_layer):
    S, B, F = x.shape
    D = kparams["w_enc"].shape[1]
    kernel = functools.partial(lstm_kernel, n_layer=n_layer)
    vmem = pl.BlockSpec(memory_space=pltpu.MemorySpace.VMEM)

    args = (x, kparams["w_enc"], kparams["b_enc"], kparams["w_ih_t"],
            kparams["w_hh_t"], kparams["b_lstm"], kparams["w_dec"],
            kparams["b_dec"])
    flops = 2 * S * B * (F * D + n_layer * 2 * D * 4 * D + D * F)
    transcendentals = 5 * S * B * D * n_layer
    bytes_accessed = 4 * (sum(int(a.size) for a in args)
                          + S * B * F                    # output
                          + S * B * D + S * B * 4 * D)   # activations

    return pl.pallas_call(
        kernel,
        out_shape=jax.ShapeDtypeStruct((S, B, F), jnp.float32),
        in_specs=[vmem] * 8,
        out_specs=vmem,
        scratch_shapes=[
            pltpu.VMEM((S, B, D), jnp.float32),          # current layer seq
            pltpu.VMEM((S, B, 4 * D), jnp.float32),      # hoisted x-projection
        ],
        compiler_params=pltpu.CompilerParams(
            vmem_limit_bytes=64 * 1024 * 1024),
        cost_estimate=pl.CostEstimate(
            flops=flops, transcendentals=transcendentals,
            bytes_accessed=bytes_accessed),
    )(*args)
    # TODO(synk): for large D / v7x, stream bf16 weights from HBM per layer and
    # add a parallel batch grid for the second TensorCore.


# ---------------------------------------------------------------------------
# Parameters in PyTorch layout (gate order i, f, g, o) + kernel re-layout.
# ---------------------------------------------------------------------------
def init_torch_params(key, features, d_model, n_layer):
    ks = jax.random.split(key, 8)

    def u(k, shape, bound):
        return jax.random.uniform(k, shape, jnp.float32, -bound, bound)

    k_enc = 1.0 / (features ** 0.5)
    k_h = 1.0 / (d_model ** 0.5)
    return dict(
        w_enc=u(ks[0], (d_model, features), k_enc),       # nn.Linear weight
        b_enc=u(ks[1], (d_model,), k_enc),
        w_ih=u(ks[2], (n_layer, 4 * d_model, d_model), k_h),   # (4H, in)
        w_hh=u(ks[3], (n_layer, 4 * d_model, d_model), k_h),
        b_ih=u(ks[4], (n_layer, 4 * d_model), k_h),
        b_hh=u(ks[5], (n_layer, 4 * d_model), k_h),
        w_dec=u(ks[6], (features, d_model), k_h),
        b_dec=u(ks[7], (features,), k_h),
    )


def prepare_kernel_params(tp, d_model):
    D = d_model

    def reorder(w, axis):
        # PyTorch gate order (i, f, g, o) -> kernel order (i, f, o, g) so that
        # sigmoid gates are contiguous.
        i, f, g, o = jnp.split(w, 4, axis=axis)
        return jnp.concatenate([i, f, o, g], axis=axis)

    w_ih = reorder(tp["w_ih"], axis=1)                     # (L, 4D, D)
    w_hh = reorder(tp["w_hh"], axis=1)
    b_lstm = reorder(tp["b_ih"] + tp["b_hh"], axis=1)      # (L, 4D)
    return dict(
        w_enc=jnp.transpose(tp["w_enc"]),                  # (F, D)
        b_enc=tp["b_enc"].reshape(1, D),
        w_ih_t=jnp.transpose(w_ih, (0, 2, 1)),             # (L, D, 4D)
        w_hh_t=jnp.transpose(w_hh, (0, 2, 1)),             # (L, D, 4D)
        b_lstm=b_lstm,                                     # (L, 4D)
        w_dec=jnp.transpose(tp["w_dec"]),                  # (D, F)
        b_dec=tp["b_dec"].reshape(1, -1),
    )


def lstm_reference(x, tp, n_layer):
    """Pure-JAX reference with PyTorch LSTM semantics (gate order i,f,g,o)."""
    S, B, F = x.shape
    D = tp["w_hh"].shape[2]
    hp = lax.Precision.HIGHEST
    h = jnp.einsum("sbf,df->sbd", x, tp["w_enc"], precision=hp) + tp["b_enc"]
    for l in range(n_layer):
        w_ih = tp["w_ih"][l]                               # (4D, D)
        w_hh = tp["w_hh"][l]
        b = tp["b_ih"][l] + tp["b_hh"][l]

        def step(carry, xt):
            h_prev, c_prev = carry
            gates = (jnp.dot(xt, w_ih.T, precision=hp)
                     + jnp.dot(h_prev, w_hh.T, precision=hp) + b)
            i = jax.nn.sigmoid(gates[:, 0 * D:1 * D])
            f = jax.nn.sigmoid(gates[:, 1 * D:2 * D])
            g = jnp.tanh(gates[:, 2 * D:3 * D])
            o = jax.nn.sigmoid(gates[:, 3 * D:4 * D])
            c = f * c_prev + i * g
            hh = o * jnp.tanh(c)
            return (hh, c), hh

        (_, _), h = lax.scan(
            step,
            (jnp.zeros((B, D), jnp.float32), jnp.zeros((B, D), jnp.float32)),
            h)
    y = jnp.einsum("sbd,fd->sbf", h, tp["w_dec"], precision=hp)
    return y + tp["b_dec"]


if __name__ == "__main__":
    seq, batch, features, d_model, n_layer = 8, 8, 64, 128, 2
    key = jax.random.PRNGKey(0)
    kx, kp = jax.random.split(key)
    x = jax.random.normal(kx, (seq, batch, features), jnp.float32)

    torch_params = init_torch_params(kp, features, d_model, n_layer)
    kernel_params = prepare_kernel_params(torch_params, d_model)

    y = lstm_forward(x, kernel_params, n_layer=n_layer)
    y = jax.block_until_ready(y)

    y_ref = lstm_reference(x, torch_params, n_layer)
    assert y.shape == (seq, batch, features)
    max_err = float(jnp.max(jnp.abs(y - y_ref)))
    if not jnp.allclose(y, y_ref, atol=2e-2, rtol=2e-2):
        raise AssertionError(f"kernel mismatch vs reference, max abs err {max_err}")
    print("KERNEL_OK")
</pallas_src>

<mosaic_0001>
module attributes {stable_mosaic.version = 11 : i64} {
  func.func @lstm_kernel(%arg0: memref<8x8x64xf32, #tpu.memory_space<vmem>>, %arg1: memref<64x128xf32, #tpu.memory_space<vmem>>, %arg2: memref<1x128xf32, #tpu.memory_space<vmem>>, %arg3: memref<2x128x512xf32, #tpu.memory_space<vmem>>, %arg4: memref<2x128x512xf32, #tpu.memory_space<vmem>>, %arg5: memref<2x512xf32, #tpu.memory_space<vmem>>, %arg6: memref<128x64xf32, #tpu.memory_space<vmem>>, %arg7: memref<1x64xf32, #tpu.memory_space<vmem>>, %arg8: memref<8x8x64xf32, #tpu.memory_space<vmem>>, %arg9: memref<8x8x128xf32, #tpu.memory_space<vmem>>, %arg10: memref<8x8x512xf32, #tpu.memory_space<vmem>>) attributes {dimension_semantics = [], scalar_prefetch = 0 : i64, scratch_operands = 2 : i64, tpu.core_type = #tpu.core_type<tc>} {
    %c0 = arith.constant 0 : index
    %c0_0 = arith.constant 0 : index
    %c0_1 = arith.constant 0 : index
    %0 = vector.load %arg0[%c0, %c0_0, %c0_1] : memref<8x8x64xf32, #tpu.memory_space<vmem>>, vector<8x8x64xf32>
    %1 = vector.shape_cast %0 : vector<8x8x64xf32> to vector<64x64xf32>
    %c0_2 = arith.constant 0 : index
    %c0_3 = arith.constant 0 : index
    %2 = vector.load %arg1[%c0_2, %c0_3] : memref<64x128xf32, #tpu.memory_space<vmem>>, vector<64x128xf32>
    %cst = arith.constant dense<0.000000e+00> : vector<64x128xf32>
    %3 = tpu.matmul %1, %2, %cst {dimension_numbers = #tpu.dot_dimension_numbers<[1], [0], [0], [1], [0, 0, 1, 1], [], []>} : vector<64x64xf32>, vector<64x128xf32>, vector<64x128xf32> -> vector<64x128xf32>
    %c0_4 = arith.constant 0 : index
    %c0_5 = arith.constant 0 : index
    %4 = vector.load %arg2[%c0_4, %c0_5] : memref<1x128xf32, #tpu.memory_space<vmem>>, vector<1x128xf32>
    %5 = vector.broadcast %4 : vector<1x128xf32> to vector<64x128xf32>
    %6 = arith.addf %3, %5 : vector<64x128xf32>
    %7 = vector.shape_cast %6 : vector<64x128xf32> to vector<8x8x128xf32>
    %c0_6 = arith.constant 0 : index
    %c0_7 = arith.constant 0 : index
    %c0_8 = arith.constant 0 : index
    %8 = vector.load %arg9[%c0_6, %c0_7, %c0_8] : memref<8x8x128xf32, #tpu.memory_space<vmem>>, vector<8x8x128xf32>
    tpu.vector_store %arg9[%c0_6, %c0_7, %c0_8], %7 {strides = array<i32>} : memref<8x8x128xf32, #tpu.memory_space<vmem>>, vector<8x8x128xf32>,
    %c0_9 = arith.constant 0 : index
    %c0_10 = arith.constant 0 : index
    %c0_11 = arith.constant 0 : index
    %9 = vector.load %arg4[%c0_9, %c0_10, %c0_11] : memref<2x128x512xf32, #tpu.memory_space<vmem>>, vector<1x128x512xf32>
    %10 = vector.shape_cast %9 : vector<1x128x512xf32> to vector<128x512xf32>
    %c0_12 = arith.constant 0 : index
    %c0_13 = arith.constant 0 : index
    %c0_14 = arith.constant 0 : index
    %11 = vector.load %arg9[%c0_12, %c0_13, %c0_14] : memref<8x8x128xf32, #tpu.memory_space<vmem>>, vector<8x8x128xf32>
    %12 = vector.shape_cast %11 : vector<8x8x128xf32> to vector<64x128xf32>
    %c0_15 = arith.constant 0 : index
    %c0_16 = arith.constant 0 : index
    %c0_17 = arith.constant 0 : index
    %13 = vector.load %arg3[%c0_15, %c0_16, %c0_17] : memref<2x128x512xf32, #tpu.memory_space<vmem>>, vector<1x128x512xf32>
    %14 = vector.shape_cast %13 : vector<1x128x512xf32> to vector<128x512xf32>
    %cst_18 = arith.constant dense<0.000000e+00> : vector<64x512xf32>
    %15 = tpu.matmul %12, %14, %cst_18 {dimension_numbers = #tpu.dot_dimension_numbers<[1], [0], [0], [1], [0, 0, 1, 1], [], []>} : vector<64x128xf32>, vector<128x512xf32>, vector<64x512xf32> -> vector<64x512xf32>
    %c0_19 = arith.constant 0 : index
    %c0_20 = arith.constant 0 : index
    %16 = vector.load %arg5[%c0_19, %c0_20] : memref<2x512xf32, #tpu.memory_space<vmem>>, vector<1x512xf32>
    %17 = vector.broadcast %16 : vector<1x512xf32> to vector<64x512xf32>
    %18 = arith.addf %15, %17 : vector<64x512xf32>
    %19 = vector.shape_cast %18 : vector<64x512xf32> to vector<8x8x512xf32>
    %c0_21 = arith.constant 0 : index
    %c0_22 = arith.constant 0 : index
    %c0_23 = arith.constant 0 : index
    %20 = vector.load %arg10[%c0_21, %c0_22, %c0_23] : memref<8x8x512xf32, #tpu.memory_space<vmem>>, vector<8x8x512xf32>
    tpu.vector_store %arg10[%c0_21, %c0_22, %c0_23], %19 {strides = array<i32>} : memref<8x8x512xf32, #tpu.memory_space<vmem>>, vector<8x8x512xf32>,
    %cst_24 = arith.constant 0.000000e+00 : f32
    %21 = vector.broadcast %cst_24 : f32 to vector<8x128xf32>
    %cst_25 = arith.constant 0.000000e+00 : f32
    %22 = vector.broadcast %cst_25 : f32 to vector<8x128xf32>
    %c0_i32 = arith.constant 0 : i32
    %23 = arith.index_cast %c0_i32 : i32 to index
    %c0_26 = arith.constant 0 : index
    %c0_27 = arith.constant 0 : index
    %24 = vector.load %arg10[%23, %c0_26, %c0_27] : memref<8x8x512xf32, #tpu.memory_space<vmem>>, vector<1x8x512xf32>
    %25 = vector.shape_cast %24 : vector<1x8x512xf32> to vector<8x512xf32>
    %cst_28 = arith.constant dense<0.000000e+00> : vector<8x512xf32>
    %26 = tpu.matmul %21, %10, %cst_28 {dimension_numbers = #tpu.dot_dimension_numbers<[1], [0], [0], [1], [0, 0, 1, 1], [], []>} : vector<8x128xf32>, vector<128x512xf32>, vector<8x512xf32> -> vector<8x512xf32>
    %27 = arith.addf %25, %26 : vector<8x512xf32>
    %28 = vector.extract_strided_slice %27 {offsets = [0, 0], sizes = [8, 384], strides = [1, 1]} : vector<8x512xf32> to vector<8x384xf32>
    %29 = arith.negf %28 : vector<8x384xf32>
    %30 = math.exp %29 : vector<8x384xf32>
    %cst_29 = arith.constant 1.000000e+00 : f32
    %31 = vector.broadcast %cst_29 : f32 to vector<8x384xf32>
    %32 = arith.addf %31, %30 : vector<8x384xf32>
    %33 = arith.divf %31, %32 : vector<8x384xf32>
    %34 = vector.extract_strided_slice %33 {offsets = [0, 0], sizes = [8, 128], strides = [1, 1]} : vector<8x384xf32> to vector<8x128xf32>
    %35 = vector.extract_strided_slice %33 {offsets = [0, 128], sizes = [8, 128], strides = [1, 1]} : vector<8x384xf32> to vector<8x128xf32>
    %36 = vector.extract_strided_slice %33 {offsets = [0, 256], sizes = [8, 128], strides = [1, 1]} : vector<8x384xf32> to vector<8x128xf32>
    %37 = vector.extract_strided_slice %27 {offsets = [0, 384], sizes = [8, 128], strides = [1, 1]} : vector<8x512xf32> to vector<8x128xf32>
    %38 = math.tanh %37 : vector<8x128xf32>
    %39 = arith.mulf %35, %22 : vector<8x128xf32>
    %40 = arith.mulf %34, %38 : vector<8x128xf32>
    %41 = arith.addf %39, %40 : vector<8x128xf32>
    %42 = math.tanh %41 : vector<8x128xf32>
    %43 = arith.mulf %36, %42 : vector<8x128xf32>
    %44 = arith.index_cast %c0_i32 : i32 to index
    %c0_30 = arith.constant 0 : index
    %c0_31 = arith.constant 0 : index
    %45 = vector.load %arg9[%44, %c0_30, %c0_31] : memref<8x8x128xf32, #tpu.memory_space<vmem>>, vector<1x8x128xf32>
    %46 = vector.shape_cast %45 : vector<1x8x128xf32> to vector<8x128xf32>
    %47 = vector.shape_cast %43 : vector<8x128xf32> to vector<1x8x128xf32>
    tpu.vector_store %arg9[%44, %c0_30, %c0_31], %47 {strides = array<i32>} : memref<8x8x128xf32, #tpu.memory_space<vmem>>, vector<1x8x128xf32>,
    %c1_i32 = arith.constant 1 : i32
    %48 = arith.index_cast %c1_i32 : i32 to index
    %c0_32 = arith.constant 0 : index
    %c0_33 = arith.constant 0 : index
    %49 = vector.load %arg10[%48, %c0_32, %c0_33] : memref<8x8x512xf32, #tpu.memory_space<vmem>>, vector<1x8x512xf32>
    %50 = vector.shape_cast %49 : vector<1x8x512xf32> to vector<8x512xf32>
    %cst_34 = arith.constant dense<0.000000e+00> : vector<8x512xf32>
    %51 = tpu.matmul %43, %10, %cst_34 {dimension_numbers = #tpu.dot_dimension_numbers<[1], [0], [0], [1], [0, 0, 1, 1], [], []>} : vector<8x128xf32>, vector<128x512xf32>, vector<8x512xf32> -> vector<8x512xf32>
    %52 = arith.addf %50, %51 : vector<8x512xf32>
    %53 = vector.extract_strided_slice %52 {offsets = [0, 0], sizes = [8, 384], strides = [1, 1]} : vector<8x512xf32> to vector<8x384xf32>
    %54 = arith.negf %53 : vector<8x384xf32>
    %55 = math.exp %54 : vector<8x384xf32>
    %cst_35 = arith.constant 1.000000e+00 : f32
    %56 = vector.broadcast %cst_35 : f32 to vector<8x384xf32>
    %57 = arith.addf %56, %55 : vector<8x384xf32>
    %58 = arith.divf %56, %57 : vector<8x384xf32>
    %59 = vector.extract_strided_slice %58 {offsets = [0, 0], sizes = [8, 128], strides = [1, 1]} : vector<8x384xf32> to vector<8x128xf32>
    %60 = vector.extract_strided_slice %58 {offsets = [0, 128], sizes = [8, 128], strides = [1, 1]} : vector<8x384xf32> to vector<8x128xf32>
    %61 = vector.extract_strided_slice %58 {offsets = [0, 256], sizes = [8, 128], strides = [1, 1]} : vector<8x384xf32> to vector<8x128xf32>
    %62 = vector.extract_strided_slice %52 {offsets = [0, 384], sizes = [8, 128], strides = [1, 1]} : vector<8x512xf32> to vector<8x128xf32>
    %63 = math.tanh %62 : vector<8x128xf32>
    %64 = arith.mulf %60, %41 : vector<8x128xf32>
    %65 = arith.mulf %59, %63 : vector<8x128xf32>
    %66 = arith.addf %64, %65 : vector<8x128xf32>
    %67 = math.tanh %66 : vector<8x128xf32>
    %68 = arith.mulf %61, %67 : vector<8x128xf32>
    %69 = arith.index_cast %c1_i32 : i32 to index
    %c0_36 = arith.constant 0 : index
    %c0_37 = arith.constant 0 : index
    %70 = vector.load %arg9[%69, %c0_36, %c0_37] : memref<8x8x128xf32, #tpu.memory_space<vmem>>, vector<1x8x128xf32>
    %71 = vector.shape_cast %70 : vector<1x8x128xf32> to vector<8x128xf32>
    %72 = vector.shape_cast %68 : vector<8x128xf32> to vector<1x8x128xf32>
    tpu.vector_store %arg9[%69, %c0_36, %c0_37], %72 {strides = array<i32>} : memref<8x8x128xf32, #tpu.memory_space<vmem>>, vector<1x8x128xf32>,
    %c2_i32 = arith.constant 2 : i32
    %73 = arith.index_cast %c2_i32 : i32 to index
    %c0_38 = arith.constant 0 : index
    %c0_39 = arith.constant 0 : index
    %74 = vector.load %arg10[%73, %c0_38, %c0_39] : memref<8x8x512xf32, #tpu.memory_space<vmem>>, vector<1x8x512xf32>
    %75 = vector.shape_cast %74 : vector<1x8x512xf32> to vector<8x512xf32>
    %cst_40 = arith.constant dense<0.000000e+00> : vector<8x512xf32>
    %76 = tpu.matmul %68, %10, %cst_40 {dimension_numbers = #tpu.dot_dimension_numbers<[1], [0], [0], [1], [0, 0, 1, 1], [], []>} : vector<8x128xf32>, vector<128x512xf32>, vector<8x512xf32> -> vector<8x512xf32>
    %77 = arith.addf %75, %76 : vector<8x512xf32>
    %78 = vector.extract_strided_slice %77 {offsets = [0, 0], sizes = [8, 384], strides = [1, 1]} : vector<8x512xf32> to vector<8x384xf32>
    %79 = arith.negf %78 : vector<8x384xf32>
    %80 = math.exp %79 : vector<8x384xf32>
    %cst_41 = arith.constant 1.000000e+00 : f32
    %81 = vector.broadcast %cst_41 : f32 to vector<8x384xf32>
    %82 = arith.addf %81, %80 : vector<8x384xf32>
    %83 = arith.divf %81, %82 : vector<8x384xf32>
    %84 = vector.extract_strided_slice %83 {offsets = [0, 0], sizes = [8, 128], strides = [1, 1]} : vector<8x384xf32> to vector<8x128xf32>
    %85 = vector.extract_strided_slice %83 {offsets = [0, 128], sizes = [8, 128], strides = [1, 1]} : vector<8x384xf32> to vector<8x128xf32>
    %86 = vector.extract_strided_slice %83 {offsets = [0, 256], sizes = [8, 128], strides = [1, 1]} : vector<8x384xf32> to vector<8x128xf32>
    %87 = vector.extract_strided_slice %77 {offsets = [0, 384], sizes = [8, 128], strides = [1, 1]} : vector<8x512xf32> to vector<8x128xf32>
    %88 = math.tanh %87 : vector<8x128xf32>
    %89 = arith.mulf %85, %66 : vector<8x128xf32>
    %90 = arith.mulf %84, %88 : vector<8x128xf32>
    %91 = arith.addf %89, %90 : vector<8x128xf32>
    %92 = math.tanh %91 : vector<8x128xf32>
    %93 = arith.mulf %86, %92 : vector<8x128xf32>
    %94 = arith.index_cast %c2_i32 : i32 to index
    %c0_42 = arith.constant 0 : index
    %c0_43 = arith.constant 0 : index
    %95 = vector.load %arg9[%94, %c0_42, %c0_43] : memref<8x8x128xf32, #tpu.memory_space<vmem>>, vector<1x8x128xf32>
    %96 = vector.shape_cast %95 : vector<1x8x128xf32> to vector<8x128xf32>
    %97 = vector.shape_cast %93 : vector<8x128xf32> to vector<1x8x128xf32>
    tpu.vector_store %arg9[%94, %c0_42, %c0_43], %97 {strides = array<i32>} : memref<8x8x128xf32, #tpu.memory_space<vmem>>, vector<1x8x128xf32>,
    %c3_i32 = arith.constant 3 : i32
    %98 = arith.index_cast %c3_i32 : i32 to index
    %c0_44 = arith.constant 0 : index
    %c0_45 = arith.constant 0 : index
    %99 = vector.load %arg10[%98, %c0_44, %c0_45] : memref<8x8x512xf32, #tpu.memory_space<vmem>>, vector<1x8x512xf32>
    %100 = vector.shape_cast %99 : vector<1x8x512xf32> to vector<8x512xf32>
    %cst_46 = arith.constant dense<0.000000e+00> : vector<8x512xf32>
    %101 = tpu.matmul %93, %10, %cst_46 {dimension_numbers = #tpu.dot_dimension_numbers<[1], [0], [0], [1], [0, 0, 1, 1], [], []>} : vector<8x128xf32>, vector<128x512xf32>, vector<8x512xf32> -> vector<8x512xf32>
    %102 = arith.addf %100, %101 : vector<8x512xf32>
    %103 = vector.extract_strided_slice %102 {offsets = [0, 0], sizes = [8, 384], strides = [1, 1]} : vector<8x512xf32> to vector<8x384xf32>
    %104 = arith.negf %103 : vector<8x384xf32>
    %105 = math.exp %104 : vector<8x384xf32>
    %cst_47 = arith.constant 1.000000e+00 : f32
    %106 = vector.broadcast %cst_47 : f32 to vector<8x384xf32>
    %107 = arith.addf %106, %105 : vector<8x384xf32>
    %108 = arith.divf %106, %107 : vector<8x384xf32>
    %109 = vector.extract_strided_slice %108 {offsets = [0, 0], sizes = [8, 128], strides = [1, 1]} : vector<8x384xf32> to vector<8x128xf32>
    %110 = vector.extract_strided_slice %108 {offsets = [0, 128], sizes = [8, 128], strides = [1, 1]} : vector<8x384xf32> to vector<8x128xf32>
    %111 = vector.extract_strided_slice %108 {offsets = [0, 256], sizes = [8, 128], strides = [1, 1]} : vector<8x384xf32> to vector<8x128xf32>
    %112 = vector.extract_strided_slice %102 {offsets = [0, 384], sizes = [8, 128], strides = [1, 1]} : vector<8x512xf32> to vector<8x128xf32>
    %113 = math.tanh %112 : vector<8x128xf32>
    %114 = arith.mulf %110, %91 : vector<8x128xf32>
    %115 = arith.mulf %109, %113 : vector<8x128xf32>
    %116 = arith.addf %114, %115 : vector<8x128xf32>
    %117 = math.tanh %116 : vector<8x128xf32>
    %118 = arith.mulf %111, %117 : vector<8x128xf32>
    %119 = arith.index_cast %c3_i32 : i32 to index
    %c0_48 = arith.constant 0 : index
    %c0_49 = arith.constant 0 : index
    %120 = vector.load %arg9[%119, %c0_48, %c0_49] : memref<8x8x128xf32, #tpu.memory_space<vmem>>, vector<1x8x128xf32>
    %121 = vector.shape_cast %120 : vector<1x8x128xf32> to vector<8x128xf32>
    %122 = vector.shape_cast %118 : vector<8x128xf32> to vector<1x8x128xf32>
    tpu.vector_store %arg9[%119, %c0_48, %c0_49], %122 {strides = array<i32>} : memref<8x8x128xf32, #tpu.memory_space<vmem>>, vector<1x8x128xf32>,
    %c4_i32 = arith.constant 4 : i32
    %123 = arith.index_cast %c4_i32 : i32 to index
    %c0_50 = arith.constant 0 : index
    %c0_51 = arith.constant 0 : index
    %124 = vector.load %arg10[%123, %c0_50, %c0_51] : memref<8x8x512xf32, #tpu.memory_space<vmem>>, vector<1x8x512xf32>
    %125 = vector.shape_cast %124 : vector<1x8x512xf32> to vector<8x512xf32>
    %cst_52 = arith.constant dense<0.000000e+00> : vector<8x512xf32>
    %126 = tpu.matmul %118, %10, %cst_52 {dimension_numbers = #tpu.dot_dimension_numbers<[1], [0], [0], [1], [0, 0, 1, 1], [], []>} : vector<8x128xf32>, vector<128x512xf32>, vector<8x512xf32> -> vector<8x512xf32>
    %127 = arith.addf %125, %126 : vector<8x512xf32>
    %128 = vector.extract_strided_slice %127 {offsets = [0, 0], sizes = [8, 384], strides = [1, 1]} : vector<8x512xf32> to vector<8x384xf32>
    %129 = arith.negf %128 : vector<8x384xf32>
    %130 = math.exp %129 : vector<8x384xf32>
    %cst_53 = arith.constant 1.000000e+00 : f32
    %131 = vector.broadcast %cst_53 : f32 to vector<8x384xf32>
    %132 = arith.addf %131, %130 : vector<8x384xf32>
    %133 = arith.divf %131, %132 : vector<8x384xf32>
    %134 = vector.extract_strided_slice %133 {offsets = [0, 0], sizes = [8, 128], strides = [1, 1]} : vector<8x384xf32> to vector<8x128xf32>
    %135 = vector.extract_strided_slice %133 {offsets = [0, 128], sizes = [8, 128], strides = [1, 1]} : vector<8x384xf32> to vector<8x128xf32>
    %136 = vector.extract_strided_slice %133 {offsets = [0, 256], sizes = [8, 128], strides = [1, 1]} : vector<8x384xf32> to vector<8x128xf32>
    %137 = vector.extract_strided_slice %127 {offsets = [0, 384], sizes = [8, 128], strides = [1, 1]} : vector<8x512xf32> to vector<8x128xf32>
    %138 = math.tanh %137 : vector<8x128xf32>
    %139 = arith.mulf %135, %116 : vector<8x128xf32>
    %140 = arith.mulf %134, %138 : vector<8x128xf32>
    %141 = arith.addf %139, %140 : vector<8x128xf32>
    %142 = math.tanh %141 : vector<8x128xf32>
    %143 = arith.mulf %136, %142 : vector<8x128xf32>
    %144 = arith.index_cast %c4_i32 : i32 to index
    %c0_54 = arith.constant 0 : index
    %c0_55 = arith.constant 0 : index
    %145 = vector.load %arg9[%144, %c0_54, %c0_55] : memref<8x8x128xf32, #tpu.memory_space<vmem>>, vector<1x8x128xf32>
    %146 = vector.shape_cast %145 : vector<1x8x128xf32> to vector<8x128xf32>
    %147 = vector.shape_cast %143 : vector<8x128xf32> to vector<1x8x128xf32>
    tpu.vector_store %arg9[%144, %c0_54, %c0_55], %147 {strides = array<i32>} : memref<8x8x128xf32, #tpu.memory_space<vmem>>, vector<1x8x128xf32>,
    %c5_i32 = arith.constant 5 : i32
    %148 = arith.index_cast %c5_i32 : i32 to index
    %c0_56 = arith.constant 0 : index
    %c0_57 = arith.constant 0 : index
    %149 = vector.load %arg10[%148, %c0_56, %c0_57] : memref<8x8x512xf32, #tpu.memory_space<vmem>>, vector<1x8x512xf32>
    %150 = vector.shape_cast %149 : vector<1x8x512xf32> to vector<8x512xf32>
    %cst_58 = arith.constant dense<0.000000e+00> : vector<8x512xf32>
    %151 = tpu.matmul %143, %10, %cst_58 {dimension_numbers = #tpu.dot_dimension_numbers<[1], [0], [0], [1], [0, 0, 1, 1], [], []>} : vector<8x128xf32>, vector<128x512xf32>, vector<8x512xf32> -> vector<8x512xf32>
    %152 = arith.addf %150, %151 : vector<8x512xf32>
    %153 = vector.extract_strided_slice %152 {offsets = [0, 0], sizes = [8, 384], strides = [1, 1]} : vector<8x512xf32> to vector<8x384xf32>
    %154 = arith.negf %153 : vector<8x384xf32>
    %155 = math.exp %154 : vector<8x384xf32>
    %cst_59 = arith.constant 1.000000e+00 : f32
    %156 = vector.broadcast %cst_59 : f32 to vector<8x384xf32>
    %157 = arith.addf %156, %155 : vector<8x384xf32>
    %158 = arith.divf %156, %157 : vector<8x384xf32>
    %159 = vector.extract_strided_slice %158 {offsets = [0, 0], sizes = [8, 128], strides = [1, 1]} : vector<8x384xf32> to vector<8x128xf32>
    %160 = vector.extract_strided_slice %158 {offsets = [0, 128], sizes = [8, 128], strides = [1, 1]} : vector<8x384xf32> to vector<8x128xf32>
    %161 = vector.extract_strided_slice %158 {offsets = [0, 256], sizes = [8, 128], strides = [1, 1]} : vector<8x384xf32> to vector<8x128xf32>
    %162 = vector.extract_strided_slice %152 {offsets = [0, 384], sizes = [8, 128], strides = [1, 1]} : vector<8x512xf32> to vector<8x128xf32>
    %163 = math.tanh %162 : vector<8x128xf32>
    %164 = arith.mulf %160, %141 : vector<8x128xf32>
    %165 = arith.mulf %159, %163 : vector<8x128xf32>
    %166 = arith.addf %164, %165 : vector<8x128xf32>
    %167 = math.tanh %166 : vector<8x128xf32>
    %168 = arith.mulf %161, %167 : vector<8x128xf32>
    %169 = arith.index_cast %c5_i32 : i32 to index
    %c0_60 = arith.constant 0 : index
    %c0_61 = arith.constant 0 : index
    %170 = vector.load %arg9[%169, %c0_60, %c0_61] : memref<8x8x128xf32, #tpu.memory_space<vmem>>, vector<1x8x128xf32>
    %171 = vector.shape_cast %170 : vector<1x8x128xf32> to vector<8x128xf32>
    %172 = vector.shape_cast %168 : vector<8x128xf32> to vector<1x8x128xf32>
    tpu.vector_store %arg9[%169, %c0_60, %c0_61], %172 {strides = array<i32>} : memref<8x8x128xf32, #tpu.memory_space<vmem>>, vector<1x8x128xf32>,
    %c6_i32 = arith.constant 6 : i32
    %173 = arith.index_cast %c6_i32 : i32 to index
    %c0_62 = arith.constant 0 : index
    %c0_63 = arith.constant 0 : index
    %174 = vector.load %arg10[%173, %c0_62, %c0_63] : memref<8x8x512xf32, #tpu.memory_space<vmem>>, vector<1x8x512xf32>
    %175 = vector.shape_cast %174 : vector<1x8x512xf32> to vector<8x512xf32>
    %cst_64 = arith.constant dense<0.000000e+00> : vector<8x512xf32>
    %176 = tpu.matmul %168, %10, %cst_64 {dimension_numbers = #tpu.dot_dimension_numbers<[1], [0], [0], [1], [0, 0, 1, 1], [], []>} : vector<8x128xf32>, vector<128x512xf32>, vector<8x512xf32> -> vector<8x512xf32>
    %177 = arith.addf %175, %176 : vector<8x512xf32>
    %178 = vector.extract_strided_slice %177 {offsets = [0, 0], sizes = [8, 384], strides = [1, 1]} : vector<8x512xf32> to vector<8x384xf32>
    %179 = arith.negf %178 : vector<8x384xf32>
    %180 = math.exp %179 : vector<8x384xf32>
    %cst_65 = arith.constant 1.000000e+00 : f32
    %181 = vector.broadcast %cst_65 : f32 to vector<8x384xf32>
    %182 = arith.addf %181, %180 : vector<8x384xf32>
    %183 = arith.divf %181, %182 : vector<8x384xf32>
    %184 = vector.extract_strided_slice %183 {offsets = [0, 0], sizes = [8, 128], strides = [1, 1]} : vector<8x384xf32> to vector<8x128xf32>
    %185 = vector.extract_strided_slice %183 {offsets = [0, 128], sizes = [8, 128], strides = [1, 1]} : vector<8x384xf32> to vector<8x128xf32>
    %186 = vector.extract_strided_slice %183 {offsets = [0, 256], sizes = [8, 128], strides = [1, 1]} : vector<8x384xf32> to vector<8x128xf32>
    %187 = vector.extract_strided_slice %177 {offsets = [0, 384], sizes = [8, 128], strides = [1, 1]} : vector<8x512xf32> to vector<8x128xf32>
    %188 = math.tanh %187 : vector<8x128xf32>
    %189 = arith.mulf %185, %166 : vector<8x128xf32>
    %190 = arith.mulf %184, %188 : vector<8x128xf32>
    %191 = arith.addf %189, %190 : vector<8x128xf32>
    %192 = math.tanh %191 : vector<8x128xf32>
    %193 = arith.mulf %186, %192 : vector<8x128xf32>
    %194 = arith.index_cast %c6_i32 : i32 to index
    %c0_66 = arith.constant 0 : index
    %c0_67 = arith.constant 0 : index
    %195 = vector.load %arg9[%194, %c0_66, %c0_67] : memref<8x8x128xf32, #tpu.memory_space<vmem>>, vector<1x8x128xf32>
    %196 = vector.shape_cast %195 : vector<1x8x128xf32> to vector<8x128xf32>
    %197 = vector.shape_cast %193 : vector<8x128xf32> to vector<1x8x128xf32>
    tpu.vector_store %arg9[%194, %c0_66, %c0_67], %197 {strides = array<i32>} : memref<8x8x128xf32, #tpu.memory_space<vmem>>, vector<1x8x128xf32>,
    %c7_i32 = arith.constant 7 : i32
    %198 = arith.index_cast %c7_i32 : i32 to index
    %c0_68 = arith.constant 0 : index
    %c0_69 = arith.constant 0 : index
    %199 = vector.load %arg10[%198, %c0_68, %c0_69] : memref<8x8x512xf32, #tpu.memory_space<vmem>>, vector<1x8x512xf32>
    %200 = vector.shape_cast %199 : vector<1x8x512xf32> to vector<8x512xf32>
    %cst_70 = arith.constant dense<0.000000e+00> : vector<8x512xf32>
    %201 = tpu.matmul %193, %10, %cst_70 {dimension_numbers = #tpu.dot_dimension_numbers<[1], [0], [0], [1], [0, 0, 1, 1], [], []>} : vector<8x128xf32>, vector<128x512xf32>, vector<8x512xf32> -> vector<8x512xf32>
    %202 = arith.addf %200, %201 : vector<8x512xf32>
    %203 = vector.extract_strided_slice %202 {offsets = [0, 0], sizes = [8, 384], strides = [1, 1]} : vector<8x512xf32> to vector<8x384xf32>
    %204 = arith.negf %203 : vector<8x384xf32>
    %205 = math.exp %204 : vector<8x384xf32>
    %cst_71 = arith.constant 1.000000e+00 : f32
    %206 = vector.broadcast %cst_71 : f32 to vector<8x384xf32>
    %207 = arith.addf %206, %205 : vector<8x384xf32>
    %208 = arith.divf %206, %207 : vector<8x384xf32>
    %209 = vector.extract_strided_slice %208 {offsets = [0, 0], sizes = [8, 128], strides = [1, 1]} : vector<8x384xf32> to vector<8x128xf32>
    %210 = vector.extract_strided_slice %208 {offsets = [0, 128], sizes = [8, 128], strides = [1, 1]} : vector<8x384xf32> to vector<8x128xf32>
    %211 = vector.extract_strided_slice %208 {offsets = [0, 256], sizes = [8, 128], strides = [1, 1]} : vector<8x384xf32> to vector<8x128xf32>
    %212 = vector.extract_strided_slice %202 {offsets = [0, 384], sizes = [8, 128], strides = [1, 1]} : vector<8x512xf32> to vector<8x128xf32>
    %213 = math.tanh %212 : vector<8x128xf32>
    %214 = arith.mulf %210, %191 : vector<8x128xf32>
    %215 = arith.mulf %209, %213 : vector<8x128xf32>
    %216 = arith.addf %214, %215 : vector<8x128xf32>
    %217 = math.tanh %216 : vector<8x128xf32>
    %218 = arith.mulf %211, %217 : vector<8x128xf32>
    %219 = arith.index_cast %c7_i32 : i32 to index
    %c0_72 = arith.constant 0 : index
    %c0_73 = arith.constant 0 : index
    %220 = vector.load %arg9[%219, %c0_72, %c0_73] : memref<8x8x128xf32, #tpu.memory_space<vmem>>, vector<1x8x128xf32>
    %221 = vector.shape_cast %220 : vector<1x8x128xf32> to vector<8x128xf32>
    %222 = vector.shape_cast %218 : vector<8x128xf32> to vector<1x8x128xf32>
    tpu.vector_store %arg9[%219, %c0_72, %c0_73], %222 {strides = array<i32>} : memref<8x8x128xf32, #tpu.memory_space<vmem>>, vector<1x8x128xf32>,
    %c8_i32 = arith.constant 8 : i32
    %c1 = arith.constant 1 : index
    %c0_74 = arith.constant 0 : index
    %c0_75 = arith.constant 0 : index
    %223 = vector.load %arg4[%c1, %c0_74, %c0_75] : memref<2x128x512xf32, #tpu.memory_space<vmem>>, vector<1x128x512xf32>
    %224 = vector.shape_cast %223 : vector<1x128x512xf32> to vector<128x512xf32>
    %c0_76 = arith.constant 0 : index
    %c0_77 = arith.constant 0 : index
    %c0_78 = arith.constant 0 : index
    %225 = vector.load %arg9[%c0_76, %c0_77, %c0_78] : memref<8x8x128xf32, #tpu.memory_space<vmem>>, vector<8x8x128xf32>
    %226 = vector.shape_cast %225 : vector<8x8x128xf32> to vector<64x128xf32>
    %c1_79 = arith.constant 1 : index
    %c0_80 = arith.constant 0 : index
    %c0_81 = arith.constant 0 : index
    %227 = vector.load %arg3[%c1_79, %c0_80, %c0_81] : memref<2x128x512xf32, #tpu.memory_space<vmem>>, vector<1x128x512xf32>
    %228 = vector.shape_cast %227 : vector<1x128x512xf32> to vector<128x512xf32>
    %cst_82 = arith.constant dense<0.000000e+00> : vector<64x512xf32>
    %229 = tpu.matmul %226, %228, %cst_82 {dimension_numbers = #tpu.dot_dimension_numbers<[1], [0], [0], [1], [0, 0, 1, 1], [], []>} : vector<64x128xf32>, vector<128x512xf32>, vector<64x512xf32> -> vector<64x512xf32>
    %c1_83 = arith.constant 1 : index
    %c0_84 = arith.constant 0 : index
    %230 = vector.load %arg5[%c1_83, %c0_84] : memref<2x512xf32, #tpu.memory_space<vmem>>, vector<1x512xf32>
    %231 = vector.broadcast %230 : vector<1x512xf32> to vector<64x512xf32>
    %232 = arith.addf %229, %231 : vector<64x512xf32>
    %233 = vector.shape_cast %232 : vector<64x512xf32> to vector<8x8x512xf32>
    %c0_85 = arith.constant 0 : index
    %c0_86 = arith.constant 0 : index
    %c0_87 = arith.constant 0 : index
    %234 = vector.load %arg10[%c0_85, %c0_86, %c0_87] : memref<8x8x512xf32, #tpu.memory_space<vmem>>, vector<8x8x512xf32>
    tpu.vector_store %arg10[%c0_85, %c0_86, %c0_87], %233 {strides = array<i32>} : memref<8x8x512xf32, #tpu.memory_space<vmem>>, vector<8x8x512xf32>,
    %cst_88 = arith.constant 0.000000e+00 : f32
    %235 = vector.broadcast %cst_88 : f32 to vector<8x128xf32>
    %cst_89 = arith.constant 0.000000e+00 : f32
    %236 = vector.broadcast %cst_89 : f32 to vector<8x128xf32>
    %c0_i32_90 = arith.constant 0 : i32
    %237 = arith.index_cast %c0_i32_90 : i32 to index
    %c0_91 = arith.constant 0 : index
    %c0_92 = arith.constant 0 : index
    %238 = vector.load %arg10[%237, %c0_91, %c0_92] : memref<8x8x512xf32, #tpu.memory_space<vmem>>, vector<1x8x512xf32>
    %239 = vector.shape_cast %238 : vector<1x8x512xf32> to vector<8x512xf32>
    %cst_93 = arith.constant dense<0.000000e+00> : vector<8x512xf32>
    %240 = tpu.matmul %235, %224, %cst_93 {dimension_numbers = #tpu.dot_dimension_numbers<[1], [0], [0], [1], [0, 0, 1, 1], [], []>} : vector<8x128xf32>, vector<128x512xf32>, vector<8x512xf32> -> vector<8x512xf32>
    %241 = arith.addf %239, %240 : vector<8x512xf32>
    %242 = vector.extract_strided_slice %241 {offsets = [0, 0], sizes = [8, 384], strides = [1, 1]} : vector<8x512xf32> to vector<8x384xf32>
    %243 = arith.negf %242 : vector<8x384xf32>
    %244 = math.exp %243 : vector<8x384xf32>
    %cst_94 = arith.constant 1.000000e+00 : f32
    %245 = vector.broadcast %cst_94 : f32 to vector<8x384xf32>
    %246 = arith.addf %245, %244 : vector<8x384xf32>
    %247 = arith.divf %245, %246 : vector<8x384xf32>
    %248 = vector.extract_strided_slice %247 {offsets = [0, 0], sizes = [8, 128], strides = [1, 1]} : vector<8x384xf32> to vector<8x128xf32>
    %249 = vector.extract_strided_slice %247 {offsets = [0, 128], sizes = [8, 128], strides = [1, 1]} : vector<8x384xf32> to vector<8x128xf32>
    %250 = vector.extract_strided_slice %247 {offsets = [0, 256], sizes = [8, 128], strides = [1, 1]} : vector<8x384xf32> to vector<8x128xf32>
    %251 = vector.extract_strided_slice %241 {offsets = [0, 384], sizes = [8, 128], strides = [1, 1]} : vector<8x512xf32> to vector<8x128xf32>
    %252 = math.tanh %251 : vector<8x128xf32>
    %253 = arith.mulf %249, %236 : vector<8x128xf32>
    %254 = arith.mulf %248, %252 : vector<8x128xf32>
    %255 = arith.addf %253, %254 : vector<8x128xf32>
    %256 = math.tanh %255 : vector<8x128xf32>
    %257 = arith.mulf %250, %256 : vector<8x128xf32>
    %258 = arith.index_cast %c0_i32_90 : i32 to index
    %c0_95 = arith.constant 0 : index
    %c0_96 = arith.constant 0 : index
    %259 = vector.load %arg9[%258, %c0_95, %c0_96] : memref<8x8x128xf32, #tpu.memory_space<vmem>>, vector<1x8x128xf32>
    %260 = vector.shape_cast %259 : vector<1x8x128xf32> to vector<8x128xf32>
    %261 = vector.shape_cast %257 : vector<8x128xf32> to vector<1x8x128xf32>
    tpu.vector_store %arg9[%258, %c0_95, %c0_96], %261 {strides = array<i32>} : memref<8x8x128xf32, #tpu.memory_space<vmem>>, vector<1x8x128xf32>,
    %c1_i32_97 = arith.constant 1 : i32
    %262 = arith.index_cast %c1_i32_97 : i32 to index
    %c0_98 = arith.constant 0 : index
    %c0_99 = arith.constant 0 : index
    %263 = vector.load %arg10[%262, %c0_98, %c0_99] : memref<8x8x512xf32, #tpu.memory_space<vmem>>, vector<1x8x512xf32>
    %264 = vector.shape_cast %263 : vector<1x8x512xf32> to vector<8x512xf32>
    %cst_100 = arith.constant dense<0.000000e+00> : vector<8x512xf32>
    %265 = tpu.matmul %257, %224, %cst_100 {dimension_numbers = #tpu.dot_dimension_numbers<[1], [0], [0], [1], [0, 0, 1, 1], [], []>} : vector<8x128xf32>, vector<128x512xf32>, vector<8x512xf32> -> vector<8x512xf32>
    %266 = arith.addf %264, %265 : vector<8x512xf32>
    %267 = vector.extract_strided_slice %266 {offsets = [0, 0], sizes = [8, 384], strides = [1, 1]} : vector<8x512xf32> to vector<8x384xf32>
    %268 = arith.negf %267 : vector<8x384xf32>
    %269 = math.exp %268 : vector<8x384xf32>
    %cst_101 = arith.constant 1.000000e+00 : f32
    %270 = vector.broadcast %cst_101 : f32 to vector<8x384xf32>
    %271 = arith.addf %270, %269 : vector<8x384xf32>
    %272 = arith.divf %270, %271 : vector<8x384xf32>
    %273 = vector.extract_strided_slice %272 {offsets = [0, 0], sizes = [8, 128], strides = [1, 1]} : vector<8x384xf32> to vector<8x128xf32>
    %274 = vector.extract_strided_slice %272 {offsets = [0, 128], sizes = [8, 128], strides = [1, 1]} : vector<8x384xf32> to vector<8x128xf32>
    %275 = vector.extract_strided_slice %272 {offsets = [0, 256], sizes = [8, 128], strides = [1, 1]} : vector<8x384xf32> to vector<8x128xf32>
    %276 = vector.extract_strided_slice %266 {offsets = [0, 384], sizes = [8, 128], strides = [1, 1]} : vector<8x512xf32> to vector<8x128xf32>
    %277 = math.tanh %276 : vector<8x128xf32>
    %278 = arith.mulf %274, %255 : vector<8x128xf32>
    %279 = arith.mulf %273, %277 : vector<8x128xf32>
    %280 = arith.addf %278, %279 : vector<8x128xf32>
    %281 = math.tanh %280 : vector<8x128xf32>
    %282 = arith.mulf %275, %281 : vector<8x128xf32>
    %283 = arith.index_cast %c1_i32_97 : i32 to index
    %c0_102 = arith.constant 0 : index
    %c0_103 = arith.constant 0 : index
    %284 = vector.load %arg9[%283, %c0_102, %c0_103] : memref<8x8x128xf32, #tpu.memory_space<vmem>>, vector<1x8x128xf32>
    %285 = vector.shape_cast %284 : vector<1x8x128xf32> to vector<8x128xf32>
    %286 = vector.shape_cast %282 : vector<8x128xf32> to vector<1x8x128xf32>
    tpu.vector_store %arg9[%283, %c0_102, %c0_103], %286 {strides = array<i32>} : memref<8x8x128xf32, #tpu.memory_space<vmem>>, vector<1x8x128xf32>,
    %c2_i32_104 = arith.constant 2 : i32
    %287 = arith.index_cast %c2_i32_104 : i32 to index
    %c0_105 = arith.constant 0 : index
    %c0_106 = arith.constant 0 : index
    %288 = vector.load %arg10[%287, %c0_105, %c0_106] : memref<8x8x512xf32, #tpu.memory_space<vmem>>, vector<1x8x512xf32>
    %289 = vector.shape_cast %288 : vector<1x8x512xf32> to vector<8x512xf32>
    %cst_107 = arith.constant dense<0.000000e+00> : vector<8x512xf32>
    %290 = tpu.matmul %282, %224, %cst_107 {dimension_numbers = #tpu.dot_dimension_numbers<[1], [0], [0], [1], [0, 0, 1, 1], [], []>} : vector<8x128xf32>, vector<128x512xf32>, vector<8x512xf32> -> vector<8x512xf32>
    %291 = arith.addf %289, %290 : vector<8x512xf32>
    %292 = vector.extract_strided_slice %291 {offsets = [0, 0], sizes = [8, 384], strides = [1, 1]} : vector<8x512xf32> to vector<8x384xf32>
    %293 = arith.negf %292 : vector<8x384xf32>
    %294 = math.exp %293 : vector<8x384xf32>
    %cst_108 = arith.constant 1.000000e+00 : f32
    %295 = vector.broadcast %cst_108 : f32 to vector<8x384xf32>
    %296 = arith.addf %295, %294 : vector<8x384xf32>
    %297 = arith.divf %295, %296 : vector<8x384xf32>
    %298 = vector.extract_strided_slice %297 {offsets = [0, 0], sizes = [8, 128], strides = [1, 1]} : vector<8x384xf32> to vector<8x128xf32>
    %299 = vector.extract_strided_slice %297 {offsets = [0, 128], sizes = [8, 128], strides = [1, 1]} : vector<8x384xf32> to vector<8x128xf32>
    %300 = vector.extract_strided_slice %297 {offsets = [0, 256], sizes = [8, 128], strides = [1, 1]} : vector<8x384xf32> to vector<8x128xf32>
    %301 = vector.extract_strided_slice %291 {offsets = [0, 384], sizes = [8, 128], strides = [1, 1]} : vector<8x512xf32> to vector<8x128xf32>
    %302 = math.tanh %301 : vector<8x128xf32>
    %303 = arith.mulf %299, %280 : vector<8x128xf32>
    %304 = arith.mulf %298, %302 : vector<8x128xf32>
    %305 = arith.addf %303, %304 : vector<8x128xf32>
    %306 = math.tanh %305 : vector<8x128xf32>
    %307 = arith.mulf %300, %306 : vector<8x128xf32>
    %308 = arith.index_cast %c2_i32_104 : i32 to index
    %c0_109 = arith.constant 0 : index
    %c0_110 = arith.constant 0 : index
    %309 = vector.load %arg9[%308, %c0_109, %c0_110] : memref<8x8x128xf32, #tpu.memory_space<vmem>>, vector<1x8x128xf32>
    %310 = vector.shape_cast %309 : vector<1x8x128xf32> to vector<8x128xf32>
    %311 = vector.shape_cast %307 : vector<8x128xf32> to vector<1x8x128xf32>
    tpu.vector_store %arg9[%308, %c0_109, %c0_110], %311 {strides = array<i32>} : memref<8x8x128xf32, #tpu.memory_space<vmem>>, vector<1x8x128xf32>,
    %c3_i32_111 = arith.constant 3 : i32
    %312 = arith.index_cast %c3_i32_111 : i32 to index
    %c0_112 = arith.constant 0 : index
    %c0_113 = arith.constant 0 : index
    %313 = vector.load %arg10[%312, %c0_112, %c0_113] : memref<8x8x512xf32, #tpu.memory_space<vmem>>, vector<1x8x512xf32>
    %314 = vector.shape_cast %313 : vector<1x8x512xf32> to vector<8x512xf32>
    %cst_114 = arith.constant dense<0.000000e+00> : vector<8x512xf32>
    %315 = tpu.matmul %307, %224, %cst_114 {dimension_numbers = #tpu.dot_dimension_numbers<[1], [0], [0], [1], [0, 0, 1, 1], [], []>} : vector<8x128xf32>, vector<128x512xf32>, vector<8x512xf32> -> vector<8x512xf32>
    %316 = arith.addf %314, %315 : vector<8x512xf32>
    %317 = vector.extract_strided_slice %316 {offsets = [0, 0], sizes = [8, 384], strides = [1, 1]} : vector<8x512xf32> to vector<8x384xf32>
    %318 = arith.negf %317 : vector<8x384xf32>
    %319 = math.exp %318 : vector<8x384xf32>
    %cst_115 = arith.constant 1.000000e+00 : f32
    %320 = vector.broadcast %cst_115 : f32 to vector<8x384xf32>
    %321 = arith.addf %320, %319 : vector<8x384xf32>
    %322 = arith.divf %320, %321 : vector<8x384xf32>
    %323 = vector.extract_strided_slice %322 {offsets = [0, 0], sizes = [8, 128], strides = [1, 1]} : vector<8x384xf32> to vector<8x128xf32>
    %324 = vector.extract_strided_slice %322 {offsets = [0, 128], sizes = [8, 128], strides = [1, 1]} : vector<8x384xf32> to vector<8x128xf32>
    %325 = vector.extract_strided_slice %322 {offsets = [0, 256], sizes = [8, 128], strides = [1, 1]} : vector<8x384xf32> to vector<8x128xf32>
    %326 = vector.extract_strided_slice %316 {offsets = [0, 384], sizes = [8, 128], strides = [1, 1]} : vector<8x512xf32> to vector<8x128xf32>
    %327 = math.tanh %326 : vector<8x128xf32>
    %328 = arith.mulf %324, %305 : vector<8x128xf32>
    %329 = arith.mulf %323, %327 : vector<8x128xf32>
    %330 = arith.addf %328, %329 : vector<8x128xf32>
    %331 = math.tanh %330 : vector<8x128xf32>
    %332 = arith.mulf %325, %331 : vector<8x128xf32>
    %333 = arith.index_cast %c3_i32_111 : i32 to index
    %c0_116 = arith.constant 0 : index
    %c0_117 = arith.constant 0 : index
    %334 = vector.load %arg9[%333, %c0_116, %c0_117] : memref<8x8x128xf32, #tpu.memory_space<vmem>>, vector<1x8x128xf32>
    %335 = vector.shape_cast %334 : vector<1x8x128xf32> to vector<8x128xf32>
    %336 = vector.shape_cast %332 : vector<8x128xf32> to vector<1x8x128xf32>
    tpu.vector_store %arg9[%333, %c0_116, %c0_117], %336 {strides = array<i32>} : memref<8x8x128xf32, #tpu.memory_space<vmem>>, vector<1x8x128xf32>,
    %c4_i32_118 = arith.constant 4 : i32
    %337 = arith.index_cast %c4_i32_118 : i32 to index
    %c0_119 = arith.constant 0 : index
    %c0_120 = arith.constant 0 : index
    %338 = vector.load %arg10[%337, %c0_119, %c0_120] : memref<8x8x512xf32, #tpu.memory_space<vmem>>, vector<1x8x512xf32>
    %339 = vector.shape_cast %338 : vector<1x8x512xf32> to vector<8x512xf32>
    %cst_121 = arith.constant dense<0.000000e+00> : vector<8x512xf32>
    %340 = tpu.matmul %332, %224, %cst_121 {dimension_numbers = #tpu.dot_dimension_numbers<[1], [0], [0], [1], [0, 0, 1, 1], [], []>} : vector<8x128xf32>, vector<128x512xf32>, vector<8x512xf32> -> vector<8x512xf32>
    %341 = arith.addf %339, %340 : vector<8x512xf32>
    %342 = vector.extract_strided_slice %341 {offsets = [0, 0], sizes = [8, 384], strides = [1, 1]} : vector<8x512xf32> to vector<8x384xf32>
    %343 = arith.negf %342 : vector<8x384xf32>
    %344 = math.exp %343 : vector<8x384xf32>
    %cst_122 = arith.constant 1.000000e+00 : f32
    %345 = vector.broadcast %cst_122 : f32 to vector<8x384xf32>
    %346 = arith.addf %345, %344 : vector<8x384xf32>
    %347 = arith.divf %345, %346 : vector<8x384xf32>
    %348 = vector.extract_strided_slice %347 {offsets = [0, 0], sizes = [8, 128], strides = [1, 1]} : vector<8x384xf32> to vector<8x128xf32>
    %349 = vector.extract_strided_slice %347 {offsets = [0, 128], sizes = [8, 128], strides = [1, 1]} : vector<8x384xf32> to vector<8x128xf32>
    %350 = vector.extract_strided_slice %347 {offsets = [0, 256], sizes = [8, 128], strides = [1, 1]} : vector<8x384xf32> to vector<8x128xf32>
    %351 = vector.extract_strided_slice %341 {offsets = [0, 384], sizes = [8, 128], strides = [1, 1]} : vector<8x512xf32> to vector<8x128xf32>
    %352 = math.tanh %351 : vector<8x128xf32>
    %353 = arith.mulf %349, %330 : vector<8x128xf32>
    %354 = arith.mulf %348, %352 : vector<8x128xf32>
    %355 = arith.addf %353, %354 : vector<8x128xf32>
    %356 = math.tanh %355 : vector<8x128xf32>
    %357 = arith.mulf %350, %356 : vector<8x128xf32>
    %358 = arith.index_cast %c4_i32_118 : i32 to index
    %c0_123 = arith.constant 0 : index
    %c0_124 = arith.constant 0 : index
    %359 = vector.load %arg9[%358, %c0_123, %c0_124] : memref<8x8x128xf32, #tpu.memory_space<vmem>>, vector<1x8x128xf32>
    %360 = vector.shape_cast %359 : vector<1x8x128xf32> to vector<8x128xf32>
    %361 = vector.shape_cast %357 : vector<8x128xf32> to vector<1x8x128xf32>
    tpu.vector_store %arg9[%358, %c0_123, %c0_124], %361 {strides = array<i32>} : memref<8x8x128xf32, #tpu.memory_space<vmem>>, vector<1x8x128xf32>,
    %c5_i32_125 = arith.constant 5 : i32
    %362 = arith.index_cast %c5_i32_125 : i32 to index
    %c0_126 = arith.constant 0 : index
    %c0_127 = arith.constant 0 : index
    %363 = vector.load %arg10[%362, %c0_126, %c0_127] : memref<8x8x512xf32, #tpu.memory_space<vmem>>, vector<1x8x512xf32>
    %364 = vector.shape_cast %363 : vector<1x8x512xf32> to vector<8x512xf32>
    %cst_128 = arith.constant dense<0.000000e+00> : vector<8x512xf32>
    %365 = tpu.matmul %357, %224, %cst_128 {dimension_numbers = #tpu.dot_dimension_numbers<[1], [0], [0], [1], [0, 0, 1, 1], [], []>} : vector<8x128xf32>, vector<128x512xf32>, vector<8x512xf32> -> vector<8x512xf32>
    %366 = arith.addf %364, %365 : vector<8x512xf32>
    %367 = vector.extract_strided_slice %366 {offsets = [0, 0], sizes = [8, 384], strides = [1, 1]} : vector<8x512xf32> to vector<8x384xf32>
    %368 = arith.negf %367 : vector<8x384xf32>
    %369 = math.exp %368 : vector<8x384xf32>
    %cst_129 = arith.constant 1.000000e+00 : f32
    %370 = vector.broadcast %cst_129 : f32 to vector<8x384xf32>
    %371 = arith.addf %370, %369 : vector<8x384xf32>
    %372 = arith.divf %370, %371 : vector<8x384xf32>
    %373 = vector.extract_strided_slice %372 {offsets = [0, 0], sizes = [8, 128], strides = [1, 1]} : vector<8x384xf32> to vector<8x128xf32>
    %374 = vector.extract_strided_slice %372 {offsets = [0, 128], sizes = [8, 128], strides = [1, 1]} : vector<8x384xf32> to vector<8x128xf32>
    %375 = vector.extract_strided_slice %372 {offsets = [0, 256], sizes = [8, 128], strides = [1, 1]} : vector<8x384xf32> to vector<8x128xf32>
    %376 = vector.extract_strided_slice %366 {offsets = [0, 384], sizes = [8, 128], strides = [1, 1]} : vector<8x512xf32> to vector<8x128xf32>
    %377 = math.tanh %376 : vector<8x128xf32>
    %378 = arith.mulf %374, %355 : vector<8x128xf32>
    %379 = arith.mulf %373, %377 : vector<8x128xf32>
    %380 = arith.addf %378, %379 : vector<8x128xf32>
    %381 = math.tanh %380 : vector<8x128xf32>
    %382 = arith.mulf %375, %381 : vector<8x128xf32>
    %383 = arith.index_cast %c5_i32_125 : i32 to index
    %c0_130 = arith.constant 0 : index
    %c0_131 = arith.constant 0 : index
    %384 = vector.load %arg9[%383, %c0_130, %c0_131] : memref<8x8x128xf32, #tpu.memory_space<vmem>>, vector<1x8x128xf32>
    %385 = vector.shape_cast %384 : vector<1x8x128xf32> to vector<8x128xf32>
    %386 = vector.shape_cast %382 : vector<8x128xf32> to vector<1x8x128xf32>
    tpu.vector_store %arg9[%383, %c0_130, %c0_131], %386 {strides = array<i32>} : memref<8x8x128xf32, #tpu.memory_space<vmem>>, vector<1x8x128xf32>,
    %c6_i32_132 = arith.constant 6 : i32
    %387 = arith.index_cast %c6_i32_132 : i32 to index
    %c0_133 = arith.constant 0 : index
    %c0_134 = arith.constant 0 : index
    %388 = vector.load %arg10[%387, %c0_133, %c0_134] : memref<8x8x512xf32, #tpu.memory_space<vmem>>, vector<1x8x512xf32>
    %389 = vector.shape_cast %388 : vector<1x8x512xf32> to vector<8x512xf32>
    %cst_135 = arith.constant dense<0.000000e+00> : vector<8x512xf32>
    %390 = tpu.matmul %382, %224, %cst_135 {dimension_numbers = #tpu.dot_dimension_numbers<[1], [0], [0], [1], [0, 0, 1, 1], [], []>} : vector<8x128xf32>, vector<128x512xf32>, vector<8x512xf32> -> vector<8x512xf32>
    %391 = arith.addf %389, %390 : vector<8x512xf32>
    %392 = vector.extract_strided_slice %391 {offsets = [0, 0], sizes = [8, 384], strides = [1, 1]} : vector<8x512xf32> to vector<8x384xf32>
    %393 = arith.negf %392 : vector<8x384xf32>
    %394 = math.exp %393 : vector<8x384xf32>
    %cst_136 = arith.constant 1.000000e+00 : f32
    %395 = vector.broadcast %cst_136 : f32 to vector<8x384xf32>
    %396 = arith.addf %395, %394 : vector<8x384xf32>
    %397 = arith.divf %395, %396 : vector<8x384xf32>
    %398 = vector.extract_strided_slice %397 {offsets = [0, 0], sizes = [8, 128], strides = [1, 1]} : vector<8x384xf32> to vector<8x128xf32>
    %399 = vector.extract_strided_slice %397 {offsets = [0, 128], sizes = [8, 128], strides = [1, 1]} : vector<8x384xf32> to vector<8x128xf32>
    %400 = vector.extract_strided_slice %397 {offsets = [0, 256], sizes = [8, 128], strides = [1, 1]} : vector<8x384xf32> to vector<8x128xf32>
    %401 = vector.extract_strided_slice %391 {offsets = [0, 384], sizes = [8, 128], strides = [1, 1]} : vector<8x512xf32> to vector<8x128xf32>
    %402 = math.tanh %401 : vector<8x128xf32>
    %403 = arith.mulf %399, %380 : vector<8x128xf32>
    %404 = arith.mulf %398, %402 : vector<8x128xf32>
    %405 = arith.addf %403, %404 : vector<8x128xf32>
    %406 = math.tanh %405 : vector<8x128xf32>
    %407 = arith.mulf %400, %406 : vector<8x128xf32>
    %408 = arith.index_cast %c6_i32_132 : i32 to index
    %c0_137 = arith.constant 0 : index
    %c0_138 = arith.constant 0 : index
    %409 = vector.load %arg9[%408, %c0_137, %c0_138] : memref<8x8x128xf32, #tpu.memory_space<vmem>>, vector<1x8x128xf32>
    %410 = vector.shape_cast %409 : vector<1x8x128xf32> to vector<8x128xf32>
    %411 = vector.shape_cast %407 : vector<8x128xf32> to vector<1x8x128xf32>
    tpu.vector_store %arg9[%408, %c0_137, %c0_138], %411 {strides = array<i32>} : memref<8x8x128xf32, #tpu.memory_space<vmem>>, vector<1x8x128xf32>,
    %c7_i32_139 = arith.constant 7 : i32
    %412 = arith.index_cast %c7_i32_139 : i32 to index
    %c0_140 = arith.constant 0 : index
    %c0_141 = arith.constant 0 : index
    %413 = vector.load %arg10[%412, %c0_140, %c0_141] : memref<8x8x512xf32, #tpu.memory_space<vmem>>, vector<1x8x512xf32>
    %414 = vector.shape_cast %413 : vector<1x8x512xf32> to vector<8x512xf32>
    %cst_142 = arith.constant dense<0.000000e+00> : vector<8x512xf32>
    %415 = tpu.matmul %407, %224, %cst_142 {dimension_numbers = #tpu.dot_dimension_numbers<[1], [0], [0], [1], [0, 0, 1, 1], [], []>} : vector<8x128xf32>, vector<128x512xf32>, vector<8x512xf32> -> vector<8x512xf32>
    %416 = arith.addf %414, %415 : vector<8x512xf32>
    %417 = vector.extract_strided_slice %416 {offsets = [0, 0], sizes = [8, 384], strides = [1, 1]} : vector<8x512xf32> to vector<8x384xf32>
    %418 = arith.negf %417 : vector<8x384xf32>
    %419 = math.exp %418 : vector<8x384xf32>
    %cst_143 = arith.constant 1.000000e+00 : f32
    %420 = vector.broadcast %cst_143 : f32 to vector<8x384xf32>
    %421 = arith.addf %420, %419 : vector<8x384xf32>
    %422 = arith.divf %420, %421 : vector<8x384xf32>
    %423 = vector.extract_strided_slice %422 {offsets = [0, 0], sizes = [8, 128], strides = [1, 1]} : vector<8x384xf32> to vector<8x128xf32>
    %424 = vector.extract_strided_slice %422 {offsets = [0, 128], sizes = [8, 128], strides = [1, 1]} : vector<8x384xf32> to vector<8x128xf32>
    %425 = vector.extract_strided_slice %422 {offsets = [0, 256], sizes = [8, 128], strides = [1, 1]} : vector<8x384xf32> to vector<8x128xf32>
    %426 = vector.extract_strided_slice %416 {offsets = [0, 384], sizes = [8, 128], strides = [1, 1]} : vector<8x512xf32> to vector<8x128xf32>
    %427 = math.tanh %426 : vector<8x128xf32>
    %428 = arith.mulf %424, %405 : vector<8x128xf32>
    %429 = arith.mulf %423, %427 : vector<8x128xf32>
    %430 = arith.addf %428, %429 : vector<8x128xf32>
    %431 = math.tanh %430 : vector<8x128xf32>
    %432 = arith.mulf %425, %431 : vector<8x128xf32>
    %433 = arith.index_cast %c7_i32_139 : i32 to index
    %c0_144 = arith.constant 0 : index
    %c0_145 = arith.constant 0 : index
    %434 = vector.load %arg9[%433, %c0_144, %c0_145] : memref<8x8x128xf32, #tpu.memory_space<vmem>>, vector<1x8x128xf32>
    %435 = vector.shape_cast %434 : vector<1x8x128xf32> to vector<8x128xf32>
    %436 = vector.shape_cast %432 : vector<8x128xf32> to vector<1x8x128xf32>
    tpu.vector_store %arg9[%433, %c0_144, %c0_145], %436 {strides = array<i32>} : memref<8x8x128xf32, #tpu.memory_space<vmem>>, vector<1x8x128xf32>,
    %c8_i32_146 = arith.constant 8 : i32
    %c0_147 = arith.constant 0 : index
    %c0_148 = arith.constant 0 : index
    %c0_149 = arith.constant 0 : index
    %437 = vector.load %arg9[%c0_147, %c0_148, %c0_149] : memref<8x8x128xf32, #tpu.memory_space<vmem>>, vector<8x8x128xf32>
    %438 = vector.shape_cast %437 : vector<8x8x128xf32> to vector<64x128xf32>
    %c0_150 = arith.constant 0 : index
    %c0_151 = arith.constant 0 : index
    %439 = vector.load %arg6[%c0_150, %c0_151] : memref<128x64xf32, #tpu.memory_space<vmem>>, vector<128x64xf32>
    %cst_152 = arith.constant dense<0.000000e+00> : vector<64x64xf32>
    %440 = tpu.matmul %438, %439, %cst_152 {dimension_numbers = #tpu.dot_dimension_numbers<[1], [0], [0], [1], [0, 0, 1, 1], [], []>} : vector<64x128xf32>, vector<128x64xf32>, vector<64x64xf32> -> vector<64x64xf32>
    %c0_153 = arith.constant 0 : index
    %c0_154 = arith.constant 0 : index
    %441 = vector.load %arg7[%c0_153, %c0_154] : memref<1x64xf32, #tpu.memory_space<vmem>>, vector<1x64xf32>
    %442 = vector.broadcast %441 : vector<1x64xf32> to vector<64x64xf32>
    %443 = arith.addf %440, %442 : vector<64x64xf32>
    %444 = vector.shape_cast %443 : vector<64x64xf32> to vector<8x8x64xf32>
    %c0_155 = arith.constant 0 : index
    %c0_156 = arith.constant 0 : index
    %c0_157 = arith.constant 0 : index
    %445 = vector.load %arg8[%c0_155, %c0_156, %c0_157] : memref<8x8x64xf32, #tpu.memory_space<vmem>>, vector<8x8x64xf32>
    tpu.vector_store %arg8[%c0_155, %c0_156, %c0_157], %444 {strides = array<i32>} : memref<8x8x64xf32, #tpu.memory_space<vmem>>, vector<8x8x64xf32>,
    return
  }
}

</mosaic_0001>

<bundles_post_ra>
// kernel: tpu_custom_call.1
= control target key start
LH: loop header
LB: loop body
LE: loop exit
PB: predicated region body
PF: predicated region fallthrough
CT: control target
= control target key end

     0   :  { %13 = vsyncpa [#allocation5], 0  ;;  %s7262_s0 = inlined_call_operand.hbm [shape: f32[8,8,64], index: 0, kind: input, shape index: {}]   ;;  %s7263_s1 = inlined_call_operand.hbm [shape: f32[64,128], index: 1, kind: input, shape index: {}]   ;;  %s7264_s2 = inlined_call_operand.hbm [shape: f32[1,128], index: 2, kind: input, shape index: {}]   ;;  %s7265_s3 = inlined_call_operand.hbm [shape: f32[2,128,512], index: 3, kind: input, shape index: {}]   ;;  %s7266_s4 = inlined_call_operand.hbm [shape: f32[2,128,512], index: 4, kind: input, shape index: {}]   ;;  %s7267_s5 = inlined_call_operand.hbm [shape: f32[2,512], index: 5, kind: input, shape index: {}]   ;;  %s7268_s6 = inlined_call_operand.hbm [shape: f32[128,64], index: 6, kind: input, shape index: {}]   ;;  %s7269_s7 = inlined_call_operand.hbm [shape: f32[1,64], index: 7, kind: input, shape index: {}]   ;;  %s7270_s8 = inlined_call_operand.hbm [shape: f32[8,8,64], index: 8, kind: output, shape index: {}]  }
   0x1   :  { %14 = vsyncpa [#allocation8], 0 }
   0x2   :  { %15 = vsyncpa [#allocation11], 0 }
   0x3   :  { %16 = vsyncpa [#allocation14], 0 }
   0x4   :  { %17 = vsyncpa [#allocation17], 0 }
   0x5   :  { %18 = vsyncpa [#allocation6], 0  ;;  %s6086_s27 = smov [#allocation7]   ;;  %s6087_s29 = smov [#allocation10]  }
   0x6   :  { %s36_s28 = sshll.u32 %s6086_s27, 4  ;;  %s58_s30 = sshll.u32 %s6087_s29, 4  ;;  %s37_s28 = int_to_ptr.vmem [resolvable:$true] %s36_s28  ;;  %s6145_s30 = int_to_ptr.vmem [resolvable:$true] %s58_s30 }
   0x7   :  { %s5876_s11 = scalar_lea.hbm %s7263_s1, 1024 }
   0x8   :  { %p5877_p0 = scmp.ne.s32.totalorder %s7263_s1, %s5876_s11  ;;  %p5880_p1 = scmp.lt.u32.totalorder %s5876_s11, %s7263_s1 }
   0xa   :  { %p5882_p2 = pnand %p5880_p1, %p5877_p0 }
   0xc   :  { %5885 = shalt.err (!%p5882_p2)
}
   0xd   :  { %s5886_s16 = scalar_lea.vmem %s37_s28, 1024  ;;  %p5891_p4 = scmp.lt.s32.totalorder %s37_s28, %s37_s28 }
   0xe   :  { %p5887_p3 = scmp.ne.s32.totalorder %s37_s28, %s5886_s16  ;;  %p5892_p5 = scmp.lt.s32.totalorder %s5886_s16, %s5886_s16 }
  0x10   :  { %p5893_p6 = por %p5892_p5, %p5891_p4 }
  0x12   :  { %p5894_p7 = pnand %p5893_p6, %p5887_p3 }
  0x14   :  { %5897 = shalt.err (!%p5894_p7)
}
  0x15   :  { %s6088_s17 = smov 128   ;;  %s6089_s18 = smov 8  }
  0x16   :  { %42 = dma.hbm_to_vmem [thread:$0]  %s7263_s1, 1024, %s37_s28, [#allocation8], %s6088_s17, %s6088_s17, %s6089_s18  }
  0x17   :  { %s5898_s23 = scalar_lea.hbm %s7265_s3, 16384 }
  0x18   :  { %p5899_p8 = scmp.ne.s32.totalorder %s7265_s3, %s5898_s23  ;;  %p5902_p9 = scmp.lt.u32.totalorder %s5898_s23, %s7265_s3 }
  0x1a   :  { %p5904_p10 = pnand %p5902_p9, %p5899_p8 }
  0x1c   :  { %5907 = shalt.err (!%p5904_p10)
}
  0x1d   :  { %s5908_s29 = scalar_lea.vmem %s6145_s30, 16384  ;;  %p5913_p12 = scmp.lt.s32.totalorder %s6145_s30, %s6145_s30 }
  0x1e   :  { %p5909_p11 = scmp.ne.s32.totalorder %s6145_s30, %s5908_s29  ;;  %p5914_p13 = scmp.lt.s32.totalorder %s5908_s29, %s5908_s29 }
  0x20   :  { %p5915_p0 = por %p5914_p13, %p5913_p12 }
  0x22   :  { %p5916_p1 = pnand %p5915_p0, %p5909_p11 }
  0x24   :  { %5919 = shalt.err (!%p5916_p1)
}
  0x25   :  { %s6090_s1 = smov 512   ;;  %s6091_s28 = smov 32  }
  0x26   :  { %64 = dma.hbm_to_vmem [thread:$0]  %s7265_s3, 16384, %s6145_s30, [#allocation11], %s6090_s1, %s6090_s1, %s6091_s28  }
  0x27   :  { %s6092_s11 = smov [#allocation13]   ;;  %s6093_s13 = smov [#allocation4]  }
  0x28   :  { %s83_s12 = sshll.u32 %s6092_s11, 4  ;;  %s24_s14 = sshll.u32 %s6093_s13, 4  ;;  %s84_s12 = int_to_ptr.vmem [resolvable:$true] %s83_s12  ;;  %s6182_s14 = int_to_ptr.vmem [resolvable:$true] %s24_s14 }
  0x29   :  { %s5920_s19 = scalar_lea.hbm %s7267_s5, 128 }
  0x2a   :  { %p5921_p2 = scmp.ne.s32.totalorder %s7267_s5, %s5920_s19  ;;  %p5924_p3 = scmp.lt.u32.totalorder %s5920_s19, %s7267_s5 }
  0x2c   :  { %p5926_p4 = pnand %p5924_p3, %p5921_p2 }
  0x2e   :  { %5929 = shalt.err (!%p5926_p4)
}
  0x2f   :  { %s5930_s3 = scalar_lea.vmem %s84_s12, 128  ;;  %p5935_p6 = scmp.lt.s32.totalorder %s84_s12, %s84_s12 }
  0x30   :  { %p5931_p5 = scmp.ne.s32.totalorder %s84_s12, %s5930_s3  ;;  %p5936_p7 = scmp.lt.s32.totalorder %s5930_s3, %s5930_s3 }
  0x32   :  { %p5937_p8 = por %p5936_p7, %p5935_p6 }
  0x34   :  { %p5938_p9 = pnand %p5937_p8, %p5931_p5 }
  0x36   :  { %5941 = shalt.err (!%p5938_p9)
}
  0x37   :  { %86 = dma.hbm_to_vmem [thread:$0]  %s7267_s5, 128, %s84_s12, [#allocation14]  }
  0x38   :  { %s5942_s27 = scalar_lea.hbm %s7262_s0, 1024 }
  0x39   :  { %p5943_p10 = scmp.ne.s32.totalorder %s7262_s0, %s5942_s27  ;;  %p5946_p11 = scmp.lt.u32.totalorder %s5942_s27, %s7262_s0 }
  0x3b   :  { %p5948_p12 = pnand %p5946_p11, %p5943_p10 }
  0x3d   :  { %5951 = shalt.err (!%p5948_p12)
}
  0x3e   :  { %s5952_s13 = scalar_lea.vmem %s6182_s14, 1024  ;;  %p5957_p0 = scmp.lt.s32.totalorder %s6182_s14, %s6182_s14 }
  0x3f   :  { %p5953_p13 = scmp.ne.s32.totalorder %s6182_s14, %s5952_s13  ;;  %p5958_p1 = scmp.lt.s32.totalorder %s5952_s13, %s5952_s13 }
  0x41   :  { %p5959_p2 = por %p5958_p1, %p5957_p0 }
  0x43   :  { %p5960_p3 = pnand %p5959_p2, %p5953_p13 }
  0x45   :  { %5963 = shalt.err (!%p5960_p3)
}
  0x46   :  { %30 = dma.hbm_to_vmem [thread:$0]  %s7262_s0, 1024, %s6182_s14, [#allocation5], %s6088_s17, %s6088_s17, %s6089_s18  }
  0x47   :  { %s6094_s15 = smov [#allocation9]   ;;  %s6095_s19 = smov [#allocation12]  }
  0x48   :  { %s49_s16 = sshll.u32 %s6094_s15, 4  ;;  %s70_s20 = sshll.u32 %s6095_s19, 4  ;;  %s50_s16 = int_to_ptr.vmem [resolvable:$true] %s49_s16  ;;  %s6216_s20 = int_to_ptr.vmem [resolvable:$true] %s70_s20 }
  0x49   :  { %s5964_s23 = scalar_lea.hbm %s7264_s2, 16 }
  0x4a   :  { %p5965_p4 = scmp.ne.s32.totalorder %s7264_s2, %s5964_s23  ;;  %p5968_p5 = scmp.lt.u32.totalorder %s5964_s23, %s7264_s2 }
  0x4c   :  { %p5970_p6 = pnand %p5968_p5, %p5965_p4 }
  0x4e   :  { %5973 = shalt.err (!%p5970_p6)
}
  0x4f   :  { %s5974_s0 = scalar_lea.vmem %s50_s16, 16  ;;  %s5978_s14 = scalar_lea.vmem %s50_s16, 32 }
  0x50   :  { %p5975_p7 = scmp.ne.s32.totalorder %s50_s16, %s5974_s0  ;;  %p5979_p8 = scmp.lt.s32.totalorder %s50_s16, %s50_s16 }
  0x51   :  { %p5980_p9 = scmp.lt.s32.totalorder %s5978_s14, %s5974_s0 }
  0x53   :  { %p5981_p10 = por %p5980_p9, %p5979_p8 }
  0x55   :  { %p5982_p11 = pnand %p5981_p10, %p5975_p7 }
  0x57   :  { %5985 = shalt.err (!%p5982_p11)
}
  0x58   :  { %52 = dma.hbm_to_vmem [thread:$0]  %s7264_s2, 16, %s50_s16, [#allocation8]  }
  0x59   :  { %s5986_s10 = scalar_lea.hbm %s7266_s4, 16384 }
  0x5a   :  { %p5987_p12 = scmp.ne.s32.totalorder %s7266_s4, %s5986_s10  ;;  %p5990_p13 = scmp.lt.u32.totalorder %s5986_s10, %s7266_s4 }
  0x5c   :  { %p5992_p0 = pnand %p5990_p13, %p5987_p12 }
  0x5e   :  { %5995 = shalt.err (!%p5992_p0)
}
  0x5f   :  { %s5996_s15 = scalar_lea.vmem %s6216_s20, 16384  ;;  %p6001_p2 = scmp.lt.s32.totalorder %s6216_s20, %s6216_s20 }
  0x60   :  { %p5997_p1 = scmp.ne.s32.totalorder %s6216_s20, %s5996_s15  ;;  %p6002_p3 = scmp.lt.s32.totalorder %s5996_s15, %s5996_s15 }
  0x62   :  { %p6003_p4 = por %p6002_p3, %p6001_p2 }
  0x64   :  { %p6004_p5 = pnand %p6003_p4, %p5997_p1 }
  0x66   :  { %6007 = shalt.err (!%p6004_p5)
}
  0x67   :  { %76 = dma.hbm_to_vmem [thread:$0]  %s7266_s4, 16384, %s6216_s20, [#allocation11], %s6090_s1, %s6090_s1, %s6091_s28  }
  0x68   :  { %s6096_s19 = smov [#allocation15]   ;;  %s6097_s22 = smov [#allocation16]  }
  0x69   :  { %s92_s21 = sshll.u32 %s6096_s19, 4  ;;  %s105_s23 = sshll.u32 %s6097_s22, 4  ;;  %s93_s21 = int_to_ptr.vmem [resolvable:$true] %s92_s21  ;;  %s106_s23 = int_to_ptr.vmem [resolvable:$true] %s105_s23 }
  0x6a   :  { %s6008_s24 = scalar_lea.hbm %s7268_s6, 2048 }
  0x6b   :  { %p6009_p6 = scmp.ne.s32.totalorder %s7268_s6, %s6008_s24  ;;  %p6012_p7 = scmp.lt.u32.totalorder %s6008_s24, %s7268_s6 }
  0x6d   :  { %p6014_p8 = pnand %p6012_p7, %p6009_p6 }
  0x6f   :  { %6017 = shalt.err (!%p6014_p8)
}
  0x70   :  { %s6018_s4 = scalar_lea.vmem %s93_s21, 2048  ;;  %p6023_p10 = scmp.lt.s32.totalorder %s93_s21, %s93_s21 }
  0x71   :  { %p6019_p9 = scmp.ne.s32.totalorder %s93_s21, %s6018_s4  ;;  %p6024_p11 = scmp.lt.s32.totalorder %s6018_s4, %s6018_s4 }
  0x73   :  { %p6025_p12 = por %p6024_p11, %p6023_p10 }
  0x75   :  { %p6026_p13 = pnand %p6025_p12, %p6019_p9 }
  0x77   :  { %6029 = shalt.err (!%p6026_p13)
}
  0x78   :  { %98 = dma.hbm_to_vmem [thread:$0]  %s7268_s6, 2048, %s93_s21, [#allocation14], %s6088_s17, %s6088_s17, %s6089_s18  }
  0x79   :  { %s6030_s29 = scalar_lea.hbm %s7269_s7, 16 }
  0x7a   :  { %p6031_p0 = scmp.ne.s32.totalorder %s7269_s7, %s6030_s29  ;;  %p6034_p1 = scmp.lt.u32.totalorder %s6030_s29, %s7269_s7 }
  0x7c   :  { %p6036_p2 = pnand %p6034_p1, %p6031_p0 }
  0x7e   :  { %6039 = shalt.err (!%p6036_p2)
}
  0x7f   :  { %s6040_s5 = scalar_lea.vmem %s106_s23, 16  ;;  %s6044_s12 = scalar_lea.vmem %s106_s23, 32 }
  0x80   :  { %p6041_p3 = scmp.ne.s32.totalorder %s106_s23, %s6040_s5  ;;  %p6045_p4 = scmp.lt.s32.totalorder %s106_s23, %s106_s23 }
  0x81   :  { %p6046_p5 = scmp.lt.s32.totalorder %s6044_s12, %s6040_s5 }
  0x83   :  { %p6047_p6 = por %p6046_p5, %p6045_p4 }
  0x85   :  { %p6048_p7 = pnand %p6047_p6, %p6041_p3 }
  0x87   :  { %6051 = shalt.err (!%p6048_p7)
}
  0x88   :  { %108 = dma.hbm_to_vmem [thread:$0]  %s7269_s7, 16, %s106_s23, [#allocation17]  }
  0x89   :  { %6074 = dma.done.wait [#allocation5], 1024  }
  0x8a   :  { %6075 = vsyncadd [#allocation5], 4294966272 }
  0x8b   :  { %6076 = dma.done.wait [#allocation8], 1040  }
  0x8c   :  { %6077 = vsyncadd [#allocation8], 4294966256 }
  0x8d   :  { %6078 = dma.done.wait [#allocation11], 32768  }
  0x8e   :  { %6079 = vsyncadd [#allocation11], 4294934528 }
  0x8f   :  { %6080 = dma.done.wait [#allocation14], 2176  }
  0x90   :  { %6081 = vsyncadd [#allocation14], 4294965120 }
  0x91   :  { %6082 = dma.done.wait [#allocation17], 16  }
  0x92   :  { %6083 = vsyncadd [#allocation17], 4294967280  ;;  %v141_v0 = vld [vmem:[#allocation7] sm:$0xff]  ;;  %v142_v1 = vld [vmem:[#allocation7 + $0x8] sm:$0xff]  ;;  %vm156_vm0 = vcmask 523264   ;;  %s6099_s7 = smov [#allocation18]  }
  0x93   :  { %v143_v2 = vld [vmem:[#allocation7 + $0x10] sm:$0xff]  ;;  %v4278_v3 = vpack.c.bf16 %v142_v1, %v141_v0  ;;  %v144_v4 = vld [vmem:[#allocation7 + $0x18] sm:$0xff]  ;;  %v145_v6 = vld [vmem:[#allocation7 + $0x20] sm:$0xff]  ;;  %s4092_s2 = sshll.u32 %s6099_s7, 4  ;;  %s4093_s2 = int_to_ptr.vmem [resolvable:$true] %s4092_s2 }
  0x94   :  { %v4282_v5 = vpack.c.bf16 %v144_v4, %v143_v2  ;;  %v146_v7 = vld [vmem:[#allocation7 + $0x28] sm:$0xff]  ;;  %v133_v8 = vld [vmem:[#allocation4] sm:$0xff]  ;;  %v147_v10 = vld [vmem:[#allocation7 + $0x30] sm:$0xff]  ;;  %s6052_s16 = scalar_lea.vmem %s4093_s2, 1024  ;;  %p6057_p9 = scmp.lt.s32.totalorder %s4093_s2, %s4093_s2 }
  0x95   :  { %4279 = vmatprep.subr.bf16.mxu0 %v4278_v3  ;;  %4222 = vmatprep.mubr.msk.f32.mxu0 %vm156_vm0, %v133_v8  ;;  %v4286_v9 = vpack.c.bf16 %v146_v7, %v145_v6  ;;  %v367_v11 = vld [vmem:[#allocation10 + $0x8] sm:$0xff]  ;;  %v148_v13 = vld [vmem:[#allocation7 + $0x38] sm:$0xff]  ;;  %v366_v15 = vld [vmem:[#allocation10] sm:$0xff]  ;;  %p6053_p8 = scmp.ne.s32.totalorder %s4093_s2, %s6052_s16  ;;  %p6058_p10 = scmp.lt.s32.totalorder %s6052_s16, %s6052_s16 }
  0x96   :  { %4281 = vmatpush3.bf16.msra.mxu0 %v4278_v3  ;;  %v371_v12 = vld [vmem:[#allocation10 + $0x28] sm:$0xff]  ;;  %v370_v16 = vld [vmem:[#allocation10 + $0x20] sm:$0xff]  ;;  %v4290_v21 = vpack.c.bf16 %v148_v13, %v147_v10  ;;  %v369_v24 = vld [vmem:[#allocation10 + $0x18] sm:$0xff] }
  0x97   :  { %4283 = vmatprep.subr.bf16.mxu0 %v4282_v5  ;;  %v4294_v14 = vpack.c.bf16 %v371_v12, %v367_v11  ;;  %v4296_v17 = vpack.c.bf16 %v370_v16, %v366_v15  ;;  %v375_v18 = vld [vmem:[#allocation10 + $0x48] sm:$0xff]  ;;  %v374_v20 = vld [vmem:[#allocation10 + $0x40] sm:$0xff]  ;;  %v373_v25 = vld [vmem:[#allocation10 + $0x38] sm:$0xff]  ;;  %p6059_p11 = por %p6058_p10, %p6057_p9 }
  0x98   :  { %v379_v19 = vld [vmem:[#allocation10 + $0x68] sm:$0xff]  ;;  %v378_v23 = vld [vmem:[#allocation10 + $0x60] sm:$0xff]  ;;  %v368_v31 = vld [vmem:[#allocation10 + $0x10] sm:$0xff]  ;;  %v4326_v34 = vpack.c.bf16 %v373_v25, %v369_v24 }
  0x99   :  { %4295 = vmatprep.subr.bf16.mxu1 %v4294_v14  ;;  %v4298_v22 = vpack.c.bf16 %v379_v19, %v375_v18  ;;  %v4300_v26 = vpack.c.bf16 %v378_v23, %v374_v20  ;;  %v383_v27 = vld [vmem:[#allocation10 + $0x88] sm:$0xff]  ;;  %v382_v29 = vld [vmem:[#allocation10 + $0x80] sm:$0xff]  ;;  %v372_v32 = vld [vmem:[#allocation10 + $0x30] sm:$0xff]  ;;  %p6060_p12 = pnand %p6059_p11, %p6053_p8 }
  0x9a   :  { %4285 = vmatpush3.bf16.msra.mxu0 %v4282_v5  ;;  %4297 = vmatpush1.bf16.msra.mxu1 %v4296_v17  ;;  %v387_v28 = vld [vmem:[#allocation10 + $0xa8] sm:$0xff]  ;;  %v386_v30 = vld [vmem:[#allocation10 + $0xa0] sm:$0xff]  ;;  %v377_v35 = vld [vmem:[#allocation10 + $0x58] sm:$0xff]  ;;  %v4328_v45 = vpack.c.bf16 %v372_v32, %v368_v31 }
  0x9b   :  { %4287 = vmatprep.subr.bf16.mxu0 %v4286_v9  ;;  %4299 = vmatprep.subr.bf16.mxu1 %v4298_v22  ;;  %v4302_v33 = vpack.c.bf16 %v387_v28, %v383_v27  ;;  %v4304_v36 = vpack.c.bf16 %v386_v30, %v382_v29  ;;  %v391_v37 = vld [vmem:[#allocation10 + $0xc8] sm:$0xff]  ;;  %v381_v39 = vld [vmem:[#allocation10 + $0x78] sm:$0xff]  ;;  %v390_v41 = vld [vmem:[#allocation10 + $0xc0] sm:$0xff] }
  0x9c   :  { %v395_v38 = vld [vmem:[#allocation10 + $0xe8] sm:$0xff]  ;;  %v394_v42 = vld [vmem:[#allocation10 + $0xe0] sm:$0xff]  ;;  %v4330_v48 = vpack.c.bf16 %v381_v39, %v377_v35  ;;  %v376_v49 = vld [vmem:[#allocation10 + $0x50] sm:$0xff] }
  0x9d   :  { %v4306_v40 = vpack.c.bf16 %v395_v38, %v391_v37  ;;  %v134_v43 = vld [vmem:[#allocation4 + $0x8] sm:$0xff]  ;;  %v135_v44 = vld [vmem:[#allocation4 + $0x10] sm:$0xff]  ;;  %v385_v51 = vld [vmem:[#allocation10 + $0x98] sm:$0xff]  ;;  %v4308_v52 = vpack.c.bf16 %v394_v42, %v390_v41 }
  0x9e   :  { %4289 = vmatpush3.bf16.msra.mxu0 %v4286_v9  ;;  %4301 = vmatpush1.bf16.msra.mxu1 %v4300_v26  ;;  %v399_v46 = vld [vmem:[#allocation10 + $0x108] sm:$0xff]  ;;  %v380_v50 = vld [vmem:[#allocation10 + $0x70] sm:$0xff]  ;;  %v389_v53 = vld [vmem:[#allocation10 + $0xb8] sm:$0xff] }
  0x9f   :  { %4291 = vmatprep.subr.bf16.mxu0 %v4290_v21  ;;  %4303 = vmatprep.subr.bf16.mxu1 %v4302_v33  ;;  %v403_v47 = vld [vmem:[#allocation10 + $0x128] sm:$0xff]  ;;  %v398_v55 = vld [vmem:[#allocation10 + $0x100] sm:$0xff]  ;;  %v136_v59 = vld [vmem:[#allocation4 + $0x18] sm:$0xff]  ;;  %v4332_v61 = vpack.c.bf16 %v380_v50, %v376_v49  ;;  %v4334_v62 = vpack.c.bf16 %v389_v53, %v385_v51 }
  0xa0   :  { %v4310_v54 = vpack.c.bf16 %v403_v47, %v399_v46  ;;  %v402_v56 = vld [vmem:[#allocation10 + $0x120] sm:$0xff]  ;;  %v407_v57 = vld [vmem:[#allocation10 + $0x148] sm:$0xff]  ;;  %v384_v63 = vld [vmem:[#allocation10 + $0x90] sm:$0xff] }
  0xa1   :  { %v411_v58 = vld [vmem:[#allocation10 + $0x168] sm:$0xff]  ;;  %v137_v60 = vld [vmem:[#allocation4 + $0x20] sm:$0xff]  ;;  %v388_v0 = vld [vmem:[#allocation10 + $0xb0] sm:$0xff]  ;;  %v4312_v2 = vpack.c.bf16 %v402_v56, %v398_v55 }
  0xa2   :  { %4293 = vmatpush3.bf16.msra.mxu0 %v4290_v21  ;;  %4305 = vmatpush1.bf16.msra.mxu1 %v4304_v36  ;;  %v393_v1 = vld [vmem:[#allocation10 + $0xd8] sm:$0xff]  ;;  %v4314_v4 = vpack.c.bf16 %v411_v58, %v407_v57  ;;  %v406_v5 = vld [vmem:[#allocation10 + $0x140] sm:$0xff]  ;;  %v415_v7 = vld [vmem:[#allocation10 + $0x188] sm:$0xff]  ;;  %v4336_v11 = vpack.c.bf16 %v388_v0, %v384_v63  ;;  %v6098_v57 = vmov 0.0  }
  0xa3   :  { %4327 = vmatprep.subr.bf16.mxu0 %v4326_v34  ;;  %4307 = vmatprep.subr.bf16.mxu1 %v4306_v40  ;;  %v397_v3 = vld [vmem:[#allocation10 + $0xf8] sm:$0xff]  ;;  %v410_v6 = vld [vmem:[#allocation10 + $0x160] sm:$0xff]  ;;  %v419_v8 = vld [vmem:[#allocation10 + $0x1a8] sm:$0xff] }
  0xa4   :  { %v138_v9 = vld [vmem:[#allocation4 + $0x28] sm:$0xff]  ;;  %v139_v10 = vld [vmem:[#allocation4 + $0x30] sm:$0xff]  ;;  %v4338_v12 = vpack.c.bf16 %v397_v3, %v393_v1  ;;  %v401_v15 = vld [vmem:[#allocation10 + $0x118] sm:$0xff]  ;;  %v4316_v16 = vpack.c.bf16 %v410_v6, %v406_v5  ;;  %v4318_v18 = vpack.c.bf16 %v419_v8, %v415_v7  ;;  %516 = vmatprep.mubr.f32.mxu1 %v6098_v57 }
  0xa5   :  { %4223 = vmatmul.mubr.msk.f32.vlgmr.msra.gmra.mrb[0].mxu0 %vm156_vm0, %v134_v43  ;;  %v392_v13 = vld [vmem:[#allocation10 + $0xd0] sm:$0xff]  ;;  %v405_v17 = vld [vmem:[#allocation10 + $0x138] sm:$0xff]  ;;  %v414_v19 = vld [vmem:[#allocation10 + $0x180] sm:$0xff] }
  0xa6   :  { %4225 = vmatprep.mubr.msk.f32.mxu0 %vm156_vm0, %v135_v44  ;;  %4329 = vmatpush1.bf16.msra.mxu0 %v4328_v45  ;;  %v396_v14 = vld [vmem:[#allocation10 + $0xf0] sm:$0xff]  ;;  %v418_v20 = vld [vmem:[#allocation10 + $0x1a0] sm:$0xff]  ;;  %v423_v21 = vld [vmem:[#allocation10 + $0x1c8] sm:$0xff]  ;;  %v4342_v25 = vpack.c.bf16 %v405_v17, %v401_v15 }
  0xa7   :  { %4331 = vmatprep.subr.bf16.mxu0 %v4330_v48  ;;  %4309 = vmatpush1.bf16.msra.mxu1 %v4308_v52  ;;  %v427_v22 = vld [vmem:[#allocation10 + $0x1e8] sm:$0xff]  ;;  %v140_v23 = vld [vmem:[#allocation4 + $0x38] sm:$0xff]  ;;  %v4340_v24 = vpack.c.bf16 %v396_v14, %v392_v13  ;;  %v4320_v28 = vpack.c.bf16 %v418_v20, %v414_v19  ;;  %v422_v45 = vld [vmem:[#allocation10 + $0x1c0] sm:$0xff] }
  0xa8   :  { %4311 = vmatprep.subr.bf16.mxu1 %v4310_v54  ;;  %v400_v26 = vld [vmem:[#allocation10 + $0x110] sm:$0xff]  ;;  %v409_v29 = vld [vmem:[#allocation10 + $0x158] sm:$0xff]  ;;  %v4322_v31 = vpack.c.bf16 %v427_v22, %v423_v21  ;;  %v426_v46 = vld [vmem:[#allocation10 + $0x1e0] sm:$0xff] }
  0xa9   :  { %4226 = vmatmul.mubr.msk.f32.gmra.mrb[2].mxu0 %vm156_vm0, %v136_v59  ;;  %v404_v27 = vld [vmem:[#allocation10 + $0x130] sm:$0xff]  ;;  %v413_v30 = vld [vmem:[#allocation10 + $0x178] sm:$0xff]  ;;  %v4324_v49 = vpack.c.bf16 %v426_v46, %v422_v45  ;;  %v295_v52 = vld [vmem:[#allocation12 + $0x8] sm:$0xff] }
  0xaa   :  { %4228 = vmatprep.mubr.msk.f32.mxu0 %vm156_vm0, %v137_v60  ;;  %4333 = vmatpush1.bf16.msra.mxu0 %v4332_v61  ;;  %v4344_v32 = vpack.c.bf16 %v404_v27, %v400_v26  ;;  %v4346_v33 = vpack.c.bf16 %v413_v30, %v409_v29  ;;  %v408_v34 = vld [vmem:[#allocation10 + $0x150] sm:$0xff]  ;;  %v417_v36 = vld [vmem:[#allocation10 + $0x198] sm:$0xff]  ;;  %v299_v53 = vld [vmem:[#allocation12 + $0x28] sm:$0xff] }
  0xab   :  { %4335 = vmatprep.subr.bf16.mxu0 %v4334_v62  ;;  %4313 = vmatpush1.bf16.msra.mxu1 %v4312_v2  ;;  %v412_v35 = vld [vmem:[#allocation10 + $0x170] sm:$0xff]  ;;  %v421_v37 = vld [vmem:[#allocation10 + $0x1b8] sm:$0xff]  ;;  %v6285_v55 = vpack.c.bf16 %v299_v53, %v295_v52  ;;  %v294_v59 = vld [vmem:[#allocation12] sm:$0xff] }
  0xac   :  { %4315 = vmatprep.subr.bf16.mxu1 %v4314_v4  ;;  %v4348_v38 = vpack.c.bf16 %v412_v35, %v408_v34  ;;  %v4350_v39 = vpack.c.bf16 %v421_v37, %v417_v36  ;;  %v416_v40 = vld [vmem:[#allocation10 + $0x190] sm:$0xff]  ;;  %v425_v43 = vld [vmem:[#allocation10 + $0x1d8] sm:$0xff]  ;;  %v298_v60 = vld [vmem:[#allocation12 + $0x20] sm:$0xff] }
  0xad   :  { %4229 = vmatmul.mubr.msk.f32.gmra.mrb[4].mxu0 %vm156_vm0, %v138_v9  ;;  %v420_v41 = vld [vmem:[#allocation10 + $0x1b0] sm:$0xff]  ;;  %v429_v44 = vld [vmem:[#allocation10 + $0x1f8] sm:$0xff]  ;;  %v303_v0 = vld [vmem:[#allocation12 + $0x48] sm:$0xff]  ;;  %v6295_v6 = vpack.c.bf16 %v298_v60, %v294_v59 }
  0xae   :  { %4231 = vmatprep.mubr.msk.f32.mxu0 %vm156_vm0, %v139_v10  ;;  %4337 = vmatpush1.bf16.msra.mxu0 %v4336_v11  ;;  %v4352_v42 = vpack.c.bf16 %v420_v41, %v416_v40  ;;  %v4354_v47 = vpack.c.bf16 %v429_v44, %v425_v43  ;;  %v424_v48 = vld [vmem:[#allocation10 + $0x1d0] sm:$0xff]  ;;  %v297_v54 = vld [vmem:[#allocation12 + $0x18] sm:$0xff]  ;;  %v307_v2 = vld [vmem:[#allocation12 + $0x68] sm:$0xff] }
  0xaf   :  { %4339 = vmatprep.subr.bf16.mxu0 %v4338_v12  ;;  %4317 = vmatpush1.bf16.msra.mxu1 %v4316_v16  ;;  %v428_v50 = vld [vmem:[#allocation10 + $0x1f0] sm:$0xff]  ;;  %v301_v56 = vld [vmem:[#allocation12 + $0x38] sm:$0xff]  ;;  %v302_v8 = vld [vmem:[#allocation12 + $0x40] sm:$0xff]  ;;  %v6300_v13 = vpack.c.bf16 %v307_v2, %v303_v0 }
  0xb0   :  { %4319 = vmatprep.subr.bf16.mxu1 %v4318_v18  ;;  %v4356_v51 = vpack.c.bf16 %v428_v50, %v424_v48  ;;  %v6289_v58 = vpack.c.bf16 %v301_v56, %v297_v54  ;;  %v296_v61 = vld [vmem:[#allocation12 + $0x10] sm:$0xff]  ;;  %v6293_v63 = vld [vmem:[#allocation9] ss:$0 sm:$0xff]  ;;  %v306_v10 = vld [vmem:[#allocation12 + $0x60] sm:$0xff] }
  0xb1   :  { %4232 = vmatmul.mubr.msk.f32.gmra.mrb[6].mxu0 %vm156_vm0, %v140_v23  ;;  %v300_v62 = vld [vmem:[#allocation12 + $0x30] sm:$0xff]  ;;  %v305_v3 = vld [vmem:[#allocation12 + $0x58] sm:$0xff]  ;;  %v311_v15 = vld [vmem:[#allocation12 + $0x88] sm:$0xff]  ;;  %v6306_v21 = vpack.c.bf16 %v306_v10, %v302_v8 }
  0xb2   :  { %4341 = vmatpush1.bf16.msra.mxu0 %v4340_v24  ;;  %629 = vmatprep.mubr.f32.mxu0 %v6098_v57  ;;  %v309_v4 = vld [vmem:[#allocation12 + $0x78] sm:$0xff]  ;;  %v6297_v7 = vpack.c.bf16 %v300_v62, %v296_v61  ;;  %v304_v11 = vld [vmem:[#allocation12 + $0x50] sm:$0xff]  ;;  %v315_v17 = vld [vmem:[#allocation12 + $0xa8] sm:$0xff] }
  0xb3   :  { %4343 = vmatprep.subr.bf16.mxu0 %v4342_v25  ;;  %4321 = vmatpush1.bf16.msra.mxu1 %v4320_v28  ;;  %v308_v12 = vld [vmem:[#allocation12 + $0x70] sm:$0xff]  ;;  %v6302_v14 = vpack.c.bf16 %v309_v4, %v305_v3  ;;  %v313_v18 = vld [vmem:[#allocation12 + $0x98] sm:$0xff]  ;;  %v310_v23 = vld [vmem:[#allocation12 + $0x80] sm:$0xff]  ;;  %v6315_v28 = vpack.c.bf16 %v315_v17, %v311_v15 }
  0xb4   :  { %4323 = vmatprep.subr.bf16.mxu1 %v4322_v31  ;;  %v317_v19 = vld [vmem:[#allocation12 + $0xb8] sm:$0xff]  ;;  %v6308_v22 = vpack.c.bf16 %v308_v12, %v304_v11  ;;  %v314_v25 = vld [vmem:[#allocation12 + $0xa0] sm:$0xff]  ;;  %v312_v26 = vld [vmem:[#allocation12 + $0x90] sm:$0xff] }
  0xb5   :  { %v316_v27 = vld [vmem:[#allocation12 + $0xb0] sm:$0xff]  ;;  %v6317_v29 = vpack.c.bf16 %v317_v19, %v313_v18  ;;  %v319_v30 = vld [vmem:[#allocation12 + $0xc8] sm:$0xff]  ;;  %v321_v34 = vld [vmem:[#allocation12 + $0xd8] sm:$0xff]  ;;  %v6324_v36 = vpack.c.bf16 %v314_v25, %v310_v23 }
  0xb6   :  { %4345 = vmatpush1.bf16.msra.mxu0 %v4344_v32  ;;  %v325_v35 = vld [vmem:[#allocation12 + $0xf8] sm:$0xff]  ;;  %v6326_v37 = vpack.c.bf16 %v316_v27, %v312_v26  ;;  %v322_v40 = vld [vmem:[#allocation12 + $0xe0] sm:$0xff]  ;;  %v320_v41 = vld [vmem:[#allocation12 + $0xd0] sm:$0xff] }
  0xb7   :  { %4347 = vmatprep.subr.bf16.mxu0 %v4346_v33  ;;  %4325 = vmatpush1.bf16.msra.mxu1 %v4324_v49  ;;  %v323_v33 = vld [vmem:[#allocation12 + $0xe8] sm:$0xff]  ;;  %v6334_v44 = vpack.c.bf16 %v325_v35, %v321_v34  ;;  %v333_v48 = vld [vmem:[#allocation12 + $0x138] sm:$0xff]  ;;  %v326_v52 = vld [vmem:[#allocation12 + $0x100] sm:$0xff] }
  0xb8   :  { %4359 = vmatprep.subr.bf16.mxu1 %v6285_v55  ;;  %v6332_v43 = vpack.c.bf16 %v323_v33, %v319_v30  ;;  %v327_v45 = vld [vmem:[#allocation12 + $0x108] sm:$0xff]  ;;  %v330_v56 = vld [vmem:[#allocation12 + $0x120] sm:$0xff]  ;;  %v328_v59 = vld [vmem:[#allocation12 + $0x110] sm:$0xff] }
  0xb9   :  { %v331_v46 = vld [vmem:[#allocation12 + $0x128] sm:$0xff]  ;;  %v332_v60 = vld [vmem:[#allocation12 + $0x130] sm:$0xff]  ;;  %v337_v3 = vld [vmem:[#allocation12 + $0x158] sm:$0xff] }
  0xba   :  { %4349 = vmatpush1.bf16.msra.mxu0 %v4348_v38  ;;  %v6349_v61 = vpack.c.bf16 %v331_v46, %v327_v45  ;;  %v335_v0 = vld [vmem:[#allocation12 + $0x148] sm:$0xff]  ;;  %v341_v4 = vld [vmem:[#allocation12 + $0x178] sm:$0xff]  ;;  %v6358_v8 = vpack.c.bf16 %v332_v60, %v328_v59  ;;  %v338_v10 = vld [vmem:[#allocation12 + $0x160] sm:$0xff] }
  0xbb   :  { %4351 = vmatprep.subr.bf16.mxu0 %v4350_v39  ;;  %v318_v39 = vld [vmem:[#allocation12 + $0xc0] sm:$0xff]  ;;  %v339_v2 = vld [vmem:[#allocation12 + $0x168] sm:$0xff]  ;;  %v336_v11 = vld [vmem:[#allocation12 + $0x150] sm:$0xff] }
  0xbc   :  { %v6340_v50 = vpack.c.bf16 %v322_v40, %v318_v39  ;;  %v340_v12 = vld [vmem:[#allocation12 + $0x170] sm:$0xff]  ;;  %v6364_v15 = vpack.c.bf16 %v339_v2, %v335_v0  ;;  %v343_v17 = vld [vmem:[#allocation12 + $0x188] sm:$0xff]  ;;  %v345_v19 = vld [vmem:[#allocation12 + $0x198] sm:$0xff] }
  0xbd   :  { %v347_v18 = vld [vmem:[#allocation12 + $0x1a8] sm:$0xff]  ;;  %v342_v25 = vld [vmem:[#allocation12 + $0x180] sm:$0xff]  ;;  %v344_v30 = vld [vmem:[#allocation12 + $0x190] sm:$0xff] }
  0xbe   :  { %4353 = vmatpush1.bf16.msra.mxu0 %v4352_v42  ;;  %v324_v42 = vld [vmem:[#allocation12 + $0xf0] sm:$0xff]  ;;  %v346_v27 = vld [vmem:[#allocation12 + $0x1a0] sm:$0xff]  ;;  %v6380_v33 = vpack.c.bf16 %v347_v18, %v343_v17  ;;  %v351_v35 = vld [vmem:[#allocation12 + $0x1c8] sm:$0xff] }
  0xbf   :  { %4355 = vmatprep.subr.bf16.mxu0 %v4354_v47  ;;  %v329_v47 = vld [vmem:[#allocation12 + $0x118] sm:$0xff]  ;;  %v350_v45 = vld [vmem:[#allocation12 + $0x1c0] sm:$0xff] }
  0xc0   :  { %v6351_v62 = vpack.c.bf16 %v333_v48, %v329_v47  ;;  %v353_v39 = vld [vmem:[#allocation12 + $0x1d8] sm:$0xff]  ;;  %v354_v46 = vld [vmem:[#allocation12 + $0x1e0] sm:$0xff]  ;;  %v352_v47 = vld [vmem:[#allocation12 + $0x1d0] sm:$0xff] }
  0xc1   :  { %v357_v40 = vld [vmem:[#allocation12 + $0x1f8] sm:$0xff]  ;;  %v356_v48 = vld [vmem:[#allocation12 + $0x1f0] sm:$0xff]  ;;  %v430_v0 = vld [vmem:[#allocation13] ss:$2 sm:$0xf] }
  0xc2   :  { %4357 = vmatpush1.bf16.msra.mxu0 %v4356_v51  ;;  %v6342_v51 = vpack.c.bf16 %v324_v42, %v320_v41  ;;  %v6387_v41 = vpack.c.bf16 %v346_v27, %v342_v25 }
  0xc3   :  { %4391 = vmatprep.subr.bf16.mxu0 %v6289_v58 }
 0x178   :  { %v4224_v1 = vpop.f32.mrb[0].mxu0 }
 0x179   :  { %v247_v5 = vpop.f32.mrb[1].mxu0  ;;  %v253_v24 = vadd.f32 %v4224_v1, %v6293_v63 }
 0x17a   :  { %v248_v9 = vadd.f32 %v6293_v63, %v247_v5  ;;  %v6356_v5 = vpack.c.bf16 %v330_v56, %v326_v52  ;;  %v6403_v56 = vpack.c.bf16 %v356_v48, %v352_v47 }
 0x17c   :  { %517 = vmatmul.mubr.f32.vlgmr.msra.gmra.mrb[0].mxu1 %v248_v9  ;;  %630 = vmatmul.mubr.f32.vlgmr.msra.gmra.mrb[8].mxu0 %v248_v9  ;;  %v4227_v16 = vpop.f32.mrb[2].mxu0  ;;  %v334_v9 = vld [vmem:[#allocation12 + $0x140] sm:$0xff] }
 0x17d   :  { %4361 = vmatpush1.bf16.msra.mxu1 %v6295_v6  ;;  %4393 = vmatpush1.bf16.msra.mxu0 %v6297_v7  ;;  %v257_v20 = vpop.f32.mrb[3].mxu0  ;;  %v263_v54 = vadd.f32 %v4227_v16, %v6293_v63  ;;  %v6366_v16 = vpack.c.bf16 %v341_v4, %v337_v3  ;;  %v6370_v23 = vpack.c.bf16 %v338_v10, %v334_v9 }
 0x17e   :  { %522 = vmatprep.mubr.f32.mxu1 %v6098_v57  ;;  %635 = vmatprep.mubr.f32.mxu0 %v6098_v57  ;;  %v258_v31 = vadd.f32 %v6293_v63, %v257_v20  ;;  %v349_v20 = vld [vmem:[#allocation12 + $0x1b8] sm:$0xff] }
 0x17f   :  { %4363 = vmatprep.subr.bf16.mxu1 %v6300_v13  ;;  %4395 = vmatprep.subr.bf16.mxu0 %v6302_v14  ;;  %v6382_v34 = vpack.c.bf16 %v349_v20, %v345_v19 }
 0x180   :  { %523 = vmatmul.mubr.f32.gmra.mrb[2].mxu1 %v253_v24  ;;  %636 = vmatmul.mubr.f32.gmra.mrb[10].mxu0 %v253_v24  ;;  %v6320_v32 = vpop.f32.mrb[4].mxu0  ;;  %v6372_v24 = vpack.c.bf16 %v340_v12, %v336_v11 }
 0x181   :  { %4365 = vmatpush1.bf16.msra.mxu1 %v6306_v21  ;;  %4397 = vmatpush1.bf16.msra.mxu0 %v6308_v22  ;;  %v267_v38 = vpop.f32.mrb[5].mxu0  ;;  %v273_v26 = vadd.f32 %v6320_v32, %v6293_v63  ;;  %v355_v32 = vld [vmem:[#allocation12 + $0x1e8] sm:$0xff] }
 0x182   :  { %528 = vmatprep.mubr.f32.mxu1 %v6098_v57  ;;  %641 = vmatprep.mubr.f32.mxu0 %v6098_v57  ;;  %v268_v1 = vadd.f32 %v6293_v63, %v267_v38  ;;  %v6395_v52 = vpack.c.bf16 %v355_v32, %v351_v35 }
 0x183   :  { %4367 = vmatprep.subr.bf16.mxu1 %v6315_v28  ;;  %4399 = vmatprep.subr.bf16.mxu0 %v6317_v29 }
 0x184   :  { %529 = vmatmul.mubr.f32.gmra.mrb[4].mxu1 %v258_v31  ;;  %642 = vmatmul.mubr.f32.gmra.mrb[12].mxu0 %v258_v31  ;;  %v6336_v49 = vpop.f32.mrb[6].mxu0  ;;  %v348_v31 = vld [vmem:[#allocation12 + $0x1b0] sm:$0xff] }
 0x185   :  { %4369 = vmatpush1.bf16.msra.mxu1 %v6324_v36  ;;  %4401 = vmatpush1.bf16.msra.mxu0 %v6326_v37  ;;  %v277_v53 = vpop.f32.mrb[7].mxu0  ;;  %v6389_v42 = vpack.c.bf16 %v348_v31, %v344_v30  ;;  %v283_v59 = vadd.f32 %v6336_v49, %v6293_v63 }
 0x186   :  { %534 = vmatprep.mubr.f32.mxu1 %v6098_v57  ;;  %647 = vmatprep.mubr.f32.mxu0 %v6098_v57  ;;  %v278_v38 = vadd.f32 %v6293_v63, %v277_v53  ;;  %v6397_v53 = vpack.c.bf16 %v357_v40, %v353_v39  ;;  %v432_v63 = vlaneseq }
 0x187   :  { %4371 = vmatprep.subr.bf16.mxu1 %v6332_v43  ;;  %4403 = vmatprep.subr.bf16.mxu0 %v6334_v44 }
 0x188   :  { %535 = vmatmul.mubr.f32.gmra.mrb[6].mxu1 %v263_v54  ;;  %648 = vmatmul.mubr.f32.gmra.mrb[14].mxu0 %v263_v54  ;;  %v6401_v54 = vpack.c.bf16 %v354_v46, %v350_v45  ;;  %v6453_v49 = vshrl.u32 %v432_v63, 7 }
 0x189   :  { %4373 = vmatpush1.bf16.msra.mxu1 %v6340_v50  ;;  %4405 = vmatpush1.bf16.msra.mxu0 %v6342_v51 }
 0x18a   :  { %540 = vmatprep.mubr.f32.mxu1 %v6098_v57  ;;  %653 = vmatprep.mubr.f32.mxu0 %v6098_v57  ;;  %v434_v60 = vsub.s32 0, %v6453_v49  ;;  %v442_v11 = vsub.s32 2, %v6453_v49  ;;  %v446_v25 = vsub.s32 3, %v6453_v49 }
 0x18b   :  { %4375 = vmatprep.subr.bf16.mxu1 %v6349_v61  ;;  %4407 = vmatprep.subr.bf16.mxu0 %v6351_v62 }
 0x18c   :  { %541 = vmatmul.mubr.f32.gmra.mrb[8].mxu1 %v268_v1  ;;  %654 = vmatmul.mubr.f32.gmra.mrb[16].mxu0 %v268_v1  ;;  %v438_v1 = vsub.s32 1, %v6453_v49  ;;  %v6459_v2 = vrot.slane %v430_v0, %v434_v60  ;;  %v6475_v27 = vrot.slane %v430_v0, %v446_v25 }
 0x18d   :  { %4377 = vmatpush1.bf16.msra.mxu1 %v6356_v5  ;;  %4409 = vmatpush1.bf16.msra.mxu0 %v6358_v8 }
 0x18e   :  { %546 = vmatprep.mubr.f32.mxu1 %v6098_v57  ;;  %659 = vmatprep.mubr.f32.mxu0 %v6098_v57  ;;  %v6463_v3 = vrot.slane %v430_v0, %v438_v1 }
 0x18f   :  { %4379 = vmatprep.subr.bf16.mxu1 %v6364_v15  ;;  %4411 = vmatprep.subr.bf16.mxu0 %v6366_v16 }
 0x190   :  { %547 = vmatmul.mubr.f32.gmra.mrb[10].mxu1 %v273_v26  ;;  %660 = vmatmul.mubr.f32.gmra.mrb[18].mxu0 %v273_v26  ;;  %v6471_v26 = vrot.slane %v430_v0, %v442_v11 }
 0x191   :  { %4381 = vmatpush1.bf16.msra.mxu1 %v6370_v23  ;;  %4413 = vmatpush1.bf16.msra.mxu0 %v6372_v24 }
 0x192   :  { %552 = vmatprep.mubr.f32.mxu1 %v6098_v57  ;;  %665 = vmatprep.mubr.f32.mxu0 %v6098_v57 }
 0x193   :  { %4383 = vmatprep.subr.bf16.mxu1 %v6380_v33  ;;  %4415 = vmatprep.subr.bf16.mxu0 %v6382_v34 }
 0x194   :  { %553 = vmatmul.mubr.f32.gmra.mrb[12].mxu1 %v278_v38  ;;  %666 = vmatmul.mubr.f32.gmra.mrb[20].mxu0 %v278_v38 }
 0x195   :  { %4385 = vmatpush1.bf16.msra.mxu1 %v6387_v41  ;;  %4417 = vmatpush1.bf16.msra.mxu0 %v6389_v42 }
 0x196   :  { %558 = vmatprep.mubr.f32.mxu1 %v6098_v57  ;;  %671 = vmatprep.mubr.f32.mxu0 %v6098_v57 }
 0x197   :  { %4387 = vmatprep.subr.bf16.mxu1 %v6395_v52  ;;  %4419 = vmatprep.subr.bf16.mxu0 %v6397_v53 }
 0x198   :  { %559 = vmatmul.mubr.f32.gmra.mrb[14].mxu1 %v283_v59  ;;  %672 = vmatmul.mubr.f32.gmra.mrb[22].mxu0 %v283_v59 }
 0x199   :  { %4389 = vmatpush1.bf16.msra.mxu1 %v6401_v54  ;;  %4421 = vmatpush1.bf16.msra.mxu0 %v6403_v56 }
 0x19a   :  { %778 = vmatprep.mubr.f32.mxu1 %v6098_v57  ;;  %849 = vmatprep.mubr.f32.mxu0 %v6098_v57 }
 0x19b   :  { %4423 = vmatprep.subr.bf16.mxu1 %v6285_v55  ;;  %4455 = vmatprep.subr.bf16.mxu0 %v6289_v58 }
 0x19c   :  { %779 = vmatmul.mubr.f32.vlgmr.msra.gmra.mrb[0].mxu1 %v6098_v57  ;;  %850 = vmatmul.mubr.f32.vlgmr.msra.gmra.mrb[8].mxu0 %v6098_v57 }
 0x19d   :  { %4425 = vmatpush1.bf16.msra.mxu1 %v6295_v6  ;;  %4457 = vmatpush1.bf16.msra.mxu0 %v6297_v7 }
 0x19e   :  { %4427 = vmatprep.subr.bf16.mxu1 %v6300_v13  ;;  %4459 = vmatprep.subr.bf16.mxu0 %v6302_v14 }
 0x19f   :  { %954 = vmatprep.mubr.f32.mxu1 %v6098_v57  ;;  %1025 = vmatprep.mubr.f32.mxu0 %v6098_v57 }
 0x1a1   :  { %4429 = vmatpush1.bf16.msra.mxu1 %v6306_v21  ;;  %4461 = vmatpush1.bf16.msra.mxu0 %v6308_v22 }
 0x1a2   :  { %4431 = vmatprep.subr.bf16.mxu1 %v6315_v28  ;;  %4463 = vmatprep.subr.bf16.mxu0 %v6317_v29 }
 0x1a5   :  { %4433 = vmatpush1.bf16.msra.mxu1 %v6324_v36  ;;  %4465 = vmatpush1.bf16.msra.mxu0 %v6326_v37 }
 0x1a6   :  { %4435 = vmatprep.subr.bf16.mxu1 %v6332_v43  ;;  %4467 = vmatprep.subr.bf16.mxu0 %v6334_v44 }
 0x1a9   :  { %4437 = vmatpush1.bf16.msra.mxu1 %v6340_v50  ;;  %4469 = vmatpush1.bf16.msra.mxu0 %v6342_v51 }
 0x1aa   :  { %4439 = vmatprep.subr.bf16.mxu1 %v6349_v61  ;;  %4471 = vmatprep.subr.bf16.mxu0 %v6351_v62 }
 0x1ad   :  { %4441 = vmatpush1.bf16.msra.mxu1 %v6356_v5  ;;  %4473 = vmatpush1.bf16.msra.mxu0 %v6358_v8 }
 0x1ae   :  { %4443 = vmatprep.subr.bf16.mxu1 %v6364_v15  ;;  %4475 = vmatprep.subr.bf16.mxu0 %v6366_v16 }
 0x1b1   :  { %4445 = vmatpush1.bf16.msra.mxu1 %v6370_v23  ;;  %4477 = vmatpush1.bf16.msra.mxu0 %v6372_v24 }
 0x1b2   :  { %4447 = vmatprep.subr.bf16.mxu1 %v6380_v33  ;;  %4479 = vmatprep.subr.bf16.mxu0 %v6382_v34 }
 0x1b5   :  { %4449 = vmatpush1.bf16.msra.mxu1 %v6387_v41  ;;  %4481 = vmatpush1.bf16.msra.mxu0 %v6389_v42 }
 0x1b6   :  { %4451 = vmatprep.subr.bf16.mxu1 %v6395_v52  ;;  %4483 = vmatprep.subr.bf16.mxu0 %v6397_v53 }
 0x1b9   :  { %4453 = vmatpush1.bf16.msra.mxu1 %v6401_v54  ;;  %4485 = vmatpush1.bf16.msra.mxu0 %v6403_v56 }
 0x1ba   :  { %4487 = vmatprep.subr.bf16.mxu1 %v6285_v55  ;;  %4519 = vmatprep.subr.bf16.mxu0 %v6289_v58 }
 0x26f   :  { %v780_v4 = vpop.f32.mrb[0].mxu1  ;;  %v851_v9 = vpop.f32.mrb[8].mxu0 }
 0x270   :  { %v5478_v10 = vadd.f32 %v780_v4, %v6459_v2  ;;  %v782_v12 = vpop.f32.mrb[1].mxu1  ;;  %v853_v17 = vpop.f32.mrb[9].mxu0  ;;  %v5494_v30 = vadd.f32 %v851_v9, %v6471_v26 }
 0x271   :  { %v5479_v18 = vadd.f32 %v782_v12, %v6463_v3  ;;  %v5495_v31 = vadd.f32 %v853_v17, %v6475_v27 }
 0x272   :  { %v4117_v19 = vmul.f32 -1.442695, %v5478_v10  ;;  %v4119_v35 = vmul.f32 -1.442695, %v5494_v30 }
 0x273   :  { %v4118_v20 = vmul.f32 -1.442695, %v5479_v18 }
 0x274   :  { %5620 = vpow2.f32 %v4117_v19 }
 0x275   :  { %5622 = vpow2.f32 %v4118_v20 }
 0x276   :  { %5624 = vtanh.f32 %v5495_v31 }
 0x277   :  { %5626 = vpow2.f32 %v4119_v35 }
 0x27e   :  { %v5621_v38 = vpop.eup %5620 }
 0x27f   :  { %v869_v32 = vadd.f32 1.0, %v5621_v38  ;;  %v5623_v39 = vpop.eup %5622 }
 0x280   :  { %v870_v40 = vadd.f32 1.0, %v5623_v39  ;;  %v5625_v45 = vpop.eup %5624 }
 0x281   :  { %5628 = vrcp.f32 %v869_v32  ;;  %v5627_v46 = vpop.eup %5626 }
 0x282   :  { %5630 = vrcp.f32 %v870_v40  ;;  %v871_v63 = vadd.f32 1.0, %v5627_v46 }
 0x284   :  { %5632 = vrcp.f32 %v871_v63 }
 0x28b   :  { %v5629_v47 = vpop.eup %5628 }
 0x28c   :  { %v880_v48 = vmul.f32 %v5629_v47, %v5625_v45  ;;  %v5631_v59 = vpop.eup %5630 }
 0x28d   :  { %v879_v0 = vmul.f32 0.0, %v5631_v59 }
 0x28e   :  { %v5633_v9 = vpop.eup %5632 }
 0x28f   :  { %v6479_v4 = vadd.f32 %v880_v48, %v879_v0 }
 0x291   :  { %5634 = vtanh.f32 %v6479_v4 }
 0x29b   :  { %v5635_v10 = vpop.eup %5634 }
 0x29c   :  { %v6482_v12 = vmul.f32 %v5635_v10, %v5633_v9 }
 0x29e   :  { %955 = vmatmul.mubr.f32.vlgmr.msra.gmra.mrb[2].mxu1 %v6482_v12  ;;  %1026 = vmatmul.mubr.f32.vlgmr.msra.gmra.mrb[10].mxu0 %v6482_v12 }
 0x29f   :  { %4489 = vmatpush1.bf16.msra.mxu1 %v6295_v6  ;;  %4521 = vmatpush1.bf16.msra.mxu0 %v6297_v7 }
 0x2a0   :  { %4491 = vmatprep.subr.bf16.mxu1 %v6300_v13  ;;  %4523 = vmatprep.subr.bf16.mxu0 %v6302_v14 }
 0x2a1   :  { %1131 = vmatprep.mubr.f32.mxu1 %v6098_v57  ;;  %1202 = vmatprep.mubr.f32.mxu0 %v6098_v57 }
 0x2a3   :  { %4493 = vmatpush1.bf16.msra.mxu1 %v6306_v21  ;;  %4525 = vmatpush1.bf16.msra.mxu0 %v6308_v22 }
 0x2a4   :  { %4495 = vmatprep.subr.bf16.mxu1 %v6315_v28  ;;  %4527 = vmatprep.subr.bf16.mxu0 %v6317_v29 }
 0x2a7   :  { %4497 = vmatpush1.bf16.msra.mxu1 %v6324_v36  ;;  %4529 = vmatpush1.bf16.msra.mxu0 %v6326_v37 }
 0x2a8   :  { %4499 = vmatprep.subr.bf16.mxu1 %v6332_v43  ;;  %4531 = vmatprep.subr.bf16.mxu0 %v6334_v44 }
 0x2ab   :  { %4501 = vmatpush1.bf16.msra.mxu1 %v6340_v50  ;;  %4533 = vmatpush1.bf16.msra.mxu0 %v6342_v51 }
 0x2ac   :  { %4503 = vmatprep.subr.bf16.mxu1 %v6349_v61  ;;  %4535 = vmatprep.subr.bf16.mxu0 %v6351_v62 }
 0x2af   :  { %4505 = vmatpush1.bf16.msra.mxu1 %v6356_v5  ;;  %4537 = vmatpush1.bf16.msra.mxu0 %v6358_v8 }
 0x2b0   :  { %4507 = vmatprep.subr.bf16.mxu1 %v6364_v15  ;;  %4539 = vmatprep.subr.bf16.mxu0 %v6366_v16 }
 0x2b3   :  { %4509 = vmatpush1.bf16.msra.mxu1 %v6370_v23  ;;  %4541 = vmatpush1.bf16.msra.mxu0 %v6372_v24 }
 0x2b4   :  { %4511 = vmatprep.subr.bf16.mxu1 %v6380_v33  ;;  %4543 = vmatprep.subr.bf16.mxu0 %v6382_v34 }
 0x2b7   :  { %4513 = vmatpush1.bf16.msra.mxu1 %v6387_v41  ;;  %4545 = vmatpush1.bf16.msra.mxu0 %v6389_v42 }
 0x2b8   :  { %4515 = vmatprep.subr.bf16.mxu1 %v6395_v52  ;;  %4547 = vmatprep.subr.bf16.mxu0 %v6397_v53 }
 0x2bb   :  { %4517 = vmatpush1.bf16.msra.mxu1 %v6401_v54  ;;  %4549 = vmatpush1.bf16.msra.mxu0 %v6403_v56 }
 0x2bc   :  { %4551 = vmatprep.subr.bf16.mxu1 %v6285_v55  ;;  %4583 = vmatprep.subr.bf16.mxu0 %v6289_v58 }
 0x371   :  { %v956_v17 = vpop.f32.mrb[2].mxu1  ;;  %v1027_v18 = vpop.f32.mrb[10].mxu0 }
 0x372   :  { %v5480_v19 = vadd.f32 %v956_v17, %v6459_v2  ;;  %v958_v20 = vpop.f32.mrb[3].mxu1  ;;  %v1029_v30 = vpop.f32.mrb[11].mxu0  ;;  %v5496_v32 = vadd.f32 %v1027_v18, %v6471_v26 }
 0x373   :  { %v5481_v31 = vadd.f32 %v958_v20, %v6463_v3  ;;  %v5497_v39 = vadd.f32 %v1029_v30, %v6475_v27 }
 0x374   :  { %v4120_v35 = vmul.f32 -1.442695, %v5480_v19  ;;  %v4122_v40 = vmul.f32 -1.442695, %v5496_v32 }
 0x375   :  { %v4121_v38 = vmul.f32 -1.442695, %v5481_v31 }
 0x376   :  { %5636 = vpow2.f32 %v4120_v35 }
 0x377   :  { %5638 = vpow2.f32 %v4121_v38 }
 0x378   :  { %5640 = vtanh.f32 %v5497_v39 }
 0x379   :  { %5642 = vpow2.f32 %v4122_v40 }
 0x380   :  { %v5637_v45 = vpop.eup %5636 }
 0x381   :  { %v1045_v46 = vadd.f32 1.0, %v5637_v45  ;;  %v5639_v47 = vpop.eup %5638 }
 0x382   :  { %v1046_v48 = vadd.f32 1.0, %v5639_v47  ;;  %v5641_v59 = vpop.eup %5640 }
 0x383   :  { %5644 = vrcp.f32 %v1045_v46  ;;  %v5643_v63 = vpop.eup %5642 }
 0x384   :  { %5646 = vrcp.f32 %v1046_v48  ;;  %v1047_v17 = vadd.f32 1.0, %v5643_v63 }
 0x386   :  { %5648 = vrcp.f32 %v1047_v17 }
 0x38d   :  { %v5645_v0 = vpop.eup %5644 }
 0x38e   :  { %v1056_v9 = vmul.f32 %v5645_v0, %v5641_v59  ;;  %v5647_v10 = vpop.eup %5646 }
 0x38f   :  { %v1055_v19 = vmul.f32 %v5647_v10, %v6479_v4 }
 0x390   :  { %v5649_v20 = vpop.eup %5648 }
 0x391   :  { %v6525_v18 = vadd.f32 %v1056_v9, %v1055_v19 }
 0x393   :  { %5650 = vtanh.f32 %v6525_v18 }
 0x39d   :  { %v5651_v30 = vpop.eup %5650 }
 0x39e   :  { %v6528_v31 = vmul.f32 %v5651_v30, %v5649_v20 }
 0x3a0   :  { %1132 = vmatmul.mubr.f32.vlgmr.msra.gmra.mrb[4].mxu1 %v6528_v31  ;;  %1203 = vmatmul.mubr.f32.vlgmr.msra.gmra.mrb[12].mxu0 %v6528_v31 }
 0x3a1   :  { %4553 = vmatpush1.bf16.msra.mxu1 %v6295_v6  ;;  %4585 = vmatpush1.bf16.msra.mxu0 %v6297_v7 }
 0x3a2   :  { %4555 = vmatprep.subr.bf16.mxu1 %v6300_v13  ;;  %4587 = vmatprep.subr.bf16.mxu0 %v6302_v14 }
 0x3a3   :  { %1308 = vmatprep.mubr.f32.mxu1 %v6098_v57  ;;  %1379 = vmatprep.mubr.f32.mxu0 %v6098_v57 }
 0x3a5   :  { %4557 = vmatpush1.bf16.msra.mxu1 %v6306_v21  ;;  %4589 = vmatpush1.bf16.msra.mxu0 %v6308_v22 }
 0x3a6   :  { %4559 = vmatprep.subr.bf16.mxu1 %v6315_v28  ;;  %4591 = vmatprep.subr.bf16.mxu0 %v6317_v29 }
 0x3a9   :  { %4561 = vmatpush1.bf16.msra.mxu1 %v6324_v36  ;;  %4593 = vmatpush1.bf16.msra.mxu0 %v6326_v37 }
 0x3aa   :  { %4563 = vmatprep.subr.bf16.mxu1 %v6332_v43  ;;  %4595 = vmatprep.subr.bf16.mxu0 %v6334_v44 }
 0x3ad   :  { %4565 = vmatpush1.bf16.msra.mxu1 %v6340_v50  ;;  %4597 = vmatpush1.bf16.msra.mxu0 %v6342_v51 }
 0x3ae   :  { %4567 = vmatprep.subr.bf16.mxu1 %v6349_v61  ;;  %4599 = vmatprep.subr.bf16.mxu0 %v6351_v62 }
 0x3b1   :  { %4569 = vmatpush1.bf16.msra.mxu1 %v6356_v5  ;;  %4601 = vmatpush1.bf16.msra.mxu0 %v6358_v8 }
 0x3b2   :  { %4571 = vmatprep.subr.bf16.mxu1 %v6364_v15  ;;  %4603 = vmatprep.subr.bf16.mxu0 %v6366_v16 }
 0x3b5   :  { %4573 = vmatpush1.bf16.msra.mxu1 %v6370_v23  ;;  %4605 = vmatpush1.bf16.msra.mxu0 %v6372_v24 }
 0x3b6   :  { %4575 = vmatprep.subr.bf16.mxu1 %v6380_v33  ;;  %4607 = vmatprep.subr.bf16.mxu0 %v6382_v34 }
 0x3b9   :  { %4577 = vmatpush1.bf16.msra.mxu1 %v6387_v41  ;;  %4609 = vmatpush1.bf16.msra.mxu0 %v6389_v42 }
 0x3ba   :  { %4579 = vmatprep.subr.bf16.mxu1 %v6395_v52  ;;  %4611 = vmatprep.subr.bf16.mxu0 %v6397_v53 }
 0x3bd   :  { %4581 = vmatpush1.bf16.msra.mxu1 %v6401_v54  ;;  %4613 = vmatpush1.bf16.msra.mxu0 %v6403_v56 }
 0x3be   :  { %4615 = vmatprep.subr.bf16.mxu1 %v6285_v55  ;;  %4647 = vmatprep.subr.bf16.mxu0 %v6289_v58 }
 0x473   :  { %v1133_v4 = vpop.f32.mrb[4].mxu1  ;;  %v1204_v35 = vpop.f32.mrb[12].mxu0 }
 0x474   :  { %v5482_v38 = vadd.f32 %v1133_v4, %v6459_v2  ;;  %v1135_v32 = vpop.f32.mrb[5].mxu1  ;;  %v1206_v39 = vpop.f32.mrb[13].mxu0  ;;  %v5498_v47 = vadd.f32 %v1204_v35, %v6471_v26 }
 0x475   :  { %v5483_v40 = vadd.f32 %v1135_v32, %v6463_v3  ;;  %v5499_v48 = vadd.f32 %v1206_v39, %v6475_v27 }
 0x476   :  { %v4123_v45 = vmul.f32 -1.442695, %v5482_v38  ;;  %v4125_v59 = vmul.f32 -1.442695, %v5498_v47 }
 0x477   :  { %v4124_v46 = vmul.f32 -1.442695, %v5483_v40 }
 0x478   :  { %5652 = vpow2.f32 %v4123_v45 }
 0x479   :  { %5654 = vpow2.f32 %v4124_v46 }
 0x47a   :  { %5656 = vtanh.f32 %v5499_v48 }
 0x47b   :  { %5658 = vpow2.f32 %v4125_v59 }
 0x482   :  { %v5653_v63 = vpop.eup %5652 }
 0x483   :  { %v1222_v0 = vadd.f32 1.0, %v5653_v63  ;;  %v5655_v9 = vpop.eup %5654 }
 0x484   :  { %v1223_v10 = vadd.f32 1.0, %v5655_v9  ;;  %v5657_v17 = vpop.eup %5656 }
 0x485   :  { %5660 = vrcp.f32 %v1222_v0  ;;  %v5659_v19 = vpop.eup %5658 }
 0x486   :  { %5662 = vrcp.f32 %v1223_v10  ;;  %v1224_v38 = vadd.f32 1.0, %v5659_v19 }
 0x488   :  { %5664 = vrcp.f32 %v1224_v38 }
 0x48f   :  { %v5661_v20 = vpop.eup %5660 }
 0x490   :  { %v1233_v30 = vmul.f32 %v5661_v20, %v5657_v17  ;;  %v5663_v4 = vpop.eup %5662 }
 0x491   :  { %v1232_v32 = vmul.f32 %v5663_v4, %v6525_v18 }
 0x492   :  { %v5665_v39 = vpop.eup %5664 }
 0x493   :  { %v6571_v35 = vadd.f32 %v1233_v30, %v1232_v32 }
 0x495   :  { %5666 = vtanh.f32 %v6571_v35 }
 0x49f   :  { %v5667_v40 = vpop.eup %5666 }
 0x4a0   :  { %v6574_v45 = vmul.f32 %v5667_v40, %v5665_v39 }
 0x4a2   :  { %1309 = vmatmul.mubr.f32.vlgmr.msra.gmra.mrb[6].mxu1 %v6574_v45  ;;  %1380 = vmatmul.mubr.f32.vlgmr.msra.gmra.mrb[14].mxu0 %v6574_v45 }
 0x4a3   :  { %4617 = vmatpush1.bf16.msra.mxu1 %v6295_v6  ;;  %4649 = vmatpush1.bf16.msra.mxu0 %v6297_v7 }
 0x4a4   :  { %4619 = vmatprep.subr.bf16.mxu1 %v6300_v13  ;;  %4651 = vmatprep.subr.bf16.mxu0 %v6302_v14 }
 0x4a5   :  { %1485 = vmatprep.mubr.f32.mxu1 %v6098_v57  ;;  %1556 = vmatprep.mubr.f32.mxu0 %v6098_v57 }
 0x4a7   :  { %4621 = vmatpush1.bf16.msra.mxu1 %v6306_v21  ;;  %4653 = vmatpush1.bf16.msra.mxu0 %v6308_v22 }
 0x4a8   :  { %4623 = vmatprep.subr.bf16.mxu1 %v6315_v28  ;;  %4655 = vmatprep.subr.bf16.mxu0 %v6317_v29 }
 0x4ab   :  { %4625 = vmatpush1.bf16.msra.mxu1 %v6324_v36  ;;  %4657 = vmatpush1.bf16.msra.mxu0 %v6326_v37 }
 0x4ac   :  { %4627 = vmatprep.subr.bf16.mxu1 %v6332_v43  ;;  %4659 = vmatprep.subr.bf16.mxu0 %v6334_v44 }
 0x4af   :  { %4629 = vmatpush1.bf16.msra.mxu1 %v6340_v50  ;;  %4661 = vmatpush1.bf16.msra.mxu0 %v6342_v51 }
 0x4b0   :  { %4631 = vmatprep.subr.bf16.mxu1 %v6349_v61  ;;  %4663 = vmatprep.subr.bf16.mxu0 %v6351_v62 }
 0x4b3   :  { %4633 = vmatpush1.bf16.msra.mxu1 %v6356_v5  ;;  %4665 = vmatpush1.bf16.msra.mxu0 %v6358_v8 }
 0x4b4   :  { %4635 = vmatprep.subr.bf16.mxu1 %v6364_v15  ;;  %4667 = vmatprep.subr.bf16.mxu0 %v6366_v16 }
 0x4b7   :  { %4637 = vmatpush1.bf16.msra.mxu1 %v6370_v23  ;;  %4669 = vmatpush1.bf16.msra.mxu0 %v6372_v24 }
 0x4b8   :  { %4639 = vmatprep.subr.bf16.mxu1 %v6380_v33  ;;  %4671 = vmatprep.subr.bf16.mxu0 %v6382_v34 }
 0x4bb   :  { %4641 = vmatpush1.bf16.msra.mxu1 %v6387_v41  ;;  %4673 = vmatpush1.bf16.msra.mxu0 %v6389_v42 }
 0x4bc   :  { %4643 = vmatprep.subr.bf16.mxu1 %v6395_v52  ;;  %4675 = vmatprep.subr.bf16.mxu0 %v6397_v53 }
 0x4bf   :  { %4645 = vmatpush1.bf16.msra.mxu1 %v6401_v54  ;;  %4677 = vmatpush1.bf16.msra.mxu0 %v6403_v56 }
 0x4c0   :  { %4679 = vmatprep.subr.bf16.mxu1 %v6285_v55  ;;  %4711 = vmatprep.subr.bf16.mxu0 %v6289_v58 }
 0x575   :  { %v1310_v18 = vpop.f32.mrb[6].mxu1  ;;  %v1381_v46 = vpop.f32.mrb[14].mxu0 }
 0x576   :  { %v5484_v47 = vadd.f32 %v1310_v18, %v6459_v2  ;;  %v1312_v48 = vpop.f32.mrb[7].mxu1  ;;  %v1383_v59 = vpop.f32.mrb[15].mxu0  ;;  %v5500_v10 = vadd.f32 %v1381_v46, %v6471_v26 }
 0x577   :  { %v5485_v63 = vadd.f32 %v1312_v48, %v6463_v3  ;;  %v5501_v17 = vadd.f32 %v1383_v59, %v6475_v27 }
 0x578   :  { %v4126_v0 = vmul.f32 -1.442695, %v5484_v47  ;;  %v4128_v19 = vmul.f32 -1.442695, %v5500_v10 }
 0x579   :  { %v4127_v9 = vmul.f32 -1.442695, %v5485_v63 }
 0x57a   :  { %5668 = vpow2.f32 %v4126_v0 }
 0x57b   :  { %5670 = vpow2.f32 %v4127_v9 }
 0x57c   :  { %5672 = vtanh.f32 %v5501_v17 }
 0x57d   :  { %5674 = vpow2.f32 %v4128_v19 }
 0x584   :  { %v5669_v20 = vpop.eup %5668 }
 0x585   :  { %v1399_v30 = vadd.f32 1.0, %v5669_v20  ;;  %v5671_v4 = vpop.eup %5670 }
 0x586   :  { %v1400_v38 = vadd.f32 1.0, %v5671_v4  ;;  %v5673_v32 = vpop.eup %5672 }
 0x587   :  { %5676 = vrcp.f32 %v1399_v30  ;;  %v5675_v39 = vpop.eup %5674 }
 0x588   :  { %5678 = vrcp.f32 %v1400_v38  ;;  %v1401_v48 = vadd.f32 1.0, %v5675_v39 }
 0x58a   :  { %5680 = vrcp.f32 %v1401_v48 }
 0x591   :  { %v5677_v40 = vpop.eup %5676 }
 0x592   :  { %v1410_v18 = vmul.f32 %v5677_v40, %v5673_v32  ;;  %v5679_v47 = vpop.eup %5678 }
 0x593   :  { %v1409_v63 = vmul.f32 %v5679_v47, %v6571_v35 }
 0x594   :  { %v5681_v59 = vpop.eup %5680 }
 0x595   :  { %v6617_v46 = vadd.f32 %v1410_v18, %v1409_v63 }
 0x597   :  { %5682 = vtanh.f32 %v6617_v46 }
 0x5a1   :  { %v5683_v0 = vpop.eup %5682 }
 0x5a2   :  { %v6620_v9 = vmul.f32 %v5683_v0, %v5681_v59 }
 0x5a4   :  { %1486 = vmatmul.mubr.f32.vlgmr.msra.gmra.mrb[8].mxu1 %v6620_v9  ;;  %1557 = vmatmul.mubr.f32.vlgmr.msra.gmra.mrb[16].mxu0 %v6620_v9 }
 0x5a5   :  { %4681 = vmatpush1.bf16.msra.mxu1 %v6295_v6  ;;  %4713 = vmatpush1.bf16.msra.mxu0 %v6297_v7 }
 0x5a6   :  { %4683 = vmatprep.subr.bf16.mxu1 %v6300_v13  ;;  %4715 = vmatprep.subr.bf16.mxu0 %v6302_v14 }
 0x5a7   :  { %1662 = vmatprep.mubr.f32.mxu1 %v6098_v57  ;;  %1733 = vmatprep.mubr.f32.mxu0 %v6098_v57 }
 0x5a9   :  { %4685 = vmatpush1.bf16.msra.mxu1 %v6306_v21  ;;  %4717 = vmatpush1.bf16.msra.mxu0 %v6308_v22 }
 0x5aa   :  { %4687 = vmatprep.subr.bf16.mxu1 %v6315_v28  ;;  %4719 = vmatprep.subr.bf16.mxu0 %v6317_v29 }
 0x5ad   :  { %4689 = vmatpush1.bf16.msra.mxu1 %v6324_v36  ;;  %4721 = vmatpush1.bf16.msra.mxu0 %v6326_v37 }
 0x5ae   :  { %4691 = vmatprep.subr.bf16.mxu1 %v6332_v43  ;;  %4723 = vmatprep.subr.bf16.mxu0 %v6334_v44 }
 0x5b1   :  { %4693 = vmatpush1.bf16.msra.mxu1 %v6340_v50  ;;  %4725 = vmatpush1.bf16.msra.mxu0 %v6342_v51 }
 0x5b2   :  { %4695 = vmatprep.subr.bf16.mxu1 %v6349_v61  ;;  %4727 = vmatprep.subr.bf16.mxu0 %v6351_v62 }
 0x5b5   :  { %4697 = vmatpush1.bf16.msra.mxu1 %v6356_v5  ;;  %4729 = vmatpush1.bf16.msra.mxu0 %v6358_v8 }
 0x5b6   :  { %4699 = vmatprep.subr.bf16.mxu1 %v6364_v15  ;;  %4731 = vmatprep.subr.bf16.mxu0 %v6366_v16 }
 0x5b9   :  { %4701 = vmatpush1.bf16.msra.mxu1 %v6370_v23  ;;  %4733 = vmatpush1.bf16.msra.mxu0 %v6372_v24 }
 0x5ba   :  { %4703 = vmatprep.subr.bf16.mxu1 %v6380_v33  ;;  %4735 = vmatprep.subr.bf16.mxu0 %v6382_v34 }
 0x5bd   :  { %4705 = vmatpush1.bf16.msra.mxu1 %v6387_v41  ;;  %4737 = vmatpush1.bf16.msra.mxu0 %v6389_v42 }
 0x5be   :  { %4707 = vmatprep.subr.bf16.mxu1 %v6395_v52  ;;  %4739 = vmatprep.subr.bf16.mxu0 %v6397_v53 }
 0x5c1   :  { %4709 = vmatpush1.bf16.msra.mxu1 %v6401_v54  ;;  %4741 = vmatpush1.bf16.msra.mxu0 %v6403_v56 }
 0x5c2   :  { %4743 = vmatprep.subr.bf16.mxu1 %v6285_v55  ;;  %4775 = vmatprep.subr.bf16.mxu0 %v6289_v58 }
 0x677   :  { %v1487_v35 = vpop.f32.mrb[8].mxu1  ;;  %v1558_v10 = vpop.f32.mrb[16].mxu0 }
 0x678   :  { %v5486_v17 = vadd.f32 %v1487_v35, %v6459_v2  ;;  %v1489_v19 = vpop.f32.mrb[9].mxu1  ;;  %v1560_v20 = vpop.f32.mrb[17].mxu0  ;;  %v5502_v32 = vadd.f32 %v1558_v10, %v6471_v26 }
 0x679   :  { %v5487_v30 = vadd.f32 %v1489_v19, %v6463_v3  ;;  %v5503_v39 = vadd.f32 %v1560_v20, %v6475_v27 }
 0x67a   :  { %v4129_v4 = vmul.f32 -1.442695, %v5486_v17  ;;  %v4131_v40 = vmul.f32 -1.442695, %v5502_v32 }
 0x67b   :  { %v4130_v38 = vmul.f32 -1.442695, %v5487_v30 }
 0x67c   :  { %5684 = vpow2.f32 %v4129_v4 }
 0x67d   :  { %5686 = vpow2.f32 %v4130_v38 }
 0x67e   :  { %5688 = vtanh.f32 %v5503_v39 }
 0x67f   :  { %5690 = vpow2.f32 %v4131_v40 }
 0x686   :  { %v5685_v18 = vpop.eup %5684 }
 0x687   :  { %v1576_v47 = vadd.f32 1.0, %v5685_v18  ;;  %v5687_v48 = vpop.eup %5686 }
 0x688   :  { %v1577_v63 = vadd.f32 1.0, %v5687_v48  ;;  %v5689_v59 = vpop.eup %5688 }
 0x689   :  { %5692 = vrcp.f32 %v1576_v47  ;;  %v5691_v0 = vpop.eup %5690 }
 0x68a   :  { %5694 = vrcp.f32 %v1577_v63  ;;  %v1578_v30 = vadd.f32 1.0, %v5691_v0 }
 0x68c   :  { %5696 = vrcp.f32 %v1578_v30 }
 0x693   :  { %v5693_v35 = vpop.eup %5692 }
 0x694   :  { %v1587_v17 = vmul.f32 %v5693_v35, %v5689_v59  ;;  %v5695_v19 = vpop.eup %5694 }
 0x695   :  { %v1586_v4 = vmul.f32 %v5695_v19, %v6617_v46 }
 0x696   :  { %v5697_v20 = vpop.eup %5696 }
 0x697   :  { %v6663_v10 = vadd.f32 %v1587_v17, %v1586_v4 }
 0x699   :  { %5698 = vtanh.f32 %v6663_v10 }
 0x6a3   :  { %v5699_v38 = vpop.eup %5698 }
 0x6a4   :  { %v6666_v32 = vmul.f32 %v5699_v38, %v5697_v20 }
 0x6a6   :  { %1663 = vmatmul.mubr.f32.vlgmr.msra.gmra.mrb[10].mxu1 %v6666_v32  ;;  %1734 = vmatmul.mubr.f32.vlgmr.msra.gmra.mrb[18].mxu0 %v6666_v32 }
 0x6a7   :  { %4745 = vmatpush1.bf16.msra.mxu1 %v6295_v6  ;;  %4777 = vmatpush1.bf16.msra.mxu0 %v6297_v7 }
 0x6a8   :  { %4747 = vmatprep.subr.bf16.mxu1 %v6300_v13  ;;  %4779 = vmatprep.subr.bf16.mxu0 %v6302_v14 }
 0x6a9   :  { %1839 = vmatprep.mubr.f32.mxu1 %v6098_v57  ;;  %1910 = vmatprep.mubr.f32.mxu0 %v6098_v57 }
 0x6ab   :  { %4749 = vmatpush1.bf16.msra.mxu1 %v6306_v21  ;;  %4781 = vmatpush1.bf16.msra.mxu0 %v6308_v22 }
 0x6ac   :  { %4751 = vmatprep.subr.bf16.mxu1 %v6315_v28  ;;  %4783 = vmatprep.subr.bf16.mxu0 %v6317_v29 }
 0x6af   :  { %4753 = vmatpush1.bf16.msra.mxu1 %v6324_v36  ;;  %4785 = vmatpush1.bf16.msra.mxu0 %v6326_v37 }
 0x6b0   :  { %4755 = vmatprep.subr.bf16.mxu1 %v6332_v43  ;;  %4787 = vmatprep.subr.bf16.mxu0 %v6334_v44 }
 0x6b3   :  { %4757 = vmatpush1.bf16.msra.mxu1 %v6340_v50  ;;  %4789 = vmatpush1.bf16.msra.mxu0 %v6342_v51 }
 0x6b4   :  { %4759 = vmatprep.subr.bf16.mxu1 %v6349_v61  ;;  %4791 = vmatprep.subr.bf16.mxu0 %v6351_v62 }
 0x6b7   :  { %4761 = vmatpush1.bf16.msra.mxu1 %v6356_v5  ;;  %4793 = vmatpush1.bf16.msra.mxu0 %v6358_v8 }
 0x6b8   :  { %4763 = vmatprep.subr.bf16.mxu1 %v6364_v15  ;;  %4795 = vmatprep.subr.bf16.mxu0 %v6366_v16 }
 0x6bb   :  { %4765 = vmatpush1.bf16.msra.mxu1 %v6370_v23  ;;  %4797 = vmatpush1.bf16.msra.mxu0 %v6372_v24 }
 0x6bc   :  { %4767 = vmatprep.subr.bf16.mxu1 %v6380_v33  ;;  %4799 = vmatprep.subr.bf16.mxu0 %v6382_v34 }
 0x6bf   :  { %4769 = vmatpush1.bf16.msra.mxu1 %v6387_v41  ;;  %4801 = vmatpush1.bf16.msra.mxu0 %v6389_v42 }
 0x6c0   :  { %4771 = vmatprep.subr.bf16.mxu1 %v6395_v52  ;;  %4803 = vmatprep.subr.bf16.mxu0 %v6397_v53 }
 0x6c3   :  { %4773 = vmatpush1.bf16.msra.mxu1 %v6401_v54  ;;  %4805 = vmatpush1.bf16.msra.mxu0 %v6403_v56 }
 0x6c4   :  { %4807 = vmatprep.subr.bf16.mxu1 %v6285_v55  ;;  %4839 = vmatprep.subr.bf16.mxu0 %v6289_v58 }
 0x779   :  { %v1664_v46 = vpop.f32.mrb[10].mxu1  ;;  %v1735_v39 = vpop.f32.mrb[18].mxu0 }
 0x77a   :  { %v5488_v40 = vadd.f32 %v1664_v46, %v6459_v2  ;;  %v1666_v18 = vpop.f32.mrb[11].mxu1  ;;  %v1737_v47 = vpop.f32.mrb[19].mxu0  ;;  %v5504_v0 = vadd.f32 %v1735_v39, %v6471_v26 }
 0x77b   :  { %v5489_v48 = vadd.f32 %v1666_v18, %v6463_v3  ;;  %v5505_v35 = vadd.f32 %v1737_v47, %v6475_v27 }
 0x77c   :  { %v4132_v63 = vmul.f32 -1.442695, %v5488_v40  ;;  %v4134_v17 = vmul.f32 -1.442695, %v5504_v0  ;;  %v2200_v0 = vld [vmem:[#allocation10 + $0x210] sm:$0xff] }
 0x77d   :  { %v4133_v59 = vmul.f32 -1.442695, %v5489_v48 }
 0x77e   :  { %5700 = vpow2.f32 %v4132_v63 }
 0x77f   :  { %5702 = vpow2.f32 %v4133_v59 }
 0x780   :  { %5704 = vtanh.f32 %v5505_v35  ;;  %v2204_v35 = vld [vmem:[#allocation10 + $0x230] sm:$0xff] }
 0x781   :  { %5706 = vpow2.f32 %v4134_v17  ;;  %v2207_v17 = vld [vmem:[#allocation10 + $0x248] sm:$0xff] }
 0x788   :  { %v5701_v55 = vpop.eup %5700 }
 0x789   :  { %v1753_v19 = vadd.f32 1.0, %v5701_v55  ;;  %v5703_v58 = vpop.eup %5702  ;;  %v2211_v55 = vld [vmem:[#allocation10 + $0x268] sm:$0xff] }
 0x78a   :  { %v1754_v30 = vadd.f32 1.0, %v5703_v58  ;;  %v5705_v4 = vpop.eup %5704  ;;  %v2213_v58 = vld [vmem:[#allocation10 + $0x278] sm:$0xff] }
 0x78b   :  { %5708 = vrcp.f32 %v1753_v19  ;;  %v5707_v20 = vpop.eup %5706  ;;  %v2209_v19 = vld [vmem:[#allocation10 + $0x258] sm:$0xff] }
 0x78c   :  { %5710 = vrcp.f32 %v1754_v30  ;;  %v1755_v18 = vadd.f32 1.0, %v5707_v20 }
 0x78e   :  { %5712 = vrcp.f32 %v1755_v18 }
 0x795   :  { %v5709_v38 = vpop.eup %5708 }
 0x796   :  { %v1764_v46 = vmul.f32 %v5709_v38, %v5705_v4  ;;  %v5711_v40 = vpop.eup %5710  ;;  %v4904_v38 = vpack.c.bf16 %v2204_v35, %v2200_v0  ;;  %v2230_v0 = vld [vmem:[#allocation10 + $0x300] sm:$0xff] }
 0x797   :  { %v1763_v48 = vmul.f32 %v5711_v40, %v6663_v10  ;;  %v2202_v10 = vld [vmem:[#allocation10 + $0x220] sm:$0xff] }
 0x798   :  { %v5713_v47 = vpop.eup %5712  ;;  %v2210_v40 = vld [vmem:[#allocation10 + $0x260] sm:$0xff] }
 0x799   :  { %v6709_v39 = vadd.f32 %v1764_v46, %v1763_v48  ;;  %v2206_v46 = vld [vmem:[#allocation10 + $0x240] sm:$0xff]  ;;  %v4874_v48 = vpack.c.bf16 %v2211_v55, %v2207_v17 }
 0x79a   :  { %v2234_v35 = vld [vmem:[#allocation10 + $0x320] sm:$0xff] }
 0x79b   :  { %5714 = vtanh.f32 %v6709_v39 }
 0x7a5   :  { %v5715_v63 = vpop.eup %5714 }
 0x7a6   :  { %v6712_v59 = vmul.f32 %v5715_v63, %v5713_v47  ;;  %v2208_v47 = vld [vmem:[#allocation10 + $0x250] sm:$0xff] }
 0x7a7   :  { %v2212_v63 = vld [vmem:[#allocation10 + $0x270] sm:$0xff] }
 0x7a8   :  { %1840 = vmatmul.mubr.f32.vlgmr.msra.gmra.mrb[12].mxu1 %v6712_v59  ;;  %1911 = vmatmul.mubr.f32.vlgmr.msra.gmra.mrb[20].mxu0 %v6712_v59 }
 0x7a9   :  { %4809 = vmatpush1.bf16.msra.mxu1 %v6295_v6  ;;  %4841 = vmatpush1.bf16.msra.mxu0 %v6297_v7  ;;  %v2199_v6 = vld [vmem:[#allocation10 + $0x208] sm:$0xff] }
 0x7aa   :  { %4811 = vmatprep.subr.bf16.mxu1 %v6300_v13  ;;  %4843 = vmatprep.subr.bf16.mxu0 %v6302_v14  ;;  %v2203_v7 = vld [vmem:[#allocation10 + $0x228] sm:$0xff]  ;;  %v2201_v13 = vld [vmem:[#allocation10 + $0x218] sm:$0xff] }
 0x7ab   :  { %2016 = vmatprep.mubr.f32.mxu1 %v6098_v57  ;;  %2087 = vmatprep.mubr.f32.mxu0 %v6098_v57  ;;  %v4870_v14 = vpack.c.bf16 %v2203_v7, %v2199_v6  ;;  %v2215_v6 = vld [vmem:[#allocation10 + $0x288] sm:$0xff] }
 0x7ac   :  { %v2219_v7 = vld [vmem:[#allocation10 + $0x2a8] sm:$0xff] }
 0x7ad   :  { %4813 = vmatpush1.bf16.msra.mxu1 %v6306_v21  ;;  %4845 = vmatpush1.bf16.msra.mxu0 %v6308_v22  ;;  %v2205_v21 = vld [vmem:[#allocation10 + $0x238] sm:$0xff] }
 0x7ae   :  { %4815 = vmatprep.subr.bf16.mxu1 %v6315_v28  ;;  %4847 = vmatprep.subr.bf16.mxu0 %v6317_v29  ;;  %v4902_v22 = vpack.c.bf16 %v2205_v21, %v2201_v13  ;;  %v2217_v13 = vld [vmem:[#allocation10 + $0x298] sm:$0xff]  ;;  %v4876_v21 = vpack.c.bf16 %v2210_v40, %v2206_v46  ;;  %v4888_v46 = vpack.c.bf16 %v2234_v35, %v2230_v0  ;;  %v2127_v35 = vld [vmem:[#allocation12 + $0x210] sm:$0xff] }
 0x7b1   :  { %4817 = vmatpush1.bf16.msra.mxu1 %v6324_v36  ;;  %4849 = vmatpush1.bf16.msra.mxu0 %v6326_v37 }
 0x7b2   :  { %4819 = vmatprep.subr.bf16.mxu1 %v6332_v43  ;;  %4851 = vmatprep.subr.bf16.mxu0 %v6334_v44 }
 0x7b5   :  { %4821 = vmatpush1.bf16.msra.mxu1 %v6340_v50  ;;  %4853 = vmatpush1.bf16.msra.mxu0 %v6342_v51 }
 0x7b6   :  { %4823 = vmatprep.subr.bf16.mxu1 %v6349_v61  ;;  %4855 = vmatprep.subr.bf16.mxu0 %v6351_v62 }
 0x7b9   :  { %4825 = vmatpush1.bf16.msra.mxu1 %v6356_v5  ;;  %4857 = vmatpush1.bf16.msra.mxu0 %v6358_v8 }
 0x7ba   :  { %4827 = vmatprep.subr.bf16.mxu1 %v6364_v15  ;;  %4859 = vmatprep.subr.bf16.mxu0 %v6366_v16 }
 0x7bd   :  { %4829 = vmatpush1.bf16.msra.mxu1 %v6370_v23  ;;  %4861 = vmatpush1.bf16.msra.mxu0 %v6372_v24 }
 0x7be   :  { %4831 = vmatprep.subr.bf16.mxu1 %v6380_v33  ;;  %4863 = vmatprep.subr.bf16.mxu0 %v6382_v34 }
 0x7c1   :  { %4833 = vmatpush1.bf16.msra.mxu1 %v6387_v41  ;;  %4865 = vmatpush1.bf16.msra.mxu0 %v6389_v42 }
 0x7c2   :  { %4835 = vmatprep.subr.bf16.mxu1 %v6395_v52  ;;  %4867 = vmatprep.subr.bf16.mxu0 %v6397_v53 }
 0x7c5   :  { %4837 = vmatpush1.bf16.msra.mxu1 %v6401_v54  ;;  %4869 = vmatpush1.bf16.msra.mxu0 %v6403_v56  ;;  %v2198_v56 = vld [vmem:[#allocation10 + $0x200] sm:$0xff] }
 0x7c6   :  { %4871 = vmatprep.subr.bf16.mxu1 %v4870_v14  ;;  %4903 = vmatprep.subr.bf16.mxu0 %v4902_v22  ;;  %v4872_v20 = vpack.c.bf16 %v2202_v10, %v2198_v56  ;;  %v2221_v14 = vld [vmem:[#allocation10 + $0x2b8] sm:$0xff]  ;;  %v4908_v22 = vpack.c.bf16 %v2212_v63, %v2208_v47 }
 0x87b   :  { %v1841_v28 = vpop.f32.mrb[12].mxu1  ;;  %v1912_v29 = vpop.f32.mrb[20].mxu0 }
 0x87c   :  { %v5490_v36 = vadd.f32 %v1841_v28, %v6459_v2  ;;  %v1843_v37 = vpop.f32.mrb[13].mxu1  ;;  %v1914_v43 = vpop.f32.mrb[21].mxu0  ;;  %v5506_v61 = vadd.f32 %v1912_v29, %v6471_v26  ;;  %v2214_v28 = vld [vmem:[#allocation10 + $0x280] sm:$0xff] }
 0x87d   :  { %v5491_v44 = vadd.f32 %v1843_v37, %v6463_v3  ;;  %v5507_v62 = vadd.f32 %v1914_v43, %v6475_v27  ;;  %v2218_v29 = vld [vmem:[#allocation10 + $0x2a0] sm:$0xff]  ;;  %v4910_v37 = vpack.c.bf16 %v2221_v14, %v2217_v13  ;;  %v2216_v43 = vld [vmem:[#allocation10 + $0x290] sm:$0xff]  ;;  %v2247_v13 = vld [vmem:[#allocation10 + $0x388] sm:$0xff] }
 0x87e   :  { %v4135_v50 = vmul.f32 -1.442695, %v5490_v36  ;;  %v4137_v5 = vmul.f32 -1.442695, %v5506_v61  ;;  %v4878_v36 = vpack.c.bf16 %v2219_v7, %v2215_v6  ;;  %v2225_v61 = vld [vmem:[#allocation10 + $0x2d8] sm:$0xff]  ;;  %v2240_v6 = vld [vmem:[#allocation10 + $0x350] sm:$0xff] }
 0x87f   :  { %v4136_v51 = vmul.f32 -1.442695, %v5491_v44  ;;  %v2220_v44 = vld [vmem:[#allocation10 + $0x2b0] sm:$0xff]  ;;  %v2251_v14 = vld [vmem:[#allocation10 + $0x3a8] sm:$0xff] }
 0x880   :  { %5716 = vpow2.f32 %v4135_v50  ;;  %v2223_v50 = vld [vmem:[#allocation10 + $0x2c8] sm:$0xff]  ;;  %v2244_v7 = vld [vmem:[#allocation10 + $0x370] sm:$0xff] }
 0x881   :  { %5718 = vpow2.f32 %v4136_v51  ;;  %v2227_v51 = vld [vmem:[#allocation10 + $0x2e8] sm:$0xff] }
 0x882   :  { %5720 = vtanh.f32 %v5507_v62  ;;  %v2229_v62 = vld [vmem:[#allocation10 + $0x2f8] sm:$0xff] }
 0x883   :  { %5722 = vpow2.f32 %v4137_v5  ;;  %v4880_v5 = vpack.c.bf16 %v2218_v29, %v2214_v28  ;;  %v4924_v29 = vpack.c.bf16 %v2244_v7, %v2240_v6  ;;  %v2146_v6 = vld [vmem:[#allocation12 + $0x2a8] sm:$0xff]  ;;  %v2144_v7 = vld [vmem:[#allocation12 + $0x298] sm:$0xff] }
 0x88a   :  { %v5717_v8 = vpop.eup %5716 }
 0x88b   :  { %v1930_v15 = vadd.f32 1.0, %v5717_v8  ;;  %v5719_v16 = vpop.eup %5718  ;;  %v4912_v8 = vpack.c.bf16 %v2220_v44, %v2216_v43  ;;  %v4894_v43 = vpack.c.bf16 %v2251_v14, %v2247_v13  ;;  %v2141_v14 = vld [vmem:[#allocation12 + $0x280] sm:$0xff] }
 0x88c   :  { %v1931_v23 = vadd.f32 1.0, %v5719_v16  ;;  %v5721_v24 = vpop.eup %5720  ;;  %v2226_v16 = vld [vmem:[#allocation10 + $0x2e0] sm:$0xff] }
 0x88d   :  { %5724 = vrcp.f32 %v1930_v15  ;;  %v5723_v33 = vpop.eup %5722  ;;  %v2222_v15 = vld [vmem:[#allocation10 + $0x2c0] sm:$0xff] }
 0x88e   :  { %5726 = vrcp.f32 %v1931_v23  ;;  %v1932_v52 = vadd.f32 1.0, %v5723_v33  ;;  %v4882_v23 = vpack.c.bf16 %v2227_v51, %v2223_v50  ;;  %v2224_v33 = vld [vmem:[#allocation10 + $0x2d0] sm:$0xff]  ;;  %v4884_v56 = vpack.c.bf16 %v2226_v16, %v2222_v15 }
 0x88f   :  { %v2248_v50 = vld [vmem:[#allocation10 + $0x390] sm:$0xff] }
 0x890   :  { %5728 = vrcp.f32 %v1932_v52  ;;  %v2233_v52 = vld [vmem:[#allocation10 + $0x318] sm:$0xff]  ;;  %v2252_v51 = vld [vmem:[#allocation10 + $0x3b0] sm:$0xff] }
 0x891   :  { %v4928_v16 = vpack.c.bf16 %v2252_v51, %v2248_v50  ;;  %v2154_v50 = vld [vmem:[#allocation12 + $0x2e8] sm:$0xff]  ;;  %v2152_v51 = vld [vmem:[#allocation12 + $0x2d8] sm:$0xff] }
 0x897   :  { %v5725_v34 = vpop.eup %5724 }
 0x898   :  { %v1941_v41 = vmul.f32 %v5725_v34, %v5721_v24  ;;  %v5727_v42 = vpop.eup %5726  ;;  %v4914_v24 = vpack.c.bf16 %v2229_v62, %v2225_v61  ;;  %v2228_v34 = vld [vmem:[#allocation10 + $0x2f0] sm:$0xff]  ;;  %v2255_v61 = vld [vmem:[#allocation10 + $0x3c8] sm:$0xff] }
 0x899   :  { %v1940_v53 = vmul.f32 %v5727_v42, %v6709_v39  ;;  %v4906_v39 = vpack.c.bf16 %v2213_v58, %v2209_v19  ;;  %v2235_v42 = vld [vmem:[#allocation10 + $0x328] sm:$0xff]  ;;  %v4916_v10 = vpack.c.bf16 %v2228_v34, %v2224_v33  ;;  %v2232_v19 = vld [vmem:[#allocation10 + $0x310] sm:$0xff]  ;;  %v2258_v34 = vld [vmem:[#allocation10 + $0x3e0] sm:$0xff] }
 0x89a   :  { %v5729_v30 = vpop.eup %5728  ;;  %v2236_v58 = vld [vmem:[#allocation10 + $0x330] sm:$0xff]  ;;  %v2259_v62 = vld [vmem:[#allocation10 + $0x3e8] sm:$0xff] }
 0x89b   :  { %v6753_v54 = vadd.f32 %v1941_v41, %v1940_v53  ;;  %v2231_v41 = vld [vmem:[#allocation10 + $0x308] sm:$0xff]  ;;  %v2237_v53 = vld [vmem:[#allocation10 + $0x338] sm:$0xff]  ;;  %v4920_v40 = vpack.c.bf16 %v2236_v58, %v2232_v19 }
 0x89c   :  { %v4886_v17 = vpack.c.bf16 %v2235_v42, %v2231_v41  ;;  %v4918_v55 = vpack.c.bf16 %v2237_v53, %v2233_v52  ;;  %v2256_v41 = vld [vmem:[#allocation10 + $0x3d0] sm:$0xff]  ;;  %v2138_v19 = vld [vmem:[#allocation12 + $0x268] sm:$0xff]  ;;  %v2136_v58 = vld [vmem:[#allocation12 + $0x258] sm:$0xff] }
 0x89d   :  { %5730 = vtanh.f32 %v6753_v54  ;;  %v2260_v42 = vld [vmem:[#allocation10 + $0x3f0] sm:$0xff] }
 0x89e   :  { %v4932_v53 = vpack.c.bf16 %v2260_v42, %v2256_v41  ;;  %v2162_v41 = vld [vmem:[#allocation12 + $0x328] sm:$0xff]  ;;  %v2160_v42 = vld [vmem:[#allocation12 + $0x318] sm:$0xff] }
 0x8a7   :  { %v5731_v4 = vpop.eup %5730 }
 0x8a8   :  { %v6756_v18 = vmul.f32 %v5731_v4, %v5729_v30  ;;  %v2239_v30 = vld [vmem:[#allocation10 + $0x348] sm:$0xff] }
 0x8a9   :  { %v2243_v4 = vld [vmem:[#allocation10 + $0x368] sm:$0xff] }
 0x8aa   :  { %2017 = vmatmul.mubr.f32.vlgmr.msra.gmra.mrb[14].mxu1 %v6756_v18  ;;  %2088 = vmatmul.mubr.f32.vlgmr.msra.gmra.mrb[22].mxu0 %v6756_v18  ;;  %v4890_v47 = vpack.c.bf16 %v2243_v4, %v2239_v30  ;;  %v2133_v4 = vld [vmem:[#allocation12 + $0x240] sm:$0xff] }
 0x8ab   :  { %4873 = vmatpush1.bf16.msra.mxu1 %v4872_v20  ;;  %4905 = vmatpush1.bf16.msra.mxu0 %v4904_v38  ;;  %v2241_v20 = vld [vmem:[#allocation10 + $0x358] sm:$0xff] }
 0x8ac   :  { %4875 = vmatprep.subr.bf16.mxu1 %v4874_v48  ;;  %4907 = vmatprep.subr.bf16.mxu0 %v4906_v39  ;;  %v2245_v38 = vld [vmem:[#allocation10 + $0x378] sm:$0xff]  ;;  %v2238_v48 = vld [vmem:[#allocation10 + $0x340] sm:$0xff] }
 0x8ad   :  { %2349 = vmatprep.mubr.f32.mxu1 %v6098_v57  ;;  %2462 = vmatprep.mubr.f32.mxu0 %v6098_v57  ;;  %v2242_v39 = vld [vmem:[#allocation10 + $0x360] sm:$0xff]  ;;  %v4922_v63 = vpack.c.bf16 %v2245_v38, %v2241_v20  ;;  %v2140_v38 = vld [vmem:[#allocation12 + $0x278] sm:$0xff] }
 0x8ae   :  { %v4892_v28 = vpack.c.bf16 %v2242_v39, %v2238_v48  ;;  %v2137_v20 = vld [vmem:[#allocation12 + $0x260] sm:$0xff]  ;;  %v2135_v48 = vld [vmem:[#allocation12 + $0x250] sm:$0xff] }
 0x8af   :  { %4877 = vmatpush1.bf16.msra.mxu1 %v4876_v21  ;;  %4909 = vmatpush1.bf16.msra.mxu0 %v4908_v22  ;;  %v2249_v21 = vld [vmem:[#allocation10 + $0x398] sm:$0xff]  ;;  %v2139_v39 = vld [vmem:[#allocation12 + $0x270] sm:$0xff] }
 0x8b0   :  { %4879 = vmatprep.subr.bf16.mxu1 %v4878_v36  ;;  %4911 = vmatprep.subr.bf16.mxu0 %v4910_v37  ;;  %v2253_v22 = vld [vmem:[#allocation10 + $0x3b8] sm:$0xff]  ;;  %v2246_v36 = vld [vmem:[#allocation10 + $0x380] sm:$0xff] }
 0x8b1   :  { %v2250_v37 = vld [vmem:[#allocation10 + $0x3a0] sm:$0xff]  ;;  %v4926_v44 = vpack.c.bf16 %v2253_v22, %v2249_v21  ;;  %v2148_v22 = vld [vmem:[#allocation12 + $0x2b8] sm:$0xff] }
 0x8b2   :  { %v4896_v15 = vpack.c.bf16 %v2250_v37, %v2246_v36  ;;  %v2145_v21 = vld [vmem:[#allocation12 + $0x2a0] sm:$0xff]  ;;  %v2143_v36 = vld [vmem:[#allocation12 + $0x290] sm:$0xff] }
 0x8b3   :  { %4881 = vmatpush1.bf16.msra.mxu1 %v4880_v5  ;;  %4913 = vmatpush1.bf16.msra.mxu0 %v4912_v8  ;;  %v2257_v5 = vld [vmem:[#allocation10 + $0x3d8] sm:$0xff]  ;;  %v2147_v37 = vld [vmem:[#allocation12 + $0x2b0] sm:$0xff] }
 0x8b4   :  { %4883 = vmatprep.subr.bf16.mxu1 %v4882_v23  ;;  %4915 = vmatprep.subr.bf16.mxu0 %v4914_v24  ;;  %v2261_v8 = vld [vmem:[#allocation10 + $0x3f8] sm:$0xff]  ;;  %v2254_v23 = vld [vmem:[#allocation10 + $0x3c0] sm:$0xff]  ;;  %v4898_v24 = vpack.c.bf16 %v2259_v62, %v2255_v61 }
 0x8b5   :  { %v4930_v33 = vpack.c.bf16 %v2261_v8, %v2257_v5  ;;  %v4900_v52 = vpack.c.bf16 %v2258_v34, %v2254_v23  ;;  %v2149_v62 = vld [vmem:[#allocation12 + $0x2c0] sm:$0xff]  ;;  %v2156_v8 = vld [vmem:[#allocation12 + $0x2f8] sm:$0xff]  ;;  %v2151_v23 = vld [vmem:[#allocation12 + $0x2d0] sm:$0xff] }
 0x8b6   :  { %v2153_v5 = vld [vmem:[#allocation12 + $0x2e0] sm:$0xff]  ;;  %v2158_v34 = vld [vmem:[#allocation12 + $0x308] sm:$0xff] }
 0x8b7   :  { %4885 = vmatpush1.bf16.msra.mxu1 %v4884_v56  ;;  %4917 = vmatpush1.bf16.msra.mxu0 %v4916_v10  ;;  %v2129_v56 = vld [vmem:[#allocation12 + $0x220] sm:$0xff] }
 0x8b8   :  { %4887 = vmatprep.subr.bf16.mxu1 %v4886_v17  ;;  %4919 = vmatprep.subr.bf16.mxu0 %v4918_v55  ;;  %v2131_v17 = vld [vmem:[#allocation12 + $0x230] sm:$0xff]  ;;  %v2134_v55 = vld [vmem:[#allocation12 + $0x248] sm:$0xff] }
 0x8b9   :  { %v6802_v30 = vpack.c.bf16 %v2138_v19, %v2134_v55  ;;  %v2170_v55 = vld [vmem:[#allocation12 + $0x368] sm:$0xff]  ;;  %v2165_v19 = vld [vmem:[#allocation12 + $0x340] sm:$0xff] }
 0x8bb   :  { %4889 = vmatpush1.bf16.msra.mxu1 %v4888_v46  ;;  %4921 = vmatpush1.bf16.msra.mxu0 %v4920_v40  ;;  %v6804_v46 = vpack.c.bf16 %v2137_v20, %v2133_v4  ;;  %v6806_v40 = vpack.c.bf16 %v2140_v38, %v2136_v58  ;;  %v2169_v58 = vld [vmem:[#allocation12 + $0x360] sm:$0xff]  ;;  %v2168_v38 = vld [vmem:[#allocation12 + $0x358] sm:$0xff] }
 0x8bc   :  { %4891 = vmatprep.subr.bf16.mxu1 %v4890_v47  ;;  %4923 = vmatprep.subr.bf16.mxu0 %v4922_v63  ;;  %v6809_v47 = vpack.c.bf16 %v2139_v39, %v2135_v48  ;;  %v2142_v63 = vld [vmem:[#allocation12 + $0x288] sm:$0xff]  ;;  %v6851_v20 = vpack.c.bf16 %v2169_v58, %v2165_v19  ;;  %v2172_v48 = vld [vmem:[#allocation12 + $0x378] sm:$0xff]  ;;  %v2167_v39 = vld [vmem:[#allocation12 + $0x350] sm:$0xff] }
 0x8bd   :  { %v6814_v13 = vpack.c.bf16 %v2146_v6, %v2142_v63  ;;  %v6854_v63 = vpack.c.bf16 %v2172_v48, %v2168_v38  ;;  %v2171_v6 = vld [vmem:[#allocation12 + $0x370] sm:$0xff] }
 0x8bf   :  { %4893 = vmatpush1.bf16.msra.mxu1 %v4892_v28  ;;  %4925 = vmatpush1.bf16.msra.mxu0 %v4924_v29  ;;  %v6816_v28 = vpack.c.bf16 %v2145_v21, %v2141_v14  ;;  %v6818_v29 = vpack.c.bf16 %v2148_v22, %v2144_v7  ;;  %v2174_v7 = vld [vmem:[#allocation12 + $0x388] sm:$0xff]  ;;  %v6857_v21 = vpack.c.bf16 %v2171_v6, %v2167_v39 }
 0x8c0   :  { %4895 = vmatprep.subr.bf16.mxu1 %v4894_v43  ;;  %4927 = vmatprep.subr.bf16.mxu0 %v4926_v44  ;;  %v6821_v43 = vpack.c.bf16 %v2147_v37, %v2143_v36  ;;  %v2150_v44 = vld [vmem:[#allocation12 + $0x2c8] sm:$0xff]  ;;  %v2173_v36 = vld [vmem:[#allocation12 + $0x380] sm:$0xff] }
 0x8c1   :  { %v6826_v61 = vpack.c.bf16 %v2154_v50, %v2150_v44  ;;  %v2178_v14 = vld [vmem:[#allocation12 + $0x3a8] sm:$0xff]  ;;  %v2177_v37 = vld [vmem:[#allocation12 + $0x3a0] sm:$0xff]  ;;  %v2176_v44 = vld [vmem:[#allocation12 + $0x398] sm:$0xff] }
 0x8c2   :  { %v6859_v22 = vpack.c.bf16 %v2178_v14, %v2174_v7  ;;  %v2180_v50 = vld [vmem:[#allocation12 + $0x3b8] sm:$0xff] }
 0x8c3   :  { %4897 = vmatpush1.bf16.msra.mxu1 %v4896_v15  ;;  %4929 = vmatpush1.bf16.msra.mxu0 %v4928_v16  ;;  %v6828_v15 = vpack.c.bf16 %v2153_v5, %v2149_v62  ;;  %v6830_v16 = vpack.c.bf16 %v2156_v8, %v2152_v51  ;;  %v2175_v51 = vld [vmem:[#allocation12 + $0x390] sm:$0xff]  ;;  %v6863_v5 = vpack.c.bf16 %v2177_v37, %v2173_v36 }
 0x8c4   :  { %4899 = vmatprep.subr.bf16.mxu1 %v4898_v24  ;;  %4931 = vmatprep.subr.bf16.mxu0 %v4930_v33  ;;  %v2155_v24 = vld [vmem:[#allocation12 + $0x2f0] sm:$0xff]  ;;  %v6865_v8 = vpack.c.bf16 %v2180_v50, %v2176_v44 }
 0x8c5   :  { %v6833_v33 = vpack.c.bf16 %v2155_v24, %v2151_v23  ;;  %v2179_v62 = vld [vmem:[#allocation12 + $0x3b0] sm:$0xff]  ;;  %v2182_v23 = vld [vmem:[#allocation12 + $0x3c8] sm:$0xff] }
 0x8c6   :  { %v2186_v24 = vld [vmem:[#allocation12 + $0x3e8] sm:$0xff] }
 0x8c7   :  { %4901 = vmatpush1.bf16.msra.mxu1 %v4900_v52  ;;  %4933 = vmatpush1.bf16.msra.mxu0 %v4932_v53  ;;  %v6838_v52 = vpack.c.bf16 %v2162_v41, %v2158_v34  ;;  %v2157_v53 = vld [vmem:[#allocation12 + $0x300] sm:$0xff]  ;;  %v6869_v34 = vpack.c.bf16 %v2179_v62, %v2175_v51  ;;  %v6871_v41 = vpack.c.bf16 %v2186_v24, %v2182_v23 }
 0x8ca   :  { %2350 = vmatmul.mubr.f32.vlgmr.msra.gmra.mrb[16].mxu1 %v6482_v12  ;;  %2463 = vmatmul.mubr.f32.vlgmr.msra.gmra.mrb[24].mxu0 %v6482_v12  ;;  %v2126_v12 = vld [vmem:[#allocation12 + $0x208] sm:$0xff] }
 0x8cb   :  { %2355 = vmatprep.mubr.f32.mxu1 %v6098_v57  ;;  %2468 = vmatprep.mubr.f32.mxu0 %v6098_v57 }
 0x8ce   :  { %2356 = vmatmul.mubr.f32.gmra.mrb[18].mxu1 %v6528_v31  ;;  %2469 = vmatmul.mubr.f32.gmra.mrb[26].mxu0 %v6528_v31  ;;  %v2130_v31 = vld [vmem:[#allocation12 + $0x228] sm:$0xff] }
 0x8cf   :  { %2361 = vmatprep.mubr.f32.mxu1 %v6098_v57  ;;  %2474 = vmatprep.mubr.f32.mxu0 %v6098_v57 }
 0x8d2   :  { %2362 = vmatmul.mubr.f32.gmra.mrb[20].mxu1 %v6574_v45  ;;  %2475 = vmatmul.mubr.f32.gmra.mrb[28].mxu0 %v6574_v45  ;;  %v2128_v45 = vld [vmem:[#allocation12 + $0x218] sm:$0xff] }
 0x8d3   :  { %2367 = vmatprep.mubr.f32.mxu1 %v6098_v57  ;;  %2480 = vmatprep.mubr.f32.mxu0 %v6098_v57 }
 0x8d6   :  { %2368 = vmatmul.mubr.f32.gmra.mrb[22].mxu1 %v6620_v9  ;;  %2481 = vmatmul.mubr.f32.gmra.mrb[30].mxu0 %v6620_v9  ;;  %v6790_v9 = vpack.c.bf16 %v2130_v31, %v2126_v12  ;;  %v2161_v12 = vld [vmem:[#allocation12 + $0x320] sm:$0xff]  ;;  %v2164_v31 = vld [vmem:[#allocation12 + $0x338] sm:$0xff] }
 0x8d7   :  { %2373 = vmatprep.mubr.f32.mxu1 %v6098_v57  ;;  %2486 = vmatprep.mubr.f32.mxu0 %v6098_v57 }
 0x8d8   :  { %4935 = vmatprep.subr.bf16.mxu1 %v6790_v9 }
 0x8da   :  { %2374 = vmatmul.mubr.f32.gmra.mrb[24].mxu1 %v6666_v32  ;;  %2487 = vmatmul.mubr.f32.gmra.mrb[32].mxu0 %v6666_v32  ;;  %v2125_v32 = vld [vmem:[#allocation12 + $0x200] sm:$0xff] }
 0x8db   :  { %2379 = vmatprep.mubr.f32.mxu1 %v6098_v57  ;;  %2492 = vmatprep.mubr.f32.mxu0 %v6098_v57  ;;  %v6792_v10 = vpack.c.bf16 %v2129_v56, %v2125_v32  ;;  %v6842_v32 = vpack.c.bf16 %v2164_v31, %v2160_v42  ;;  %v2159_v56 = vld [vmem:[#allocation12 + $0x310] sm:$0xff]  ;;  %v2184_v42 = vld [vmem:[#allocation12 + $0x3d8] sm:$0xff]  ;;  %v2185_v31 = vld [vmem:[#allocation12 + $0x3e0] sm:$0xff] }
 0x8dd   :  { %4937 = vmatpush1.bf16.msra.mxu1 %v6792_v10 }
 0x8de   :  { %2380 = vmatmul.mubr.f32.gmra.mrb[26].mxu1 %v6712_v59  ;;  %2493 = vmatmul.mubr.f32.gmra.mrb[34].mxu0 %v6712_v59  ;;  %v2132_v59 = vld [vmem:[#allocation12 + $0x238] sm:$0xff] }
 0x8df   :  { %2385 = vmatprep.mubr.f32.mxu1 %v6098_v57  ;;  %2498 = vmatprep.mubr.f32.mxu0 %v6098_v57  ;;  %v6794_v0 = vpack.c.bf16 %v2132_v59, %v2128_v45  ;;  %v6840_v45 = vpack.c.bf16 %v2161_v12, %v2157_v53  ;;  %v2163_v59 = vld [vmem:[#allocation12 + $0x330] sm:$0xff]  ;;  %v2188_v53 = vld [vmem:[#allocation12 + $0x3f8] sm:$0xff]  ;;  %v2181_v12 = vld [vmem:[#allocation12 + $0x3c0] sm:$0xff] }
 0x8e0   :  { %4939 = vmatprep.subr.bf16.mxu1 %v6802_v30 }
 0x8e1   :  { %4967 = vmatprep.subr.bf16.mxu0 %v6794_v0  ;;  %4941 = vmatpush1.bf16.msra.mxu1 %v6804_v46 }
 0x8e2   :  { %2386 = vmatmul.mubr.f32.gmra.mrb[28].mxu1 %v6756_v18  ;;  %2499 = vmatmul.mubr.f32.gmra.mrb[36].mxu0 %v6756_v18  ;;  %v6797_v18 = vpack.c.bf16 %v2131_v17, %v2127_v35  ;;  %v2166_v35 = vld [vmem:[#allocation12 + $0x348] sm:$0xff]  ;;  %v6845_v17 = vpack.c.bf16 %v2163_v59, %v2159_v56  ;;  %v6877_v56 = vpack.c.bf16 %v2188_v53, %v2184_v42  ;;  %v2183_v59 = vld [vmem:[#allocation12 + $0x3d0] sm:$0xff] }
 0x8e3   :  { %2391 = vmatprep.mubr.f32.mxu1 %v6098_v57  ;;  %2504 = vmatprep.mubr.f32.mxu0 %v6098_v57  ;;  %v6849_v4 = vpack.c.bf16 %v2170_v55, %v2166_v35  ;;  %v6879_v35 = vpack.c.bf16 %v2185_v31, %v2181_v12  ;;  %v2187_v55 = vld [vmem:[#allocation12 + $0x3f0] sm:$0xff] }
 0x8e4   :  { %4969 = vmatpush1.bf16.msra.mxu0 %v6797_v18  ;;  %4943 = vmatprep.subr.bf16.mxu1 %v6814_v13  ;;  %v6882_v19 = vpack.c.bf16 %v2187_v55, %v2183_v59 }
 0x8e5   :  { %4971 = vmatprep.subr.bf16.mxu0 %v6806_v40  ;;  %4945 = vmatpush1.bf16.msra.mxu1 %v6816_v28 }
 0x8e6   :  { %4947 = vmatprep.subr.bf16.mxu1 %v6826_v61 }
 0x8e8   :  { %4973 = vmatpush1.bf16.msra.mxu0 %v6809_v47 }
 0x8e9   :  { %4975 = vmatprep.subr.bf16.mxu0 %v6818_v29  ;;  %4949 = vmatpush1.bf16.msra.mxu1 %v6828_v15 }
 0x8ea   :  { %4951 = vmatprep.subr.bf16.mxu1 %v6838_v52 }
 0x8ec   :  { %4977 = vmatpush1.bf16.msra.mxu0 %v6821_v43 }
 0x8ed   :  { %4979 = vmatprep.subr.bf16.mxu0 %v6830_v16  ;;  %4953 = vmatpush1.bf16.msra.mxu1 %v6840_v45 }
 0x8ee   :  { %4955 = vmatprep.subr.bf16.mxu1 %v6849_v4 }
 0x8f0   :  { %4981 = vmatpush1.bf16.msra.mxu0 %v6833_v33 }
 0x8f1   :  { %4983 = vmatprep.subr.bf16.mxu0 %v6842_v32  ;;  %4957 = vmatpush1.bf16.msra.mxu1 %v6851_v20 }
 0x8f2   :  { %4959 = vmatprep.subr.bf16.mxu1 %v6859_v22 }
 0x8f4   :  { %4985 = vmatpush1.bf16.msra.mxu0 %v6845_v17 }
 0x8f5   :  { %4987 = vmatprep.subr.bf16.mxu0 %v6854_v63  ;;  %4961 = vmatpush1.bf16.msra.mxu1 %v6863_v5 }
 0x8f6   :  { %4963 = vmatprep.subr.bf16.mxu1 %v6871_v41 }
 0x8f8   :  { %4989 = vmatpush1.bf16.msra.mxu0 %v6857_v21 }
 0x8f9   :  { %4991 = vmatprep.subr.bf16.mxu0 %v6865_v8  ;;  %4965 = vmatpush1.bf16.msra.mxu1 %v6879_v35 }
 0x8fa   :  { %4999 = vmatprep.subr.bf16.mxu1 %v6790_v9 }
 0x8fc   :  { %4993 = vmatpush1.bf16.msra.mxu0 %v6869_v34 }
 0x8fd   :  { %4995 = vmatprep.subr.bf16.mxu0 %v6877_v56 }
 0x900   :  { %4997 = vmatpush1.bf16.msra.mxu0 %v6882_v19 }
 0x901   :  { %5031 = vmatprep.subr.bf16.mxu0 %v6794_v0 }
 0x97d   :  { %v2018_v58 = vpop.f32.mrb[14].mxu1  ;;  %v2089_v38 = vpop.f32.mrb[22].mxu0 }
 0x97e   :  { %v5492_v48 = vadd.f32 %v2018_v58, %v6459_v2  ;;  %v2020_v39 = vpop.f32.mrb[15].mxu1  ;;  %v2091_v6 = vpop.f32.mrb[23].mxu0  ;;  %v5508_v37 = vadd.f32 %v2089_v38, %v6471_v26 }
 0x97f   :  { %v5493_v7 = vadd.f32 %v2020_v39, %v6463_v3  ;;  %v5509_v44 = vadd.f32 %v2091_v6, %v6475_v27 }
 0x980   :  { %v4138_v14 = vmul.f32 -1.442695, %v5492_v48  ;;  %v4140_v50 = vmul.f32 -1.442695, %v5508_v37 }
 0x981   :  { %v4139_v36 = vmul.f32 -1.442695, %v5493_v7 }
 0x982   :  { %5732 = vpow2.f32 %v4138_v14 }
 0x983   :  { %5734 = vpow2.f32 %v4139_v36 }
 0x984   :  { %5736 = vtanh.f32 %v5509_v44 }
 0x985   :  { %5738 = vpow2.f32 %v4140_v50 }
 0x98c   :  { %v5733_v51 = vpop.eup %5732 }
 0x98d   :  { %v2107_v62 = vadd.f32 1.0, %v5733_v51  ;;  %v5735_v23 = vpop.eup %5734 }
 0x98e   :  { %v2108_v2 = vadd.f32 1.0, %v5735_v23  ;;  %v5737_v24 = vpop.eup %5736 }
 0x98f   :  { %5740 = vrcp.f32 %v2107_v62  ;;  %v5739_v42 = vpop.eup %5738 }
 0x990   :  { %5742 = vrcp.f32 %v2108_v2  ;;  %v2109_v31 = vadd.f32 1.0, %v5739_v42 }
 0x992   :  { %5744 = vrcp.f32 %v2109_v31 }
 0x999   :  { %v5741_v3 = vpop.eup %5740 }
 0x99a   :  { %v2118_v53 = vmul.f32 %v5741_v3, %v5737_v24  ;;  %v5743_v12 = vpop.eup %5742 }
 0x99b   :  { %v2117_v59 = vmul.f32 %v5743_v12, %v6753_v54  ;;  %v2263_v54 = vld [vmem:[#allocation13 + $0x1] ss:$2 sm:$0xf] }
 0x99c   :  { %v5745_v27 = vpop.eup %5744  ;;  %v6933_v38 = vrot.slane %v2263_v54, %v434_v60  ;;  %v6937_v48 = vrot.slane %v2263_v54, %v438_v1  ;;  %v6943_v51 = vrot.slane %v2263_v54, %v442_v11  ;;  %v6947_v60 = vrot.slane %v2263_v54, %v446_v25 }
 0x99d   :  { %v2119_v26 = vadd.f32 %v2118_v53, %v2117_v59 }
 0x99f   :  { %5746 = vtanh.f32 %v2119_v26 }
 0x9a9   :  { %v5747_v55 = vpop.eup %5746 }
 0x9aa   :  { %v2121_v58 = vmul.f32 %v5747_v55, %v5745_v27 }
 0x9ac   :  { %2392 = vmatmul.mubr.f32.gmra.mrb[30].mxu1 %v2121_v58  ;;  %2505 = vmatmul.mubr.f32.gmra.mrb[38].mxu0 %v2121_v58 }
 0x9ad   :  { %2611 = vmatprep.mubr.f32.mxu1 %v6098_v57  ;;  %2682 = vmatprep.mubr.f32.mxu0 %v6098_v57 }
 0x9b0   :  { %2612 = vmatmul.mubr.f32.vlgmr.msra.gmra.mrb[16].mxu1 %v6098_v57  ;;  %2683 = vmatmul.mubr.f32.vlgmr.msra.gmra.mrb[24].mxu0 %v6098_v57 }
 0x9b1   :  { %5001 = vmatpush1.bf16.msra.mxu1 %v6792_v10  ;;  %5033 = vmatpush1.bf16.msra.mxu0 %v6797_v18 }
 0x9b2   :  { %5003 = vmatprep.subr.bf16.mxu1 %v6802_v30  ;;  %5035 = vmatprep.subr.bf16.mxu0 %v6806_v40 }
 0x9b3   :  { %2786 = vmatprep.mubr.f32.mxu1 %v6098_v57  ;;  %2857 = vmatprep.mubr.f32.mxu0 %v6098_v57 }
 0x9b5   :  { %5005 = vmatpush1.bf16.msra.mxu1 %v6804_v46  ;;  %5037 = vmatpush1.bf16.msra.mxu0 %v6809_v47 }
 0x9b6   :  { %5007 = vmatprep.subr.bf16.mxu1 %v6814_v13  ;;  %5039 = vmatprep.subr.bf16.mxu0 %v6818_v29 }
 0x9b9   :  { %5009 = vmatpush1.bf16.msra.mxu1 %v6816_v28  ;;  %5041 = vmatpush1.bf16.msra.mxu0 %v6821_v43 }
 0x9ba   :  { %5011 = vmatprep.subr.bf16.mxu1 %v6826_v61  ;;  %5043 = vmatprep.subr.bf16.mxu0 %v6830_v16 }
 0x9bd   :  { %5013 = vmatpush1.bf16.msra.mxu1 %v6828_v15  ;;  %5045 = vmatpush1.bf16.msra.mxu0 %v6833_v33 }
 0x9be   :  { %5015 = vmatprep.subr.bf16.mxu1 %v6838_v52  ;;  %5047 = vmatprep.subr.bf16.mxu0 %v6842_v32 }
 0x9c1   :  { %5017 = vmatpush1.bf16.msra.mxu1 %v6840_v45  ;;  %5049 = vmatpush1.bf16.msra.mxu0 %v6845_v17 }
 0x9c2   :  { %5019 = vmatprep.subr.bf16.mxu1 %v6849_v4  ;;  %5051 = vmatprep.subr.bf16.mxu0 %v6854_v63 }
 0x9c5   :  { %5021 = vmatpush1.bf16.msra.mxu1 %v6851_v20  ;;  %5053 = vmatpush1.bf16.msra.mxu0 %v6857_v21 }
 0x9c6   :  { %5023 = vmatprep.subr.bf16.mxu1 %v6859_v22  ;;  %5055 = vmatprep.subr.bf16.mxu0 %v6865_v8 }
 0x9c9   :  { %5025 = vmatpush1.bf16.msra.mxu1 %v6863_v5  ;;  %5057 = vmatpush1.bf16.msra.mxu0 %v6869_v34 }
 0x9ca   :  { %5027 = vmatprep.subr.bf16.mxu1 %v6871_v41  ;;  %5059 = vmatprep.subr.bf16.mxu0 %v6877_v56 }
 0x9cd   :  { %5029 = vmatpush1.bf16.msra.mxu1 %v6879_v35  ;;  %5061 = vmatpush1.bf16.msra.mxu0 %v6882_v19 }
 0x9ce   :  { %5063 = vmatprep.subr.bf16.mxu1 %v6790_v9  ;;  %5095 = vmatprep.subr.bf16.mxu0 %v6794_v0 }
 0xa83   :  { %v2613_v39 = vpop.f32.mrb[16].mxu1  ;;  %v2684_v6 = vpop.f32.mrb[24].mxu0 }
 0xa84   :  { %v5510_v7 = vadd.f32 %v2613_v39, %v6933_v38  ;;  %v2615_v14 = vpop.f32.mrb[17].mxu1  ;;  %v2686_v36 = vpop.f32.mrb[25].mxu0  ;;  %v5526_v1 = vadd.f32 %v2684_v6, %v6943_v51 }
 0xa85   :  { %v5511_v37 = vadd.f32 %v2615_v14, %v6937_v48  ;;  %v5527_v62 = vadd.f32 %v2686_v36, %v6947_v60 }
 0xa86   :  { %v4141_v44 = vmul.f32 -1.442695, %v5510_v7  ;;  %v4143_v23 = vmul.f32 -1.442695, %v5526_v1 }
 0xa87   :  { %v4142_v50 = vmul.f32 -1.442695, %v5511_v37 }
 0xa88   :  { %5748 = vpow2.f32 %v4141_v44 }
 0xa89   :  { %5750 = vpow2.f32 %v4142_v50 }
 0xa8a   :  { %5752 = vtanh.f32 %v5527_v62 }
 0xa8b   :  { %5754 = vpow2.f32 %v4143_v23 }
 0xa92   :  { %v5749_v2 = vpop.eup %5748 }
 0xa93   :  { %v2702_v24 = vadd.f32 1.0, %v5749_v2  ;;  %v5751_v42 = vpop.eup %5750 }
 0xa94   :  { %v2703_v3 = vadd.f32 1.0, %v5751_v42  ;;  %v5753_v11 = vpop.eup %5752 }
 0xa95   :  { %5756 = vrcp.f32 %v2702_v24  ;;  %v5755_v53 = vpop.eup %5754 }
 0xa96   :  { %5758 = vrcp.f32 %v2703_v3  ;;  %v2704_v25 = vadd.f32 1.0, %v5755_v53 }
 0xa98   :  { %5760 = vrcp.f32 %v2704_v25 }
 0xa9f   :  { %v5757_v12 = vpop.eup %5756 }
 0xaa0   :  { %v2713_v31 = vmul.f32 %v5757_v12, %v5753_v11  ;;  %v5759_v49 = vpop.eup %5758 }
 0xaa1   :  { %v2712_v59 = vmul.f32 0.0, %v5759_v49 }
 0xaa2   :  { %v5761_v27 = vpop.eup %5760 }
 0xaa3   :  { %v6951_v26 = vadd.f32 %v2713_v31, %v2712_v59 }
 0xaa5   :  { %5762 = vtanh.f32 %v6951_v26 }
 0xaaf   :  { %v5763_v55 = vpop.eup %5762 }
 0xab0   :  { %v6954_v58 = vmul.f32 %v5763_v55, %v5761_v27 }
 0xab2   :  { %2787 = vmatmul.mubr.f32.vlgmr.msra.gmra.mrb[18].mxu1 %v6954_v58  ;;  %2858 = vmatmul.mubr.f32.vlgmr.msra.gmra.mrb[26].mxu0 %v6954_v58 }
 0xab3   :  { %5065 = vmatpush1.bf16.msra.mxu1 %v6792_v10  ;;  %5097 = vmatpush1.bf16.msra.mxu0 %v6797_v18 }
 0xab4   :  { %5067 = vmatprep.subr.bf16.mxu1 %v6802_v30  ;;  %5099 = vmatprep.subr.bf16.mxu0 %v6806_v40 }
 0xab5   :  { %2961 = vmatprep.mubr.f32.mxu1 %v6098_v57  ;;  %3032 = vmatprep.mubr.f32.mxu0 %v6098_v57 }
 0xab7   :  { %5069 = vmatpush1.bf16.msra.mxu1 %v6804_v46  ;;  %5101 = vmatpush1.bf16.msra.mxu0 %v6809_v47 }
 0xab8   :  { %5071 = vmatprep.subr.bf16.mxu1 %v6814_v13  ;;  %5103 = vmatprep.subr.bf16.mxu0 %v6818_v29 }
 0xabb   :  { %5073 = vmatpush1.bf16.msra.mxu1 %v6816_v28  ;;  %5105 = vmatpush1.bf16.msra.mxu0 %v6821_v43 }
 0xabc   :  { %5075 = vmatprep.subr.bf16.mxu1 %v6826_v61  ;;  %5107 = vmatprep.subr.bf16.mxu0 %v6830_v16 }
 0xabf   :  { %5077 = vmatpush1.bf16.msra.mxu1 %v6828_v15  ;;  %5109 = vmatpush1.bf16.msra.mxu0 %v6833_v33 }
 0xac0   :  { %5079 = vmatprep.subr.bf16.mxu1 %v6838_v52  ;;  %5111 = vmatprep.subr.bf16.mxu0 %v6842_v32 }
 0xac3   :  { %5081 = vmatpush1.bf16.msra.mxu1 %v6840_v45  ;;  %5113 = vmatpush1.bf16.msra.mxu0 %v6845_v17 }
 0xac4   :  { %5083 = vmatprep.subr.bf16.mxu1 %v6849_v4  ;;  %5115 = vmatprep.subr.bf16.mxu0 %v6854_v63 }
 0xac7   :  { %5085 = vmatpush1.bf16.msra.mxu1 %v6851_v20  ;;  %5117 = vmatpush1.bf16.msra.mxu0 %v6857_v21 }
 0xac8   :  { %5087 = vmatprep.subr.bf16.mxu1 %v6859_v22  ;;  %5119 = vmatprep.subr.bf16.mxu0 %v6865_v8 }
 0xacb   :  { %5089 = vmatpush1.bf16.msra.mxu1 %v6863_v5  ;;  %5121 = vmatpush1.bf16.msra.mxu0 %v6869_v34 }
 0xacc   :  { %5091 = vmatprep.subr.bf16.mxu1 %v6871_v41  ;;  %5123 = vmatprep.subr.bf16.mxu0 %v6877_v56 }
 0xacf   :  { %5093 = vmatpush1.bf16.msra.mxu1 %v6879_v35  ;;  %5125 = vmatpush1.bf16.msra.mxu0 %v6882_v19 }
 0xad0   :  { %5127 = vmatprep.subr.bf16.mxu1 %v6790_v9  ;;  %5159 = vmatprep.subr.bf16.mxu0 %v6794_v0 }
 0xb85   :  { %v2788_v54 = vpop.f32.mrb[18].mxu1  ;;  %v2859_v39 = vpop.f32.mrb[26].mxu0 }
 0xb86   :  { %v5512_v6 = vadd.f32 %v2788_v54, %v6933_v38  ;;  %v2790_v7 = vpop.f32.mrb[19].mxu1  ;;  %v2861_v14 = vpop.f32.mrb[27].mxu0  ;;  %v5528_v50 = vadd.f32 %v2859_v39, %v6943_v51 }
 0xb87   :  { %v5513_v36 = vadd.f32 %v2790_v7, %v6937_v48  ;;  %v5529_v1 = vadd.f32 %v2861_v14, %v6947_v60 }
 0xb88   :  { %v4144_v37 = vmul.f32 -1.442695, %v5512_v6  ;;  %v4146_v62 = vmul.f32 -1.442695, %v5528_v50 }
 0xb89   :  { %v4145_v44 = vmul.f32 -1.442695, %v5513_v36 }
 0xb8a   :  { %5764 = vpow2.f32 %v4144_v37 }
 0xb8b   :  { %5766 = vpow2.f32 %v4145_v44 }
 0xb8c   :  { %5768 = vtanh.f32 %v5529_v1 }
 0xb8d   :  { %5770 = vpow2.f32 %v4146_v62 }
 0xb94   :  { %v5765_v23 = vpop.eup %5764 }
 0xb95   :  { %v2877_v2 = vadd.f32 1.0, %v5765_v23  ;;  %v5767_v24 = vpop.eup %5766 }
 0xb96   :  { %v2878_v42 = vadd.f32 1.0, %v5767_v24  ;;  %v5769_v3 = vpop.eup %5768 }
 0xb97   :  { %5772 = vrcp.f32 %v2877_v2  ;;  %v5771_v11 = vpop.eup %5770 }
 0xb98   :  { %5774 = vrcp.f32 %v2878_v42  ;;  %v2879_v49 = vadd.f32 1.0, %v5771_v11 }
 0xb9a   :  { %5776 = vrcp.f32 %v2879_v49 }
 0xba1   :  { %v5773_v53 = vpop.eup %5772 }
 0xba2   :  { %v2888_v12 = vmul.f32 %v5773_v53, %v5769_v3  ;;  %v5775_v31 = vpop.eup %5774 }
 0xba3   :  { %v2887_v25 = vmul.f32 %v5775_v31, %v6951_v26 }
 0xba4   :  { %v5777_v27 = vpop.eup %5776 }
 0xba5   :  { %v6997_v59 = vadd.f32 %v2888_v12, %v2887_v25 }
 0xba7   :  { %5778 = vtanh.f32 %v6997_v59 }
 0xbb1   :  { %v5779_v55 = vpop.eup %5778 }
 0xbb2   :  { %v7000_v54 = vmul.f32 %v5779_v55, %v5777_v27 }
 0xbb4   :  { %2962 = vmatmul.mubr.f32.vlgmr.msra.gmra.mrb[20].mxu1 %v7000_v54  ;;  %3033 = vmatmul.mubr.f32.vlgmr.msra.gmra.mrb[28].mxu0 %v7000_v54 }
 0xbb5   :  { %5129 = vmatpush1.bf16.msra.mxu1 %v6792_v10  ;;  %5161 = vmatpush1.bf16.msra.mxu0 %v6797_v18 }
 0xbb6   :  { %5131 = vmatprep.subr.bf16.mxu1 %v6802_v30  ;;  %5163 = vmatprep.subr.bf16.mxu0 %v6806_v40 }
 0xbb7   :  { %3136 = vmatprep.mubr.f32.mxu1 %v6098_v57  ;;  %3207 = vmatprep.mubr.f32.mxu0 %v6098_v57 }
 0xbb9   :  { %5133 = vmatpush1.bf16.msra.mxu1 %v6804_v46  ;;  %5165 = vmatpush1.bf16.msra.mxu0 %v6809_v47 }
 0xbba   :  { %5135 = vmatprep.subr.bf16.mxu1 %v6814_v13  ;;  %5167 = vmatprep.subr.bf16.mxu0 %v6818_v29 }
 0xbbd   :  { %5137 = vmatpush1.bf16.msra.mxu1 %v6816_v28  ;;  %5169 = vmatpush1.bf16.msra.mxu0 %v6821_v43 }
 0xbbe   :  { %5139 = vmatprep.subr.bf16.mxu1 %v6826_v61  ;;  %5171 = vmatprep.subr.bf16.mxu0 %v6830_v16 }
 0xbc1   :  { %5141 = vmatpush1.bf16.msra.mxu1 %v6828_v15  ;;  %5173 = vmatpush1.bf16.msra.mxu0 %v6833_v33 }
 0xbc2   :  { %5143 = vmatprep.subr.bf16.mxu1 %v6838_v52  ;;  %5175 = vmatprep.subr.bf16.mxu0 %v6842_v32 }
 0xbc5   :  { %5145 = vmatpush1.bf16.msra.mxu1 %v6840_v45  ;;  %5177 = vmatpush1.bf16.msra.mxu0 %v6845_v17 }
 0xbc6   :  { %5147 = vmatprep.subr.bf16.mxu1 %v6849_v4  ;;  %5179 = vmatprep.subr.bf16.mxu0 %v6854_v63 }
 0xbc9   :  { %5149 = vmatpush1.bf16.msra.mxu1 %v6851_v20  ;;  %5181 = vmatpush1.bf16.msra.mxu0 %v6857_v21 }
 0xbca   :  { %5151 = vmatprep.subr.bf16.mxu1 %v6859_v22  ;;  %5183 = vmatprep.subr.bf16.mxu0 %v6865_v8 }
 0xbcd   :  { %5153 = vmatpush1.bf16.msra.mxu1 %v6863_v5  ;;  %5185 = vmatpush1.bf16.msra.mxu0 %v6869_v34 }
 0xbce   :  { %5155 = vmatprep.subr.bf16.mxu1 %v6871_v41  ;;  %5187 = vmatprep.subr.bf16.mxu0 %v6877_v56 }
 0xbd1   :  { %5157 = vmatpush1.bf16.msra.mxu1 %v6879_v35  ;;  %5189 = vmatpush1.bf16.msra.mxu0 %v6882_v19 }
 0xbd2   :  { %5191 = vmatprep.subr.bf16.mxu1 %v6790_v9  ;;  %5223 = vmatprep.subr.bf16.mxu0 %v6794_v0 }
 0xc87   :  { %v2963_v26 = vpop.f32.mrb[20].mxu1  ;;  %v3034_v39 = vpop.f32.mrb[28].mxu0 }
 0xc88   :  { %v5514_v6 = vadd.f32 %v2963_v26, %v6933_v38  ;;  %v2965_v7 = vpop.f32.mrb[21].mxu1  ;;  %v3036_v14 = vpop.f32.mrb[29].mxu0  ;;  %v5530_v50 = vadd.f32 %v3034_v39, %v6943_v51 }
 0xc89   :  { %v5515_v36 = vadd.f32 %v2965_v7, %v6937_v48  ;;  %v5531_v1 = vadd.f32 %v3036_v14, %v6947_v60 }
 0xc8a   :  { %v4147_v37 = vmul.f32 -1.442695, %v5514_v6  ;;  %v4149_v62 = vmul.f32 -1.442695, %v5530_v50 }
 0xc8b   :  { %v4148_v44 = vmul.f32 -1.442695, %v5515_v36 }
 0xc8c   :  { %5780 = vpow2.f32 %v4147_v37 }
 0xc8d   :  { %5782 = vpow2.f32 %v4148_v44 }
 0xc8e   :  { %5784 = vtanh.f32 %v5531_v1 }
 0xc8f   :  { %5786 = vpow2.f32 %v4149_v62 }
 0xc96   :  { %v5781_v23 = vpop.eup %5780 }
 0xc97   :  { %v3052_v2 = vadd.f32 1.0, %v5781_v23  ;;  %v5783_v24 = vpop.eup %5782 }
 0xc98   :  { %v3053_v42 = vadd.f32 1.0, %v5783_v24  ;;  %v5785_v3 = vpop.eup %5784 }
 0xc99   :  { %5788 = vrcp.f32 %v3052_v2  ;;  %v5787_v11 = vpop.eup %5786 }
 0xc9a   :  { %5790 = vrcp.f32 %v3053_v42  ;;  %v3054_v49 = vadd.f32 1.0, %v5787_v11 }
 0xc9c   :  { %5792 = vrcp.f32 %v3054_v49 }
 0xca3   :  { %v5789_v53 = vpop.eup %5788 }
 0xca4   :  { %v3063_v12 = vmul.f32 %v5789_v53, %v5785_v3  ;;  %v5791_v31 = vpop.eup %5790 }
 0xca5   :  { %v3062_v25 = vmul.f32 %v5791_v31, %v6997_v59 }
 0xca6   :  { %v5793_v55 = vpop.eup %5792 }
 0xca7   :  { %v7043_v27 = vadd.f32 %v3063_v12, %v3062_v25 }
 0xca9   :  { %5794 = vtanh.f32 %v7043_v27 }
 0xcb3   :  { %v5795_v26 = vpop.eup %5794 }
 0xcb4   :  { %v7046_v39 = vmul.f32 %v5795_v26, %v5793_v55 }
 0xcb6   :  { %3137 = vmatmul.mubr.f32.vlgmr.msra.gmra.mrb[22].mxu1 %v7046_v39  ;;  %3208 = vmatmul.mubr.f32.vlgmr.msra.gmra.mrb[30].mxu0 %v7046_v39 }
 0xcb7   :  { %5193 = vmatpush1.bf16.msra.mxu1 %v6792_v10  ;;  %5225 = vmatpush1.bf16.msra.mxu0 %v6797_v18 }
 0xcb8   :  { %5195 = vmatprep.subr.bf16.mxu1 %v6802_v30  ;;  %5227 = vmatprep.subr.bf16.mxu0 %v6806_v40 }
 0xcb9   :  { %3311 = vmatprep.mubr.f32.mxu1 %v6098_v57  ;;  %3382 = vmatprep.mubr.f32.mxu0 %v6098_v57 }
 0xcbb   :  { %5197 = vmatpush1.bf16.msra.mxu1 %v6804_v46  ;;  %5229 = vmatpush1.bf16.msra.mxu0 %v6809_v47 }
 0xcbc   :  { %5199 = vmatprep.subr.bf16.mxu1 %v6814_v13  ;;  %5231 = vmatprep.subr.bf16.mxu0 %v6818_v29 }
 0xcbf   :  { %5201 = vmatpush1.bf16.msra.mxu1 %v6816_v28  ;;  %5233 = vmatpush1.bf16.msra.mxu0 %v6821_v43 }
 0xcc0   :  { %5203 = vmatprep.subr.bf16.mxu1 %v6826_v61  ;;  %5235 = vmatprep.subr.bf16.mxu0 %v6830_v16 }
 0xcc3   :  { %5205 = vmatpush1.bf16.msra.mxu1 %v6828_v15  ;;  %5237 = vmatpush1.bf16.msra.mxu0 %v6833_v33 }
 0xcc4   :  { %5207 = vmatprep.subr.bf16.mxu1 %v6838_v52  ;;  %5239 = vmatprep.subr.bf16.mxu0 %v6842_v32 }
 0xcc7   :  { %5209 = vmatpush1.bf16.msra.mxu1 %v6840_v45  ;;  %5241 = vmatpush1.bf16.msra.mxu0 %v6845_v17 }
 0xcc8   :  { %5211 = vmatprep.subr.bf16.mxu1 %v6849_v4  ;;  %5243 = vmatprep.subr.bf16.mxu0 %v6854_v63 }
 0xccb   :  { %5213 = vmatpush1.bf16.msra.mxu1 %v6851_v20  ;;  %5245 = vmatpush1.bf16.msra.mxu0 %v6857_v21 }
 0xccc   :  { %5215 = vmatprep.subr.bf16.mxu1 %v6859_v22  ;;  %5247 = vmatprep.subr.bf16.mxu0 %v6865_v8 }
 0xccf   :  { %5217 = vmatpush1.bf16.msra.mxu1 %v6863_v5  ;;  %5249 = vmatpush1.bf16.msra.mxu0 %v6869_v34 }
 0xcd0   :  { %5219 = vmatprep.subr.bf16.mxu1 %v6871_v41  ;;  %5251 = vmatprep.subr.bf16.mxu0 %v6877_v56 }
 0xcd3   :  { %5221 = vmatpush1.bf16.msra.mxu1 %v6879_v35  ;;  %5253 = vmatpush1.bf16.msra.mxu0 %v6882_v19 }
 0xcd4   :  { %5255 = vmatprep.subr.bf16.mxu1 %v6790_v9  ;;  %5287 = vmatprep.subr.bf16.mxu0 %v6794_v0 }
 0xd89   :  { %v3138_v59 = vpop.f32.mrb[22].mxu1  ;;  %v3209_v6 = vpop.f32.mrb[30].mxu0 }
 0xd8a   :  { %v5516_v7 = vadd.f32 %v3138_v59, %v6933_v38  ;;  %v3140_v14 = vpop.f32.mrb[23].mxu1  ;;  %v3211_v36 = vpop.f32.mrb[31].mxu0  ;;  %v5532_v1 = vadd.f32 %v3209_v6, %v6943_v51 }
 0xd8b   :  { %v5517_v37 = vadd.f32 %v3140_v14, %v6937_v48  ;;  %v5533_v62 = vadd.f32 %v3211_v36, %v6947_v60 }
 0xd8c   :  { %v4150_v44 = vmul.f32 -1.442695, %v5516_v7  ;;  %v4152_v23 = vmul.f32 -1.442695, %v5532_v1 }
 0xd8d   :  { %v4151_v50 = vmul.f32 -1.442695, %v5517_v37 }
 0xd8e   :  { %5796 = vpow2.f32 %v4150_v44 }
 0xd8f   :  { %5798 = vpow2.f32 %v4151_v50 }
 0xd90   :  { %5800 = vtanh.f32 %v5533_v62 }
 0xd91   :  { %5802 = vpow2.f32 %v4152_v23 }
 0xd98   :  { %v5797_v2 = vpop.eup %5796 }
 0xd99   :  { %v3227_v24 = vadd.f32 1.0, %v5797_v2  ;;  %v5799_v42 = vpop.eup %5798 }
 0xd9a   :  { %v3228_v3 = vadd.f32 1.0, %v5799_v42  ;;  %v5801_v11 = vpop.eup %5800 }
 0xd9b   :  { %5804 = vrcp.f32 %v3227_v24  ;;  %v5803_v53 = vpop.eup %5802 }
 0xd9c   :  { %5806 = vrcp.f32 %v3228_v3  ;;  %v3229_v25 = vadd.f32 1.0, %v5803_v53 }
 0xd9e   :  { %5808 = vrcp.f32 %v3229_v25 }
 0xda5   :  { %v5805_v12 = vpop.eup %5804 }
 0xda6   :  { %v3238_v31 = vmul.f32 %v5805_v12, %v5801_v11  ;;  %v5807_v49 = vpop.eup %5806 }
 0xda7   :  { %v3237_v55 = vmul.f32 %v5807_v49, %v7043_v27 }
 0xda8   :  { %v5809_v59 = vpop.eup %5808 }
 0xda9   :  { %v7089_v26 = vadd.f32 %v3238_v31, %v3237_v55 }
 0xdab   :  { %5810 = vtanh.f32 %v7089_v26 }
 0xdb5   :  { %v5811_v6 = vpop.eup %5810 }
 0xdb6   :  { %v7092_v7 = vmul.f32 %v5811_v6, %v5809_v59 }
 0xdb8   :  { %3312 = vmatmul.mubr.f32.vlgmr.msra.gmra.mrb[24].mxu1 %v7092_v7  ;;  %3383 = vmatmul.mubr.f32.vlgmr.msra.gmra.mrb[32].mxu0 %v7092_v7 }
 0xdb9   :  { %5257 = vmatpush1.bf16.msra.mxu1 %v6792_v10  ;;  %5289 = vmatpush1.bf16.msra.mxu0 %v6797_v18 }
 0xdba   :  { %5259 = vmatprep.subr.bf16.mxu1 %v6802_v30  ;;  %5291 = vmatprep.subr.bf16.mxu0 %v6806_v40 }
 0xdbb   :  { %3486 = vmatprep.mubr.f32.mxu1 %v6098_v57  ;;  %3557 = vmatprep.mubr.f32.mxu0 %v6098_v57 }
 0xdbd   :  { %5261 = vmatpush1.bf16.msra.mxu1 %v6804_v46  ;;  %5293 = vmatpush1.bf16.msra.mxu0 %v6809_v47 }
 0xdbe   :  { %5263 = vmatprep.subr.bf16.mxu1 %v6814_v13  ;;  %5295 = vmatprep.subr.bf16.mxu0 %v6818_v29 }
 0xdc1   :  { %5265 = vmatpush1.bf16.msra.mxu1 %v6816_v28  ;;  %5297 = vmatpush1.bf16.msra.mxu0 %v6821_v43 }
 0xdc2   :  { %5267 = vmatprep.subr.bf16.mxu1 %v6826_v61  ;;  %5299 = vmatprep.subr.bf16.mxu0 %v6830_v16 }
 0xdc5   :  { %5269 = vmatpush1.bf16.msra.mxu1 %v6828_v15  ;;  %5301 = vmatpush1.bf16.msra.mxu0 %v6833_v33 }
 0xdc6   :  { %5271 = vmatprep.subr.bf16.mxu1 %v6838_v52  ;;  %5303 = vmatprep.subr.bf16.mxu0 %v6842_v32 }
 0xdc9   :  { %5273 = vmatpush1.bf16.msra.mxu1 %v6840_v45  ;;  %5305 = vmatpush1.bf16.msra.mxu0 %v6845_v17 }
 0xdca   :  { %5275 = vmatprep.subr.bf16.mxu1 %v6849_v4  ;;  %5307 = vmatprep.subr.bf16.mxu0 %v6854_v63 }
 0xdcd   :  { %5277 = vmatpush1.bf16.msra.mxu1 %v6851_v20  ;;  %5309 = vmatpush1.bf16.msra.mxu0 %v6857_v21 }
 0xdce   :  { %5279 = vmatprep.subr.bf16.mxu1 %v6859_v22  ;;  %5311 = vmatprep.subr.bf16.mxu0 %v6865_v8 }
 0xdd1   :  { %5281 = vmatpush1.bf16.msra.mxu1 %v6863_v5  ;;  %5313 = vmatpush1.bf16.msra.mxu0 %v6869_v34 }
 0xdd2   :  { %5283 = vmatprep.subr.bf16.mxu1 %v6871_v41  ;;  %5315 = vmatprep.subr.bf16.mxu0 %v6877_v56 }
 0xdd5   :  { %5285 = vmatpush1.bf16.msra.mxu1 %v6879_v35  ;;  %5317 = vmatpush1.bf16.msra.mxu0 %v6882_v19 }
 0xdd6   :  { %5319 = vmatprep.subr.bf16.mxu1 %v6790_v9  ;;  %5351 = vmatprep.subr.bf16.mxu0 %v6794_v0 }
 0xe8b   :  { %v3313_v27 = vpop.f32.mrb[24].mxu1  ;;  %v3384_v14 = vpop.f32.mrb[32].mxu0 }
 0xe8c   :  { %v5518_v36 = vadd.f32 %v3313_v27, %v6933_v38  ;;  %v3315_v37 = vpop.f32.mrb[25].mxu1  ;;  %v3386_v44 = vpop.f32.mrb[33].mxu0  ;;  %v5534_v23 = vadd.f32 %v3384_v14, %v6943_v51 }
 0xe8d   :  { %v5519_v50 = vadd.f32 %v3315_v37, %v6937_v48  ;;  %v5535_v2 = vadd.f32 %v3386_v44, %v6947_v60 }
 0xe8e   :  { %v4153_v1 = vmul.f32 -1.442695, %v5518_v36  ;;  %v4155_v24 = vmul.f32 -1.442695, %v5534_v23 }
 0xe8f   :  { %v4154_v62 = vmul.f32 -1.442695, %v5519_v50 }
 0xe90   :  { %5812 = vpow2.f32 %v4153_v1 }
 0xe91   :  { %5814 = vpow2.f32 %v4154_v62 }
 0xe92   :  { %5816 = vtanh.f32 %v5535_v2 }
 0xe93   :  { %5818 = vpow2.f32 %v4155_v24 }
 0xe9a   :  { %v5813_v42 = vpop.eup %5812 }
 0xe9b   :  { %v3402_v3 = vadd.f32 1.0, %v5813_v42  ;;  %v5815_v11 = vpop.eup %5814 }
 0xe9c   :  { %v3403_v53 = vadd.f32 1.0, %v5815_v11  ;;  %v5817_v12 = vpop.eup %5816 }
 0xe9d   :  { %5820 = vrcp.f32 %v3402_v3  ;;  %v5819_v31 = vpop.eup %5818 }
 0xe9e   :  { %5822 = vrcp.f32 %v3403_v53  ;;  %v3404_v59 = vadd.f32 1.0, %v5819_v31 }
 0xea0   :  { %5824 = vrcp.f32 %v3404_v59 }
 0xea7   :  { %v5821_v49 = vpop.eup %5820 }
 0xea8   :  { %v3413_v25 = vmul.f32 %v5821_v49, %v5817_v12  ;;  %v5823_v55 = vpop.eup %5822 }
 0xea9   :  { %v3412_v6 = vmul.f32 %v5823_v55, %v7089_v26 }
 0xeaa   :  { %v5825_v14 = vpop.eup %5824 }
 0xeab   :  { %v7135_v27 = vadd.f32 %v3413_v25, %v3412_v6 }
 0xead   :  { %5826 = vtanh.f32 %v7135_v27 }
 0xeb7   :  { %v5827_v36 = vpop.eup %5826 }
 0xeb8   :  { %v7138_v37 = vmul.f32 %v5827_v36, %v5825_v14 }
 0xeba   :  { %3487 = vmatmul.mubr.f32.vlgmr.msra.gmra.mrb[26].mxu1 %v7138_v37  ;;  %3558 = vmatmul.mubr.f32.vlgmr.msra.gmra.mrb[34].mxu0 %v7138_v37 }
 0xebb   :  { %5321 = vmatpush1.bf16.msra.mxu1 %v6792_v10  ;;  %5353 = vmatpush1.bf16.msra.mxu0 %v6797_v18 }
 0xebc   :  { %5323 = vmatprep.subr.bf16.mxu1 %v6802_v30  ;;  %5355 = vmatprep.subr.bf16.mxu0 %v6806_v40 }
 0xebd   :  { %3661 = vmatprep.mubr.f32.mxu1 %v6098_v57  ;;  %3732 = vmatprep.mubr.f32.mxu0 %v6098_v57 }
 0xebf   :  { %5325 = vmatpush1.bf16.msra.mxu1 %v6804_v46  ;;  %5357 = vmatpush1.bf16.msra.mxu0 %v6809_v47 }
 0xec0   :  { %5327 = vmatprep.subr.bf16.mxu1 %v6814_v13  ;;  %5359 = vmatprep.subr.bf16.mxu0 %v6818_v29 }
 0xec3   :  { %5329 = vmatpush1.bf16.msra.mxu1 %v6816_v28  ;;  %5361 = vmatpush1.bf16.msra.mxu0 %v6821_v43 }
 0xec4   :  { %5331 = vmatprep.subr.bf16.mxu1 %v6826_v61  ;;  %5363 = vmatprep.subr.bf16.mxu0 %v6830_v16 }
 0xec7   :  { %5333 = vmatpush1.bf16.msra.mxu1 %v6828_v15  ;;  %5365 = vmatpush1.bf16.msra.mxu0 %v6833_v33 }
 0xec8   :  { %5335 = vmatprep.subr.bf16.mxu1 %v6838_v52  ;;  %5367 = vmatprep.subr.bf16.mxu0 %v6842_v32 }
 0xecb   :  { %5337 = vmatpush1.bf16.msra.mxu1 %v6840_v45  ;;  %5369 = vmatpush1.bf16.msra.mxu0 %v6845_v17 }
 0xecc   :  { %5339 = vmatprep.subr.bf16.mxu1 %v6849_v4  ;;  %5371 = vmatprep.subr.bf16.mxu0 %v6854_v63 }
 0xecf   :  { %5341 = vmatpush1.bf16.msra.mxu1 %v6851_v20  ;;  %5373 = vmatpush1.bf16.msra.mxu0 %v6857_v21 }
 0xed0   :  { %5343 = vmatprep.subr.bf16.mxu1 %v6859_v22  ;;  %5375 = vmatprep.subr.bf16.mxu0 %v6865_v8 }
 0xed3   :  { %5345 = vmatpush1.bf16.msra.mxu1 %v6863_v5  ;;  %5377 = vmatpush1.bf16.msra.mxu0 %v6869_v34 }
 0xed4   :  { %5347 = vmatprep.subr.bf16.mxu1 %v6871_v41  ;;  %5379 = vmatprep.subr.bf16.mxu0 %v6877_v56 }
 0xed7   :  { %5349 = vmatpush1.bf16.msra.mxu1 %v6879_v35  ;;  %5381 = vmatpush1.bf16.msra.mxu0 %v6882_v19 }
 0xed8   :  { %5383 = vmatprep.subr.bf16.mxu1 %v6790_v9  ;;  %5415 = vmatprep.subr.bf16.mxu0 %v6794_v0 }
 0xf8d   :  { %v3488_v26 = vpop.f32.mrb[26].mxu1  ;;  %v3559_v44 = vpop.f32.mrb[34].mxu0 }
 0xf8e   :  { %v5520_v50 = vadd.f32 %v3488_v26, %v6933_v38  ;;  %v3490_v1 = vpop.f32.mrb[27].mxu1  ;;  %v3561_v62 = vpop.f32.mrb[35].mxu0  ;;  %v5536_v42 = vadd.f32 %v3559_v44, %v6943_v51 }
 0xf8f   :  { %v5521_v23 = vadd.f32 %v3490_v1, %v6937_v48  ;;  %v5537_v3 = vadd.f32 %v3561_v62, %v6947_v60  ;;  %v3955_v1 = vld [vmem:[#allocation15 + $0x20] sm:$0xff]  ;;  %v3956_v62 = vld [vmem:[#allocation15 + $0x28] sm:$0xff] }
 0xf90   :  { %v4156_v2 = vmul.f32 -1.442695, %v5520_v50  ;;  %v4158_v11 = vmul.f32 -1.442695, %v5536_v42 }
 0xf91   :  { %v4157_v24 = vmul.f32 -1.442695, %v5521_v23  ;;  %v5454_v23 = vpack.c.bf16 %v3956_v62, %v3955_v1 }
 0xf92   :  { %5828 = vpow2.f32 %v4156_v2  ;;  %v3957_v2 = vld [vmem:[#allocation15 + $0x30] sm:$0xff] }
 0xf93   :  { %5830 = vpow2.f32 %v4157_v24  ;;  %v3958_v24 = vld [vmem:[#allocation15 + $0x38] sm:$0xff] }
 0xf94   :  { %5832 = vtanh.f32 %v5537_v3  ;;  %v5458_v42 = vpack.c.bf16 %v3958_v24, %v3957_v2  ;;  %v3959_v3 = vld [vmem:[#allocation15 + $0x40] sm:$0xff] }
 0xf95   :  { %5834 = vpow2.f32 %v4158_v11  ;;  %v3960_v11 = vld [vmem:[#allocation15 + $0x48] sm:$0xff] }
 0xf9c   :  { %v5829_v9 = vpop.eup %5828 }
 0xf9d   :  { %v3577_v53 = vadd.f32 1.0, %v5829_v9  ;;  %v5831_v0 = vpop.eup %5830  ;;  %v5462_v9 = vpack.c.bf16 %v3960_v11, %v3959_v3 }
 0xf9e   :  { %v3578_v12 = vadd.f32 1.0, %v5831_v0  ;;  %v5833_v31 = vpop.eup %5832  ;;  %v3962_v0 = vld [vmem:[#allocation15 + $0x58] sm:$0xff] }
 0xf9f   :  { %5836 = vrcp.f32 %v3577_v53  ;;  %v5835_v49 = vpop.eup %5834  ;;  %v3961_v53 = vld [vmem:[#allocation15 + $0x50] sm:$0xff] }
 0xfa0   :  { %5838 = vrcp.f32 %v3578_v12  ;;  %v3579_v6 = vadd.f32 1.0, %v5835_v49  ;;  %v5466_v12 = vpack.c.bf16 %v3962_v0, %v3961_v53  ;;  %v3964_v49 = vld [vmem:[#allocation15 + $0x68] sm:$0xff] }
 0xfa2   :  { %5840 = vrcp.f32 %v3579_v6 }
 0xfa9   :  { %v5837_v25 = vpop.eup %5836 }
 0xfaa   :  { %v3588_v55 = vmul.f32 %v5837_v25, %v5833_v31  ;;  %v5839_v59 = vpop.eup %5838  ;;  %v3963_v31 = vld [vmem:[#allocation15 + $0x60] sm:$0xff]  ;;  %v3965_v25 = vld [vmem:[#allocation15 + $0x70] sm:$0xff] }
 0xfab   :  { %v3587_v14 = vmul.f32 %v5839_v59, %v7135_v27 }
 0xfac   :  { %v5841_v26 = vpop.eup %5840 }
 0xfad   :  { %v7181_v36 = vadd.f32 %v3588_v55, %v3587_v14  ;;  %v3966_v55 = vld [vmem:[#allocation15 + $0x78] sm:$0xff] }
 0xfae   :  { %v5474_v59 = vpack.c.bf16 %v3966_v55, %v3965_v25 }
 0xfaf   :  { %5842 = vtanh.f32 %v7181_v36 }
 0xfb9   :  { %v5843_v44 = vpop.eup %5842 }
 0xfba   :  { %v7184_v50 = vmul.f32 %v5843_v44, %v5841_v26 }
 0xfbc   :  { %3662 = vmatmul.mubr.f32.vlgmr.msra.gmra.mrb[28].mxu1 %v7184_v50  ;;  %3733 = vmatmul.mubr.f32.vlgmr.msra.gmra.mrb[36].mxu0 %v7184_v50 }
 0xfbd   :  { %5385 = vmatpush1.bf16.msra.mxu1 %v6792_v10  ;;  %5417 = vmatpush1.bf16.msra.mxu0 %v6797_v18  ;;  %v3952_v10 = vld [vmem:[#allocation15 + $0x8] sm:$0xff] }
 0xfbe   :  { %5387 = vmatprep.subr.bf16.mxu1 %v6802_v30  ;;  %5419 = vmatprep.subr.bf16.mxu0 %v6806_v40 }
 0xfbf   :  { %3836 = vmatprep.mubr.f32.mxu1 %v6098_v57  ;;  %3907 = vmatprep.mubr.f32.mxu0 %v6098_v57  ;;  %v3951_v57 = vld [vmem:[#allocation15] sm:$0xff] }
 0xfc0   :  { %v5446_v18 = vpack.c.bf16 %v3952_v10, %v3951_v57 }
 0xfc1   :  { %5389 = vmatpush1.bf16.msra.mxu1 %v6804_v46  ;;  %5421 = vmatpush1.bf16.msra.mxu0 %v6809_v47 }
 0xfc2   :  { %5391 = vmatprep.subr.bf16.mxu1 %v6814_v13  ;;  %5423 = vmatprep.subr.bf16.mxu0 %v6818_v29 }
 0xfc5   :  { %5393 = vmatpush1.bf16.msra.mxu1 %v6816_v28  ;;  %5425 = vmatpush1.bf16.msra.mxu0 %v6821_v43 }
 0xfc6   :  { %5395 = vmatprep.subr.bf16.mxu1 %v6826_v61  ;;  %5427 = vmatprep.subr.bf16.mxu0 %v6830_v16 }
 0xfc9   :  { %5397 = vmatpush1.bf16.msra.mxu1 %v6828_v15  ;;  %5429 = vmatpush1.bf16.msra.mxu0 %v6833_v33 }
 0xfca   :  { %5399 = vmatprep.subr.bf16.mxu1 %v6838_v52  ;;  %5431 = vmatprep.subr.bf16.mxu0 %v6842_v32 }
 0xfcd   :  { %5401 = vmatpush1.bf16.msra.mxu1 %v6840_v45  ;;  %5433 = vmatpush1.bf16.msra.mxu0 %v6845_v17 }
 0xfce   :  { %5403 = vmatprep.subr.bf16.mxu1 %v6849_v4  ;;  %5435 = vmatprep.subr.bf16.mxu0 %v6854_v63 }
 0xfd1   :  { %5405 = vmatpush1.bf16.msra.mxu1 %v6851_v20  ;;  %5437 = vmatpush1.bf16.msra.mxu0 %v6857_v21 }
 0xfd2   :  { %5407 = vmatprep.subr.bf16.mxu1 %v6859_v22  ;;  %5439 = vmatprep.subr.bf16.mxu0 %v6865_v8 }
 0xfd5   :  { %5409 = vmatpush1.bf16.msra.mxu1 %v6863_v5  ;;  %5441 = vmatpush1.bf16.msra.mxu0 %v6869_v34  ;;  %v3953_v34 = vld [vmem:[#allocation15 + $0x10] sm:$0xff] }
 0xfd6   :  { %5411 = vmatprep.subr.bf16.mxu1 %v6871_v41  ;;  %5443 = vmatprep.subr.bf16.mxu0 %v6877_v56  ;;  %v3954_v41 = vld [vmem:[#allocation15 + $0x18] sm:$0xff] }
 0xfd7   :  { %v5450_v27 = vpack.c.bf16 %v3954_v41, %v3953_v34 }
 0xfd9   :  { %5413 = vmatpush1.bf16.msra.mxu1 %v6879_v35  ;;  %5445 = vmatpush1.bf16.msra.mxu0 %v6882_v19 }
 0xfda   :  { %5447 = vmatprep.subr.bf16.mxu1 %v5446_v18 }
0x108f   :  { %v3663_v30 = vpop.f32.mrb[28].mxu1  ;;  %v3734_v46 = vpop.f32.mrb[36].mxu0 }
0x1090   :  { %v5522_v40 = vadd.f32 %v3663_v30, %v6933_v38  ;;  %v3665_v47 = vpop.f32.mrb[29].mxu1  ;;  %v3736_v13 = vpop.f32.mrb[37].mxu0  ;;  %v5538_v61 = vadd.f32 %v3734_v46, %v6943_v51 }
0x1091   :  { %v5523_v28 = vadd.f32 %v3665_v47, %v6937_v48  ;;  %v5539_v15 = vadd.f32 %v3736_v13, %v6947_v60 }
0x1092   :  { %v4159_v29 = vmul.f32 -1.442695, %v5522_v40  ;;  %v4161_v16 = vmul.f32 -1.442695, %v5538_v61 }
0x1093   :  { %v4160_v43 = vmul.f32 -1.442695, %v5523_v28 }
0x1094   :  { %5844 = vpow2.f32 %v4159_v29  ;;  %v4165_v29 = vld [vmem:[#allocation16] ss:$0 sm:$0xff] }
0x1095   :  { %5846 = vpow2.f32 %v4160_v43 }
0x1096   :  { %5848 = vtanh.f32 %v5539_v15 }
0x1097   :  { %5850 = vpow2.f32 %v4161_v16 }
0x109e   :  { %v5845_v33 = vpop.eup %5844 }
0x109f   :  { %v3752_v52 = vadd.f32 1.0, %v5845_v33  ;;  %v5847_v45 = vpop.eup %5846 }
0x10a0   :  { %v3753_v32 = vadd.f32 1.0, %v5847_v45  ;;  %v5849_v17 = vpop.eup %5848 }
0x10a1   :  { %5852 = vrcp.f32 %v3752_v52  ;;  %v5851_v4 = vpop.eup %5850 }
0x10a2   :  { %5854 = vrcp.f32 %v3753_v32  ;;  %v3754_v22 = vadd.f32 1.0, %v5851_v4 }
0x10a4   :  { %5856 = vrcp.f32 %v3754_v22 }
0x10ab   :  { %v5853_v20 = vpop.eup %5852 }
0x10ac   :  { %v3763_v63 = vmul.f32 %v5853_v20, %v5849_v17  ;;  %v5855_v21 = vpop.eup %5854 }
0x10ad   :  { %v3762_v5 = vmul.f32 %v5855_v21, %v7181_v36 }
0x10ae   :  { %v5857_v56 = vpop.eup %5856 }
0x10af   :  { %v7225_v8 = vadd.f32 %v3763_v63, %v3762_v5 }
0x10b1   :  { %5858 = vtanh.f32 %v7225_v8 }
0x10bb   :  { %v5859_v35 = vpop.eup %5858 }
0x10bc   :  { %v3766_v19 = vmul.f32 %v5859_v35, %v5857_v56 }
0x10be   :  { %3837 = vmatmul.mubr.f32.vlgmr.msra.gmra.mrb[30].mxu1 %v3766_v19  ;;  %3908 = vmatmul.mubr.f32.vlgmr.msra.gmra.mrb[38].mxu0 %v3766_v19 }
0x10bf   :  { %5449 = vmatpush3.bf16.msra.mxu1 %v5446_v18  ;;  %4266 = vmatprep.mubr.f32.mxu1 %v6954_v58  ;;  %v5470_v58 = vpack.c.bf16 %v3964_v49, %v3963_v31 }
0x10c0   :  { %5451 = vmatprep.subr.bf16.mxu1 %v5450_v27 }
0x10c3   :  { %5453 = vmatpush3.bf16.msra.mxu1 %v5450_v27 }
0x10c4   :  { %5455 = vmatprep.subr.bf16.mxu1 %v5454_v23 }
0x10c7   :  { %5457 = vmatpush3.bf16.msra.mxu1 %v5454_v23 }
0x10c8   :  { %5459 = vmatprep.subr.bf16.mxu1 %v5458_v42 }
0x10cb   :  { %5461 = vmatpush3.bf16.msra.mxu1 %v5458_v42 }
0x10cc   :  { %5463 = vmatprep.subr.bf16.mxu1 %v5462_v9 }
0x10cf   :  { %5465 = vmatpush3.bf16.msra.mxu1 %v5462_v9 }
0x10d0   :  { %5467 = vmatprep.subr.bf16.mxu1 %v5466_v12 }
0x10d3   :  { %5469 = vmatpush3.bf16.msra.mxu1 %v5466_v12 }
0x10d4   :  { %5471 = vmatprep.subr.bf16.mxu1 %v5470_v58 }
0x10d7   :  { %5473 = vmatpush3.bf16.msra.mxu1 %v5470_v58 }
0x10d8   :  { %5475 = vmatprep.subr.bf16.mxu1 %v5474_v59 }
0x10db   :  { %5477 = vmatpush3.bf16.msra.mxu1 %v5474_v59 }
0x10de   :  { %4267 = vmatmul.mubr.f32.vlgmr.msra.gmra.mrb[32].mxu1 %v7000_v54 }
0x10df   :  { %4269 = vmatprep.mubr.f32.mxu1 %v7046_v39 }
0x10e2   :  { %4270 = vmatmul.mubr.f32.gmra.mrb[34].mxu1 %v7092_v7 }
0x10e3   :  { %4272 = vmatprep.mubr.f32.mxu1 %v7138_v37 }
0x10e6   :  { %4273 = vmatmul.mubr.f32.gmra.mrb[36].mxu1 %v7184_v50 }
0x10e7   :  { %4275 = vmatprep.mubr.f32.mxu1 %v3766_v19 }
0x1191   :  { %v3838_v6 = vpop.f32.mrb[30].mxu1  ;;  %v3909_v14 = vpop.f32.mrb[38].mxu0 }
0x1192   :  { %v5524_v36 = vadd.f32 %v3838_v6, %v6933_v38  ;;  %v3840_v26 = vpop.f32.mrb[31].mxu1  ;;  %v3911_v44 = vpop.f32.mrb[39].mxu0  ;;  %v5540_v54 = vadd.f32 %v3909_v14, %v6943_v51 }
0x1193   :  { %v5525_v57 = vadd.f32 %v3840_v26, %v6937_v48  ;;  %v5541_v39 = vadd.f32 %v3911_v44, %v6947_v60 }
0x1194   :  { %v4162_v10 = vmul.f32 -1.442695, %v5524_v36  ;;  %v4164_v7 = vmul.f32 -1.442695, %v5540_v54 }
0x1195   :  { %v4163_v18 = vmul.f32 -1.442695, %v5525_v57 }
0x1196   :  { %5860 = vpow2.f32 %v4162_v10 }
0x1197   :  { %5862 = vpow2.f32 %v4163_v18 }
0x1198   :  { %5864 = vtanh.f32 %v5541_v39 }
0x1199   :  { %5866 = vpow2.f32 %v4164_v7 }
0x11a0   :  { %v5861_v37 = vpop.eup %5860 }
0x11a1   :  { %v3927_v50 = vadd.f32 1.0, %v5861_v37  ;;  %v5863_v30 = vpop.eup %5862 }
0x11a2   :  { %v3928_v38 = vadd.f32 1.0, %v5863_v30  ;;  %v5865_v46 = vpop.eup %5864 }
0x11a3   :  { %5868 = vrcp.f32 %v3927_v50  ;;  %v5867_v40 = vpop.eup %5866 }
0x11a4   :  { %5870 = vrcp.f32 %v3928_v38  ;;  %v3929_v28 = vadd.f32 1.0, %v5867_v40 }
0x11a6   :  { %5872 = vrcp.f32 %v3929_v28 }
0x11ad   :  { %v5869_v48 = vpop.eup %5868 }
0x11ae   :  { %v3938_v47 = vmul.f32 %v5869_v48, %v5865_v46  ;;  %v5871_v13 = vpop.eup %5870 }
0x11af   :  { %v3937_v51 = vmul.f32 %v5871_v13, %v7225_v8 }
0x11b0   :  { %v5873_v21 = vpop.eup %5872 }
0x11b1   :  { %v4268_v43 = vpop.f32.mrb[32].mxu1  ;;  %v3939_v60 = vadd.f32 %v3938_v47, %v3937_v51 }
0x11b2   :  { %v4046_v61 = vadd.f32 %v4268_v43, %v4165_v29  ;;  %v4040_v15 = vpop.f32.mrb[33].mxu1 }
0x11b3   :  { %v4041_v16 = vadd.f32 %v4165_v29, %v4040_v15  ;;  %5874 = vtanh.f32 %v3939_v60 }
0x11b4   :  { %4080 = vst.msk [vmem:[#allocation18 + $0x8] sm:$0xff] %vm156_vm0, %v4046_v61 }
0x11b5   :  { %4079 = vst.msk [vmem:[#allocation18] sm:$0xff] %vm156_vm0, %v4041_v16  ;;  %v4271_v33 = vpop.f32.mrb[34].mxu1 }
0x11b6   :  { %v4056_v52 = vadd.f32 %v4271_v33, %v4165_v29  ;;  %v4050_v45 = vpop.f32.mrb[35].mxu1 }
0x11b7   :  { %v4051_v32 = vadd.f32 %v4165_v29, %v4050_v45 }
0x11b8   :  { %4082 = vst.msk [vmem:[#allocation18 + $0x18] sm:$0xff] %vm156_vm0, %v4056_v52 }
0x11b9   :  { %4081 = vst.msk [vmem:[#allocation18 + $0x10] sm:$0xff] %vm156_vm0, %v4051_v32  ;;  %v4274_v17 = vpop.f32.mrb[36].mxu1 }
0x11ba   :  { %v4066_v4 = vadd.f32 %v4274_v17, %v4165_v29  ;;  %v4060_v20 = vpop.f32.mrb[37].mxu1 }
0x11bb   :  { %v4061_v63 = vadd.f32 %v4165_v29, %v4060_v20 }
0x11bc   :  { %4084 = vst.msk [vmem:[#allocation18 + $0x28] sm:$0xff] %vm156_vm0, %v4066_v4 }
0x11bd   :  { %4083 = vst.msk [vmem:[#allocation18 + $0x20] sm:$0xff] %vm156_vm0, %v4061_v63  ;;  %v5875_v22 = vpop.eup %5874 }
0x11be   :  { %v3941_v5 = vmul.f32 %v5875_v22, %v5873_v21 }
0x11c0   :  { %4276 = vmatmul.mubr.f32.gmra.mrb[38].mxu1 %v3941_v5 }
0x1293   :  { %v4277_v8 = vpop.f32.mrb[38].mxu1 }
0x1294   :  { %v4076_v34 = vadd.f32 %v4277_v8, %v4165_v29  ;;  %v4070_v41 = vpop.f32.mrb[39].mxu1 }
0x1295   :  { %v4071_v56 = vadd.f32 %v4165_v29, %v4070_v41 }
0x1296   :  { %4086 = vst.msk [vmem:[#allocation18 + $0x38] sm:$0xff] %vm156_vm0, %v4076_v34 }
0x1297   :  { %4085 = vst.msk [vmem:[#allocation18 + $0x30] sm:$0xff] %vm156_vm0, %v4071_v56 }
0x1298   :  { %6063 = shalt.err (!%p6060_p12)
}
0x1299   :  { %s6064_s22 = scalar_lea.hbm %s7270_s8, 1024 }
0x129a   :  { %p6065_p13 = scmp.ne.s32.totalorder %s7270_s8, %s6064_s22  ;;  %p6068_p0 = scmp.lt.u32.totalorder %s6064_s22, %s7270_s8 }
0x129c   :  { %p6070_p1 = pnand %p6068_p0, %p6065_p13 }
0x129e   :  { %6073 = shalt.err (!%p6070_p1)
}
0x129f   :  { %4098 = dma.vmem_to_hbm [thread:$0]  %s4093_s2, 1024, %s7270_s8, [#allocation6], %s6088_s17, %s6088_s17, %s6089_s18  }
0x12a0   :  { %6084 = dma.done.wait [#allocation6], 1024  }
0x12a1   :  { %6085 = vsyncadd [#allocation6], 4294966272 }
0x12a2   :  { %4102 = vsyncpa [#allocation5], 1 }
0x12a3   :  { %4103 = vsyncpa [#allocation8], 1 }
0x12a4   :  { %4104 = vsyncpa [#allocation11], 1 }
0x12a5   :  { %4105 = vsyncpa [#allocation14], 1 }
0x12a6   :  { %4106 = vsyncpa [#allocation17], 1 }
0x12a7   :  { %4107 = vsyncpa [#allocation6], 1 }

</bundles_post_ra>
